<compile_context>
chip_gen: v6e
topology: v6e:2x2x1
jax: 0.10.0
libtpu: 0.0.40
codegen_flags: <defaults>
</compile_context>

<pallas_src>
import math
import jax
import jax.numpy as jnp
from jax import lax
from jax.experimental import pallas as pl
from jax.experimental.pallas import tpu as pltpu

# ---------------- model hyper-params ----------------
EMBED_DIM  = 32
HEAD_NUM   = 4
QKV_DIM    = 8
HK         = HEAD_NUM * QKV_DIM      # 32
FF_HIDDEN  = 64
ENC_LAYERS = 2
LOGIT_CLIP = 10.0
IN_EPS     = 1e-5
MASK_NEG   = -1e9                    # finite "-inf"


# ---------------- in-kernel helpers ----------------
def _softmax_last(x):
    m = jnp.max(x, axis=-1, keepdims=True)
    e = jnp.exp(x - m)
    return e / jnp.sum(e, axis=-1, keepdims=True)        # exact: rows must sum to 1


def _instance_norm(x, gamma, beta):
    # nn.InstanceNorm1d(D, affine=True) on (B, D, N): normalize over tokens per channel.
    mean = jnp.mean(x, axis=1, keepdims=True)
    var = jnp.mean((x - mean) ** 2, axis=1, keepdims=True)
    return (x - mean) * lax.rsqrt(var + IN_EPS) * gamma + beta


def _dense(x, w):
    # lane-dense (B*T, Din) @ (Din, Dout); leading-dim reshapes only.
    b, t, c = x.shape
    y = jnp.dot(x.reshape(b * t, c), w, preferred_element_type=jnp.float32)
    return y.reshape(b, t, w.shape[-1])


def _split_heads(x):
    # (B, T, HK) -> (B*H, T, dh): lane slices + stack on a new major dim (no 4D transpose).
    b, t, _ = x.shape
    xh = jnp.stack([x[:, :, h * QKV_DIM:(h + 1) * QKV_DIM] for h in range(HEAD_NUM)], axis=1)
    return xh.reshape(b * HEAD_NUM, t, QKV_DIM)


def _merge_heads(x):
    # (B*H, T, dh) -> (B, T, HK): lane-concat of per-head slices.
    g, t, _ = x.shape
    b = g // HEAD_NUM
    xh = x.reshape(b, HEAD_NUM, t, QKV_DIM)
    return jnp.concatenate([xh[:, h] for h in range(HEAD_NUM)], axis=-1)


def _mha(q, k, v, mask=None):
    # q: (B,T,HK), k/v: (B,S,HK).  Heads folded into the leading batch dim for the
    # score / attention-times-V einsums (canonical 3D batched-matmul forms).
    b = q.shape[0]
    qh, kh, vh = _split_heads(q), _split_heads(k), _split_heads(v)
    s = jnp.einsum('gte,gse->gts', qh, kh,
                   preferred_element_type=jnp.float32) * (1.0 / math.sqrt(QKV_DIM))
    if mask is not None:
        t, n = s.shape[1], s.shape[2]
        s = (s.reshape(b, HEAD_NUM, t, n) + mask[:, None, :, :]).reshape(b * HEAD_NUM, t, n)
    a = _softmax_last(s)
    o = jnp.einsum('gts,gse->gte', a, vh, preferred_element_type=jnp.float32)
    return _merge_heads(o)                                # (B, T, HK)


def _encoder_layer(x, wqkv, wcmb, w1, w2, vec):
    d = EMBED_DIM
    qkv = _dense(x, wqkv)                                 # (B, N, 3*HK)  lane-dense
    o = _mha(qkv[..., :HK], qkv[..., HK:2 * HK], qkv[..., 2 * HK:])
    mh = _dense(o, wcmb) + vec[0:1, :d]                   # combine: (B*N, HK) @ (HK, D)
    h1 = _instance_norm(x + mh, vec[1:2, :d], vec[2:3, :d])
    ff = jnp.maximum(_dense(h1, w1) + vec[3:4, :], 0.0)
    ff = _dense(ff, w2) + vec[4:5, :d]
    return _instance_norm(h1 + ff, vec[5:6, :d], vec[6:7, :d])


def _decode(enc, idx, load, mask, dec_w, dec_tail):
    # enc: (B,N,D), idx: (B,P,1) int32, load: (B,P,1), mask: (B,P,N)
    d = EMBED_DIM
    b, n, _ = enc.shape
    p = idx.shape[1]

    # get_encoding: in-kernel one-hot (iota == idx) + batched matmul gather (no dynamic gather)
    iota = lax.broadcasted_iota(jnp.int32, (b, p, n), 2)
    onehot = (iota == idx).astype(jnp.float32)
    cur = jnp.einsum('bpn,bnd->bpd', onehot, enc, preferred_element_type=jnp.float32)

    wq_e = dec_w[:d, :HK]
    wq_l = dec_w[d:, :HK]                                 # (1, HK): load column of Wq
    wkv = dec_w[:d, HK:]                                  # (D, 2*HK)
    q = _dense(cur, wq_e) + load * wq_l                   # (B,P,HK)
    kv = _dense(enc, wkv)                                 # (B,N,2*HK)
    o = _mha(q, kv[..., :HK], kv[..., HK:], mask=mask)    # (B,P,HK)

    wc = dec_tail[:HK]
    vw1 = dec_tail[HK:HK + d]
    vw2 = dec_tail[HK + d:HK + d + 1]                     # (1, D) row of value-out weight
    bc = dec_tail[HK + d + 1:HK + d + 2]
    vb1 = dec_tail[HK + d + 2:HK + d + 3]
    vb2 = dec_tail[HK + d + 3:HK + d + 4, 0:1]            # (1, 1)
    mh = _dense(o, wc) + bc                                # (B,P,D)

    # Policy: single_head_key = encoding^T -> contract last dims, /sqrt(D), clip*tanh, +mask
    score = jnp.einsum('bpd,bnd->bpn', mh, enc,
                       preferred_element_type=jnp.float32) * (1.0 / math.sqrt(d))
    probs = _softmax_last(LOGIT_CLIP * jnp.tanh(score) + mask)

    # Value head: D -> D (relu) -> 1 (done as a lane reduce against the vw2 row)
    h1 = jnp.maximum(_dense(mh, vw1) + vb1, 0.0)
    val = jnp.sum(h1 * vw2, axis=-1, keepdims=True) + vb2  # (B,P,1)
    return probs, val


def _pack_out(probs, val, pout_ref):
    # Pack probs (B,P,N) + val (B,P,1) into one lane-dense (B,P,OUT_W) slab -> unmasked store.
    b, p, n = probs.shape
    pad_w = pout_ref.shape[-1] - n - 1
    pieces = [probs, val]
    if pad_w > 0:
        pieces.append(jnp.zeros((b, p, pad_w), jnp.float32))
    pout_ref[...] = jnp.concatenate(pieces, axis=-1)


# ---------------- fused kernels ----------------
def fused_full_kernel(feats_ref, idx_ref, load_ref, mask_ref,
                      emb_ref, enc_a_ref, enc_b_ref, dec_w_ref, dec_tail_ref,
                      enc_out_ref, pout_ref):
    d = EMBED_DIM
    f = feats_ref[...]                                     # (Bblk, N, 3)
    emb = emb_ref[...]                                     # (4, D): [w_x, w_y, w_dem, bias]
    # K=3 embedding as 3 VPU broadcast multiply-adds (no K=3 matmul).
    x = (f[..., 0:1] * emb[0:1, :] + f[..., 1:2] * emb[1:2, :]
         + f[..., 2:3] * emb[2:3, :] + emb[3:4, :])        # (Bblk, N, D)

    for l in range(ENC_LAYERS):                            # unrolled; weights stay VMEM-resident
        wa = enc_a_ref[l]                                  # (D, 3*HK + FF)
        wb = enc_b_ref[l]                                  # (HK + FF + 8, FF)
        x = _encoder_layer(
            x,
            wa[:, :3 * HK],                                # Wqkv   (D, 96)
            wb[:HK, :d],                                   # Wcomb  (HK, D)
            wa[:, 3 * HK:],                                # W1     (D, FF)
            wb[HK:HK + FF_HIDDEN, :d],                     # W2     (FF, D)
            wb[HK + FF_HIDDEN:, :])                        # packed per-layer vectors (8, FF)
    enc_out_ref[...] = x

    probs, val = _decode(x, idx_ref[...], load_ref[...], mask_ref[...],
                         dec_w_ref[...], dec_tail_ref[...])
    _pack_out(probs, val, pout_ref)


def fused_decode_kernel(enc_ref, idx_ref, load_ref, mask_ref,
                        dec_w_ref, dec_tail_ref, pout_ref):
    probs, val = _decode(enc_ref[...], idx_ref[...], load_ref[...], mask_ref[...],
                         dec_w_ref[...], dec_tail_ref[...])
    _pack_out(probs, val, pout_ref)


# ---------------- pallas_call wrappers ----------------
def _wspec(arr):
    nd = arr.ndim
    return pl.BlockSpec(arr.shape, lambda b, nd=nd: (0,) * nd)


def _pick_bblk(B, target=8):
    # fold ~`target` elements per grid step, but keep >=2 grid steps when B >= 2 so that
    # v7x's two TensorCores each get work ("parallel" grid axis).
    if B <= 1:
        return 1
    bblk = min(target, max(1, B // 2))
    while B % bblk:
        bblk -= 1
    return bblk


def _out_width(N):
    return max(128, ((N + 1 + 127) // 128) * 128)


_FULL_WEIGHTS = ('emb', 'enc_a', 'enc_b', 'dec_w', 'dec_tail')
_DEC_WEIGHTS = ('dec_w', 'dec_tail')


def run_full(feats, idx, load, mask, params):
    B, N, _ = feats.shape
    P = idx.shape[1]
    bblk = _pick_bblk(B)
    out_w = _out_width(N)
    ws = [params[k] for k in _FULL_WEIGHTS]
    enc, pout = pl.pallas_call(
        fused_full_kernel,
        out_shape=(jax.ShapeDtypeStruct((B, N, EMBED_DIM), jnp.float32),
                   jax.ShapeDtypeStruct((B, P, out_w), jnp.float32)),
        grid=(B // bblk,),
        in_specs=[pl.BlockSpec((bblk, N, 3), lambda b: (b, 0, 0)),
                  pl.BlockSpec((bblk, P, 1), lambda b: (b, 0, 0)),
                  pl.BlockSpec((bblk, P, 1), lambda b: (b, 0, 0)),
                  pl.BlockSpec((bblk, P, N), lambda b: (b, 0, 0))]
                 + [_wspec(w) for w in ws],
        out_specs=(pl.BlockSpec((bblk, N, EMBED_DIM), lambda b: (b, 0, 0)),
                   pl.BlockSpec((bblk, P, out_w), lambda b: (b, 0, 0))),
        compiler_params=pltpu.CompilerParams(dimension_semantics=("parallel",)),
    )(feats, idx, load, mask, *ws)
    return enc, pout[:, :, :N], pout[:, :, N:N + 1]


def run_decode(encoding, idx, load, mask, params):
    B, N, _ = encoding.shape
    P = idx.shape[1]
    bblk = _pick_bblk(B)
    out_w = _out_width(N)
    ws = [params[k] for k in _DEC_WEIGHTS]
    pout = pl.pallas_call(
        fused_decode_kernel,
        out_shape=jax.ShapeDtypeStruct((B, P, out_w), jnp.float32),
        grid=(B // bblk,),
        in_specs=[pl.BlockSpec((bblk, N, EMBED_DIM), lambda b: (b, 0, 0)),
                  pl.BlockSpec((bblk, P, 1), lambda b: (b, 0, 0)),
                  pl.BlockSpec((bblk, P, 1), lambda b: (b, 0, 0)),
                  pl.BlockSpec((bblk, P, N), lambda b: (b, 0, 0))]
                 + [_wspec(w) for w in ws],
        out_specs=pl.BlockSpec((bblk, P, out_w), lambda b: (b, 0, 0)),
        compiler_params=pltpu.CompilerParams(dimension_semantics=("parallel",)),
    )(encoding, idx, load, mask, *ws)
    return pout[:, :, :N], pout[:, :, N:N + 1]


# ---------------- parameter init (deterministic, synthetic; lane-dense packed layout) --------
def init_params(key):
    D, FF, L = EMBED_DIM, FF_HIDDEN, ENC_LAYERS

    def dense(k, shape, fan_in=None):
        fan_in = shape[0] if fan_in is None else fan_in
        return (1.0 / math.sqrt(fan_in)) * jax.random.normal(k, shape, jnp.float32)

    keys = iter(jax.random.split(key, 64))

    # embedding: rows [w_x, w_y, w_demand, bias]
    emb = jnp.concatenate([dense(next(keys), (3, D)), jnp.zeros((1, D), jnp.float32)], axis=0)

    enc_a, enc_b = [], []
    for _ in range(L):
        wq = dense(next(keys), (D, HK))
        wk = dense(next(keys), (D, HK))
        wv = dense(next(keys), (D, HK))
        w1 = dense(next(keys), (D, FF))
        wc = dense(next(keys), (HK, D))
        w2 = dense(next(keys), (FF, D))
        # enc_a: cols [Wq | Wk | Wv | W1]  -> one lane-dense (D, 3*HK + FF) array
        enc_a.append(jnp.concatenate([wq, wk, wv, w1], axis=1))
        # per-layer vectors: rows [bc, g1, be1, bf1(FF), bf2, g2, be2, pad]
        vec = jnp.zeros((8, FF), jnp.float32)
        vec = vec.at[1, :D].set(1.0)          # g1
        vec = vec.at[5, :D].set(1.0)          # g2
        # enc_b: rows [Wcomb(HK,D) | W2(FF,D) | vec(8,FF)], padded to FF cols
        enc_b.append(jnp.concatenate([
            jnp.pad(wc, ((0, 0), (0, FF - D))),
            jnp.pad(w2, ((0, 0), (0, FF - D))),
            vec], axis=0))

    # Decoder: Wq is Linear(D+1, HK) over cat(cur_node_enc, load); pack [Wq | Wk | Wv] with
    # the load row of Wq in the last row (zeros under the K/V column blocks).
    wq_full = dense(next(keys), (D + 1, HK))
    wk = dense(next(keys), (D, HK))
    wv = dense(next(keys), (D, HK))
    dec_w = jnp.concatenate([
        jnp.concatenate([wq_full[:D], wk, wv], axis=1),
        jnp.concatenate([wq_full[D:], jnp.zeros((1, 2 * HK), jnp.float32)], axis=1)], axis=0)

    # dec_tail rows: [Wcomb(HK,D) | val_w1(D,D) | val_w2_row(1,D) | bc | vb1 | vb2(lane0)]
    dec_tail = jnp.concatenate([
        dense(next(keys), (HK, D)),
        dense(next(keys), (D, D)),
        dense(next(keys), (D, 1)).T,
        jnp.zeros((3, D), jnp.float32)], axis=0)

    return dict(emb=emb,
                enc_a=jnp.stack(enc_a),        # (L, D, 3*HK + FF)
                enc_b=jnp.stack(enc_b),        # (L, HK + FF + 8, FF)
                dec_w=dec_w,                   # (D+1, 3*HK)
                dec_tail=dec_tail)             # (HK + D + 4, D)


# ---------------- CVRPModel.forward equivalent ----------------
def cvrp_forward(params, obs, encoding=None):
    available = obs['available']                       # (B, P, N) bool
    B, P, N = available.shape
    xy = obs['xy'].reshape(B, -1, 2).astype(jnp.float32)
    demands = obs['demands'].reshape(B, -1, 1).astype(jnp.float32)
    load = obs['load'].reshape(B, P, 1).astype(jnp.float32)
    cur_node = obs['pos']                              # (B, P, 1) int

    mask = jnp.where(available, 0.0, MASK_NEG).astype(jnp.float32)

    # Python-level branch on obs['t'] mirrors the PyTorch module (host scalar there too).
    t = obs['t']
    if t == 0:
        selected = jnp.zeros((B, P), jnp.int32)
        probs_override = jax.nn.one_hot(selected, N, dtype=jnp.float32)
        idx = selected
    elif B != 1 and t == 1:
        selected = jnp.broadcast_to(jnp.arange(1, P + 1, dtype=jnp.int32)[None, :], (B, P))
        probs_override = jax.nn.one_hot(selected, N, dtype=jnp.float32)
        idx = selected
    else:
        probs_override = None
        idx = cur_node.reshape(B, P)
    idx = idx.astype(jnp.int32).reshape(B, P, 1)       # tiny int input; one-hot built in-kernel

    if encoding is None:                               # self.encoding caching
        feats = jnp.concatenate([xy, demands], axis=-1)          # (B, N, 3)
        encoding, probs_k, val = run_full(feats, idx, load, mask, params)
    else:
        probs_k, val = run_decode(encoding, idx, load, mask, params)

    probs = probs_k if probs_override is None else probs_override
    return probs, val.reshape(B, P, 1), encoding


# ---------------- demo ----------------
if __name__ == "__main__":
    B, P, N = 2, 8, 9   # batch, pomo_size, num nodes (depot + 8 customers)

    key = jax.random.PRNGKey(0)
    k_par, k_xy, k_dem, k_load, k_av, k_pos = jax.random.split(key, 6)

    params = init_params(k_par)

    xy = jax.random.uniform(k_xy, (B, N, 2), jnp.float32)
    demands = jax.random.uniform(k_dem, (B, N, 1), jnp.float32) * 0.2
    demands = demands.at[:, 0, :].set(0.0)                     # depot demand = 0
    load = jax.random.uniform(k_load, (B, P, 1), jnp.float32)
    available = jax.random.uniform(k_av, (B, P, N)) > 0.3
    available = available.at[:, :, 0].set(True)                # depot always available
    pos = jax.random.randint(k_pos, (B, P, 1), 0, N)

    obs = dict(xy=xy, demands=demands, load=load, available=available, pos=pos, t=2)

    # First call: encoding is None -> fused encode+decode kernel.
    probs, val, encoding = cvrp_forward(params, obs)
    jax.block_until_ready((probs, val, encoding))

    # Second call: cached encoding -> fused decode-only kernel (same obs => same outputs).
    obs2 = dict(obs, t=3)
    probs2, val2, _ = cvrp_forward(params, obs2, encoding=encoding)
    jax.block_until_ready((probs2, val2))

    assert probs.shape == (B, P, N) and val.shape == (B, P, 1)
    assert bool(jnp.all(jnp.isfinite(probs))) and bool(jnp.all(jnp.isfinite(val)))
    assert bool(jnp.all(jnp.isfinite(encoding)))
    # exact softmax -> rows sum to 1
    assert bool(jnp.allclose(jnp.sum(probs, axis=-1), 1.0, atol=1e-4))
    assert bool(jnp.all(probs >= 0.0))
    # full-fused and cached-decode paths agree
    assert bool(jnp.allclose(probs, probs2, atol=1e-4))
    assert bool(jnp.allclose(val, val2, atol=1e-4))

    print("KERNEL_OK")
</pallas_src>

<mosaic_0001>
module attributes {stable_mosaic.version = 11 : i64} {
  func.func @fused_full_kernel(%arg0: i32, %arg1: memref<1x9x3xf32, #tpu.memory_space<vmem>>, %arg2: memref<1x8x1xi32, #tpu.memory_space<vmem>>, %arg3: memref<1x8x1xf32, #tpu.memory_space<vmem>>, %arg4: memref<1x8x9xf32, #tpu.memory_space<vmem>>, %arg5: memref<4x32xf32, #tpu.memory_space<vmem>>, %arg6: memref<2x32x160xf32, #tpu.memory_space<vmem>>, %arg7: memref<2x104x64xf32, #tpu.memory_space<vmem>>, %arg8: memref<33x96xf32, #tpu.memory_space<vmem>>, %arg9: memref<68x32xf32, #tpu.memory_space<vmem>>, %arg10: memref<1x9x32xf32, #tpu.memory_space<vmem>>, %arg11: memref<1x8x128xf32, #tpu.memory_space<vmem>>) attributes {dimension_semantics = [#tpu.dimension_semantics<parallel>], iteration_bounds = array<i64: 2>, scalar_prefetch = 0 : i64, scratch_operands = 0 : i64, tpu.core_type = #tpu.core_type<tc>, window_params = [{transform_indices = @transform_0, window_bounds = array<i64: 1, 9, 3>}, {transform_indices = @transform_1, window_bounds = array<i64: 1, 8, 1>}, {transform_indices = @transform_2, window_bounds = array<i64: 1, 8, 1>}, {transform_indices = @transform_3, window_bounds = array<i64: 1, 8, 9>}, {pipeline_mode = #tpu.pipeline_mode<synchronous>, transform_indices = @transform_4, window_bounds = array<i64: 4, 32>}, {pipeline_mode = #tpu.pipeline_mode<synchronous>, transform_indices = @transform_5, window_bounds = array<i64: 2, 32, 160>}, {pipeline_mode = #tpu.pipeline_mode<synchronous>, transform_indices = @transform_6, window_bounds = array<i64: 2, 104, 64>}, {pipeline_mode = #tpu.pipeline_mode<synchronous>, transform_indices = @transform_7, window_bounds = array<i64: 33, 96>}, {pipeline_mode = #tpu.pipeline_mode<synchronous>, transform_indices = @transform_8, window_bounds = array<i64: 68, 32>}, {transform_indices = @transform_9, window_bounds = array<i64: 1, 9, 32>}, {transform_indices = @transform_10, window_bounds = array<i64: 1, 8, 128>}]} {
    %c0 = arith.constant 0 : index
    %c0_0 = arith.constant 0 : index
    %c0_1 = arith.constant 0 : index
    %0 = vector.load %arg1[%c0, %c0_0, %c0_1] : memref<1x9x3xf32, #tpu.memory_space<vmem>>, vector<1x9x3xf32>
    %c0_2 = arith.constant 0 : index
    %c0_3 = arith.constant 0 : index
    %1 = vector.load %arg5[%c0_2, %c0_3] : memref<4x32xf32, #tpu.memory_space<vmem>>, vector<4x32xf32>
    %2 = vector.extract_strided_slice %0 {offsets = [0, 0, 0], sizes = [1, 9, 1], strides = [1, 1, 1]} : vector<1x9x3xf32> to vector<1x9x1xf32>
    %3 = vector.extract_strided_slice %1 {offsets = [0, 0], sizes = [1, 32], strides = [1, 1]} : vector<4x32xf32> to vector<1x32xf32>
    %4 = vector.shape_cast %3 : vector<1x32xf32> to vector<1x1x32xf32>
    %5 = vector.broadcast %2 : vector<1x9x1xf32> to vector<1x9x32xf32>
    %6 = vector.broadcast %4 : vector<1x1x32xf32> to vector<1x9x32xf32>
    %7 = arith.mulf %5, %6 : vector<1x9x32xf32>
    %8 = vector.extract_strided_slice %0 {offsets = [0, 0, 1], sizes = [1, 9, 1], strides = [1, 1, 1]} : vector<1x9x3xf32> to vector<1x9x1xf32>
    %9 = vector.extract_strided_slice %1 {offsets = [1, 0], sizes = [1, 32], strides = [1, 1]} : vector<4x32xf32> to vector<1x32xf32>
    %10 = vector.shape_cast %9 : vector<1x32xf32> to vector<1x1x32xf32>
    %11 = vector.broadcast %8 : vector<1x9x1xf32> to vector<1x9x32xf32>
    %12 = vector.broadcast %10 : vector<1x1x32xf32> to vector<1x9x32xf32>
    %13 = arith.mulf %11, %12 : vector<1x9x32xf32>
    %14 = arith.addf %7, %13 : vector<1x9x32xf32>
    %15 = vector.extract_strided_slice %0 {offsets = [0, 0, 2], sizes = [1, 9, 1], strides = [1, 1, 1]} : vector<1x9x3xf32> to vector<1x9x1xf32>
    %16 = vector.extract_strided_slice %1 {offsets = [2, 0], sizes = [1, 32], strides = [1, 1]} : vector<4x32xf32> to vector<1x32xf32>
    %17 = vector.shape_cast %16 : vector<1x32xf32> to vector<1x1x32xf32>
    %18 = vector.broadcast %15 : vector<1x9x1xf32> to vector<1x9x32xf32>
    %19 = vector.broadcast %17 : vector<1x1x32xf32> to vector<1x9x32xf32>
    %20 = arith.mulf %18, %19 : vector<1x9x32xf32>
    %21 = arith.addf %14, %20 : vector<1x9x32xf32>
    %22 = vector.extract_strided_slice %1 {offsets = [3, 0], sizes = [1, 32], strides = [1, 1]} : vector<4x32xf32> to vector<1x32xf32>
    %23 = vector.shape_cast %22 : vector<1x32xf32> to vector<1x1x32xf32>
    %24 = vector.broadcast %23 : vector<1x1x32xf32> to vector<1x9x32xf32>
    %25 = arith.addf %21, %24 : vector<1x9x32xf32>
    %c0_4 = arith.constant 0 : index
    %c0_5 = arith.constant 0 : index
    %c0_6 = arith.constant 0 : index
    %26 = vector.load %arg6[%c0_4, %c0_5, %c0_6] : memref<2x32x160xf32, #tpu.memory_space<vmem>>, vector<1x32x160xf32>
    %27 = vector.shape_cast %26 : vector<1x32x160xf32> to vector<32x160xf32>
    %c0_7 = arith.constant 0 : index
    %c0_8 = arith.constant 0 : index
    %c0_9 = arith.constant 0 : index
    %28 = vector.load %arg7[%c0_7, %c0_8, %c0_9] : memref<2x104x64xf32, #tpu.memory_space<vmem>>, vector<1x104x64xf32>
    %29 = vector.shape_cast %28 : vector<1x104x64xf32> to vector<104x64xf32>
    %30 = vector.extract_strided_slice %27 {offsets = [0, 0], sizes = [32, 96], strides = [1, 1]} : vector<32x160xf32> to vector<32x96xf32>
    %31 = vector.extract_strided_slice %29 {offsets = [0, 0], sizes = [32, 32], strides = [1, 1]} : vector<104x64xf32> to vector<32x32xf32>
    %32 = vector.extract_strided_slice %27 {offsets = [0, 96], sizes = [32, 64], strides = [1, 1]} : vector<32x160xf32> to vector<32x64xf32>
    %33 = vector.extract_strided_slice %29 {offsets = [32, 0], sizes = [64, 32], strides = [1, 1]} : vector<104x64xf32> to vector<64x32xf32>
    %34 = vector.extract_strided_slice %29 {offsets = [96, 0], sizes = [8, 64], strides = [1, 1]} : vector<104x64xf32> to vector<8x64xf32>
    %35 = vector.shape_cast %25 : vector<1x9x32xf32> to vector<9x32xf32>
    %cst = arith.constant dense<0.000000e+00> : vector<9x96xf32>
    %36 = tpu.matmul %35, %30, %cst {dimension_numbers = #tpu.dot_dimension_numbers<[1], [0], [0], [1], [0, 0, 1, 1], [], []>} : vector<9x32xf32>, vector<32x96xf32>, vector<9x96xf32> -> vector<9x96xf32>
    %37 = vector.shape_cast %36 : vector<9x96xf32> to vector<1x9x96xf32>
    %38 = vector.extract_strided_slice %37 {offsets = [0, 0, 0], sizes = [1, 9, 32], strides = [1, 1, 1]} : vector<1x9x96xf32> to vector<1x9x32xf32>
    %39 = vector.extract_strided_slice %37 {offsets = [0, 0, 32], sizes = [1, 9, 32], strides = [1, 1, 1]} : vector<1x9x96xf32> to vector<1x9x32xf32>
    %40 = vector.extract_strided_slice %37 {offsets = [0, 0, 64], sizes = [1, 9, 32], strides = [1, 1, 1]} : vector<1x9x96xf32> to vector<1x9x32xf32>
    %41 = vector.extract_strided_slice %38 {offsets = [0, 0, 0], sizes = [1, 9, 8], strides = [1, 1, 1]} : vector<1x9x32xf32> to vector<1x9x8xf32>
    %42 = vector.extract_strided_slice %38 {offsets = [0, 0, 8], sizes = [1, 9, 8], strides = [1, 1, 1]} : vector<1x9x32xf32> to vector<1x9x8xf32>
    %43 = vector.extract_strided_slice %38 {offsets = [0, 0, 16], sizes = [1, 9, 8], strides = [1, 1, 1]} : vector<1x9x32xf32> to vector<1x9x8xf32>
    %44 = vector.extract_strided_slice %38 {offsets = [0, 0, 24], sizes = [1, 9, 8], strides = [1, 1, 1]} : vector<1x9x32xf32> to vector<1x9x8xf32>
    %45 = vector.shape_cast %41 : vector<1x9x8xf32> to vector<1x1x9x8xf32>
    %46 = vector.shape_cast %42 : vector<1x9x8xf32> to vector<1x1x9x8xf32>
    %47 = vector.shape_cast %43 : vector<1x9x8xf32> to vector<1x1x9x8xf32>
    %48 = vector.shape_cast %44 : vector<1x9x8xf32> to vector<1x1x9x8xf32>
    %49 = tpu.concatenate %45, %46, %47, %48 in 1 : vector<1x1x9x8xf32>, vector<1x1x9x8xf32>, vector<1x1x9x8xf32>, vector<1x1x9x8xf32> -> vector<1x4x9x8xf32>
    %50 = vector.shape_cast %49 : vector<1x4x9x8xf32> to vector<4x9x8xf32>
    %51 = vector.extract_strided_slice %39 {offsets = [0, 0, 0], sizes = [1, 9, 8], strides = [1, 1, 1]} : vector<1x9x32xf32> to vector<1x9x8xf32>
    %52 = vector.extract_strided_slice %39 {offsets = [0, 0, 8], sizes = [1, 9, 8], strides = [1, 1, 1]} : vector<1x9x32xf32> to vector<1x9x8xf32>
    %53 = vector.extract_strided_slice %39 {offsets = [0, 0, 16], sizes = [1, 9, 8], strides = [1, 1, 1]} : vector<1x9x32xf32> to vector<1x9x8xf32>
    %54 = vector.extract_strided_slice %39 {offsets = [0, 0, 24], sizes = [1, 9, 8], strides = [1, 1, 1]} : vector<1x9x32xf32> to vector<1x9x8xf32>
    %55 = vector.shape_cast %51 : vector<1x9x8xf32> to vector<1x1x9x8xf32>
    %56 = vector.shape_cast %52 : vector<1x9x8xf32> to vector<1x1x9x8xf32>
    %57 = vector.shape_cast %53 : vector<1x9x8xf32> to vector<1x1x9x8xf32>
    %58 = vector.shape_cast %54 : vector<1x9x8xf32> to vector<1x1x9x8xf32>
    %59 = tpu.concatenate %55, %56, %57, %58 in 1 : vector<1x1x9x8xf32>, vector<1x1x9x8xf32>, vector<1x1x9x8xf32>, vector<1x1x9x8xf32> -> vector<1x4x9x8xf32>
    %60 = vector.shape_cast %59 : vector<1x4x9x8xf32> to vector<4x9x8xf32>
    %61 = vector.extract_strided_slice %40 {offsets = [0, 0, 0], sizes = [1, 9, 8], strides = [1, 1, 1]} : vector<1x9x32xf32> to vector<1x9x8xf32>
    %62 = vector.extract_strided_slice %40 {offsets = [0, 0, 8], sizes = [1, 9, 8], strides = [1, 1, 1]} : vector<1x9x32xf32> to vector<1x9x8xf32>
    %63 = vector.extract_strided_slice %40 {offsets = [0, 0, 16], sizes = [1, 9, 8], strides = [1, 1, 1]} : vector<1x9x32xf32> to vector<1x9x8xf32>
    %64 = vector.extract_strided_slice %40 {offsets = [0, 0, 24], sizes = [1, 9, 8], strides = [1, 1, 1]} : vector<1x9x32xf32> to vector<1x9x8xf32>
    %65 = vector.shape_cast %61 : vector<1x9x8xf32> to vector<1x1x9x8xf32>
    %66 = vector.shape_cast %62 : vector<1x9x8xf32> to vector<1x1x9x8xf32>
    %67 = vector.shape_cast %63 : vector<1x9x8xf32> to vector<1x1x9x8xf32>
    %68 = vector.shape_cast %64 : vector<1x9x8xf32> to vector<1x1x9x8xf32>
    %69 = tpu.concatenate %65, %66, %67, %68 in 1 : vector<1x1x9x8xf32>, vector<1x1x9x8xf32>, vector<1x1x9x8xf32>, vector<1x1x9x8xf32> -> vector<1x4x9x8xf32>
    %70 = vector.shape_cast %69 : vector<1x4x9x8xf32> to vector<4x9x8xf32>
    "tpu.trace_start"() <{level = 10 : i32, message = "gte,gse->gts"}> : () -> ()
    %cst_10 = arith.constant dense<0.000000e+00> : vector<4x9x9xf32>
    %71 = tpu.matmul %50, %60, %cst_10 {dimension_numbers = #tpu.dot_dimension_numbers<[2], [2], [1], [1], [0, 0, 0, 1, 1, 1], [0], [0]>} : vector<4x9x8xf32>, vector<4x9x8xf32>, vector<4x9x9xf32> -> vector<4x9x9xf32>
    "tpu.trace_stop"() : () -> ()
    %cst_11 = arith.constant 0.353553385 : f32
    %72 = vector.broadcast %cst_11 : f32 to vector<4x9x9xf32>
    %73 = arith.mulf %71, %72 : vector<4x9x9xf32>
    %cst_12 = arith.constant dense<0xFF800000> : vector<4x9xf32>
    %74 = vector.multi_reduction <maximumf>, %73, %cst_12 [2] : vector<4x9x9xf32> to vector<4x9xf32>
    %75 = vector.shape_cast %74 : vector<4x9xf32> to vector<4x9x1xf32>
    %76 = vector.broadcast %75 : vector<4x9x1xf32> to vector<4x9x9xf32>
    %77 = arith.subf %73, %76 : vector<4x9x9xf32>
    %78 = math.exp %77 : vector<4x9x9xf32>
    %cst_13 = arith.constant dense<0.000000e+00> : vector<4x9xf32>
    %79 = vector.multi_reduction <add>, %78, %cst_13 [2] : vector<4x9x9xf32> to vector<4x9xf32>
    %80 = vector.shape_cast %79 : vector<4x9xf32> to vector<4x9x1xf32>
    %81 = vector.broadcast %80 : vector<4x9x1xf32> to vector<4x9x9xf32>
    %82 = arith.divf %78, %81 : vector<4x9x9xf32>
    "tpu.trace_start"() <{level = 10 : i32, message = "gts,gse->gte"}> : () -> ()
    %cst_14 = arith.constant dense<0.000000e+00> : vector<4x9x8xf32>
    %83 = tpu.matmul %82, %70, %cst_14 {dimension_numbers = #tpu.dot_dimension_numbers<[2], [1], [1], [2], [0, 0, 0, 1, 1, 2], [0], [0]>} : vector<4x9x9xf32>, vector<4x9x8xf32>, vector<4x9x8xf32> -> vector<4x9x8xf32>
    "tpu.trace_stop"() : () -> ()
    %84 = vector.shape_cast %83 : vector<4x9x8xf32> to vector<1x4x9x8xf32>
    %85 = vector.extract_strided_slice %84 {offsets = [0, 0, 0, 0], sizes = [1, 1, 9, 8], strides = [1, 1, 1, 1]} : vector<1x4x9x8xf32> to vector<1x1x9x8xf32>
    %86 = vector.shape_cast %85 : vector<1x1x9x8xf32> to vector<1x9x8xf32>
    %87 = vector.extract_strided_slice %84 {offsets = [0, 1, 0, 0], sizes = [1, 1, 9, 8], strides = [1, 1, 1, 1]} : vector<1x4x9x8xf32> to vector<1x1x9x8xf32>
    %88 = vector.shape_cast %87 : vector<1x1x9x8xf32> to vector<1x9x8xf32>
    %89 = vector.extract_strided_slice %84 {offsets = [0, 2, 0, 0], sizes = [1, 1, 9, 8], strides = [1, 1, 1, 1]} : vector<1x4x9x8xf32> to vector<1x1x9x8xf32>
    %90 = vector.shape_cast %89 : vector<1x1x9x8xf32> to vector<1x9x8xf32>
    %91 = vector.extract_strided_slice %84 {offsets = [0, 3, 0, 0], sizes = [1, 1, 9, 8], strides = [1, 1, 1, 1]} : vector<1x4x9x8xf32> to vector<1x1x9x8xf32>
    %92 = vector.shape_cast %91 : vector<1x1x9x8xf32> to vector<1x9x8xf32>
    %93 = tpu.concatenate %86, %88, %90, %92 in 2 : vector<1x9x8xf32>, vector<1x9x8xf32>, vector<1x9x8xf32>, vector<1x9x8xf32> -> vector<1x9x32xf32>
    %94 = vector.shape_cast %93 : vector<1x9x32xf32> to vector<9x32xf32>
    %cst_15 = arith.constant dense<0.000000e+00> : vector<9x32xf32>
    %95 = tpu.matmul %94, %31, %cst_15 {dimension_numbers = #tpu.dot_dimension_numbers<[1], [0], [0], [1], [0, 0, 1, 1], [], []>} : vector<9x32xf32>, vector<32x32xf32>, vector<9x32xf32> -> vector<9x32xf32>
    %96 = vector.shape_cast %95 : vector<9x32xf32> to vector<1x9x32xf32>
    %97 = vector.extract_strided_slice %34 {offsets = [0, 0], sizes = [1, 32], strides = [1, 1]} : vector<8x64xf32> to vector<1x32xf32>
    %98 = vector.shape_cast %97 : vector<1x32xf32> to vector<1x1x32xf32>
    %99 = vector.broadcast %98 : vector<1x1x32xf32> to vector<1x9x32xf32>
    %100 = arith.addf %96, %99 : vector<1x9x32xf32>
    %101 = arith.addf %25, %100 : vector<1x9x32xf32>
    %102 = vector.extract_strided_slice %34 {offsets = [1, 0], sizes = [1, 32], strides = [1, 1]} : vector<8x64xf32> to vector<1x32xf32>
    %103 = vector.extract_strided_slice %34 {offsets = [2, 0], sizes = [1, 32], strides = [1, 1]} : vector<8x64xf32> to vector<1x32xf32>
    %cst_16 = arith.constant dense<0.000000e+00> : vector<1x32xf32>
    %104 = vector.multi_reduction <add>, %101, %cst_16 [1] : vector<1x9x32xf32> to vector<1x32xf32>
    %105 = vector.shape_cast %104 : vector<1x32xf32> to vector<1x1x32xf32>
    %cst_17 = arith.constant 9.000000e+00 : f32
    %106 = vector.broadcast %cst_17 : f32 to vector<1x1x32xf32>
    %107 = arith.divf %105, %106 : vector<1x1x32xf32>
    %108 = vector.broadcast %107 : vector<1x1x32xf32> to vector<1x9x32xf32>
    %109 = arith.subf %101, %108 : vector<1x9x32xf32>
    %110 = arith.mulf %109, %109 : vector<1x9x32xf32>
    %cst_18 = arith.constant dense<0.000000e+00> : vector<1x32xf32>
    %111 = vector.multi_reduction <add>, %110, %cst_18 [1] : vector<1x9x32xf32> to vector<1x32xf32>
    %112 = vector.shape_cast %111 : vector<1x32xf32> to vector<1x1x32xf32>
    %cst_19 = arith.constant 9.000000e+00 : f32
    %113 = vector.broadcast %cst_19 : f32 to vector<1x1x32xf32>
    %114 = arith.divf %112, %113 : vector<1x1x32xf32>
    %115 = vector.broadcast %107 : vector<1x1x32xf32> to vector<1x9x32xf32>
    %116 = arith.subf %101, %115 : vector<1x9x32xf32>
    %cst_20 = arith.constant 9.99999974E-6 : f32
    %117 = vector.broadcast %cst_20 : f32 to vector<1x1x32xf32>
    %118 = arith.addf %114, %117 : vector<1x1x32xf32>
    %119 = math.rsqrt %118 : vector<1x1x32xf32>
    %120 = vector.broadcast %119 : vector<1x1x32xf32> to vector<1x9x32xf32>
    %121 = arith.mulf %116, %120 : vector<1x9x32xf32>
    %122 = vector.shape_cast %102 : vector<1x32xf32> to vector<1x1x32xf32>
    %123 = vector.broadcast %122 : vector<1x1x32xf32> to vector<1x9x32xf32>
    %124 = arith.mulf %121, %123 : vector<1x9x32xf32>
    %125 = vector.shape_cast %103 : vector<1x32xf32> to vector<1x1x32xf32>
    %126 = vector.broadcast %125 : vector<1x1x32xf32> to vector<1x9x32xf32>
    %127 = arith.addf %124, %126 : vector<1x9x32xf32>
    %128 = vector.shape_cast %127 : vector<1x9x32xf32> to vector<9x32xf32>
    %cst_21 = arith.constant dense<0.000000e+00> : vector<9x64xf32>
    %129 = tpu.matmul %128, %32, %cst_21 {dimension_numbers = #tpu.dot_dimension_numbers<[1], [0], [0], [1], [0, 0, 1, 1], [], []>} : vector<9x32xf32>, vector<32x64xf32>, vector<9x64xf32> -> vector<9x64xf32>
    %130 = vector.shape_cast %129 : vector<9x64xf32> to vector<1x9x64xf32>
    %131 = vector.extract_strided_slice %34 {offsets = [3, 0], sizes = [1, 64], strides = [1, 1]} : vector<8x64xf32> to vector<1x64xf32>
    %132 = vector.shape_cast %131 : vector<1x64xf32> to vector<1x1x64xf32>
    %133 = vector.broadcast %132 : vector<1x1x64xf32> to vector<1x9x64xf32>
    %134 = arith.addf %130, %133 : vector<1x9x64xf32>
    %cst_22 = arith.constant 0.000000e+00 : f32
    %135 = vector.broadcast %cst_22 : f32 to vector<1x9x64xf32>
    %136 = arith.maximumf %134, %135 : vector<1x9x64xf32>
    %137 = vector.shape_cast %136 : vector<1x9x64xf32> to vector<9x64xf32>
    %cst_23 = arith.constant dense<0.000000e+00> : vector<9x32xf32>
    %138 = tpu.matmul %137, %33, %cst_23 {dimension_numbers = #tpu.dot_dimension_numbers<[1], [0], [0], [1], [0, 0, 1, 1], [], []>} : vector<9x64xf32>, vector<64x32xf32>, vector<9x32xf32> -> vector<9x32xf32>
    %139 = vector.shape_cast %138 : vector<9x32xf32> to vector<1x9x32xf32>
    %140 = vector.extract_strided_slice %34 {offsets = [4, 0], sizes = [1, 32], strides = [1, 1]} : vector<8x64xf32> to vector<1x32xf32>
    %141 = vector.shape_cast %140 : vector<1x32xf32> to vector<1x1x32xf32>
    %142 = vector.broadcast %141 : vector<1x1x32xf32> to vector<1x9x32xf32>
    %143 = arith.addf %139, %142 : vector<1x9x32xf32>
    %144 = arith.addf %127, %143 : vector<1x9x32xf32>
    %145 = vector.extract_strided_slice %34 {offsets = [5, 0], sizes = [1, 32], strides = [1, 1]} : vector<8x64xf32> to vector<1x32xf32>
    %146 = vector.extract_strided_slice %34 {offsets = [6, 0], sizes = [1, 32], strides = [1, 1]} : vector<8x64xf32> to vector<1x32xf32>
    %cst_24 = arith.constant dense<0.000000e+00> : vector<1x32xf32>
    %147 = vector.multi_reduction <add>, %144, %cst_24 [1] : vector<1x9x32xf32> to vector<1x32xf32>
    %148 = vector.shape_cast %147 : vector<1x32xf32> to vector<1x1x32xf32>
    %cst_25 = arith.constant 9.000000e+00 : f32
    %149 = vector.broadcast %cst_25 : f32 to vector<1x1x32xf32>
    %150 = arith.divf %148, %149 : vector<1x1x32xf32>
    %151 = vector.broadcast %150 : vector<1x1x32xf32> to vector<1x9x32xf32>
    %152 = arith.subf %144, %151 : vector<1x9x32xf32>
    %153 = arith.mulf %152, %152 : vector<1x9x32xf32>
    %cst_26 = arith.constant dense<0.000000e+00> : vector<1x32xf32>
    %154 = vector.multi_reduction <add>, %153, %cst_26 [1] : vector<1x9x32xf32> to vector<1x32xf32>
    %155 = vector.shape_cast %154 : vector<1x32xf32> to vector<1x1x32xf32>
    %cst_27 = arith.constant 9.000000e+00 : f32
    %156 = vector.broadcast %cst_27 : f32 to vector<1x1x32xf32>
    %157 = arith.divf %155, %156 : vector<1x1x32xf32>
    %158 = vector.broadcast %150 : vector<1x1x32xf32> to vector<1x9x32xf32>
    %159 = arith.subf %144, %158 : vector<1x9x32xf32>
    %cst_28 = arith.constant 9.99999974E-6 : f32
    %160 = vector.broadcast %cst_28 : f32 to vector<1x1x32xf32>
    %161 = arith.addf %157, %160 : vector<1x1x32xf32>
    %162 = math.rsqrt %161 : vector<1x1x32xf32>
    %163 = vector.broadcast %162 : vector<1x1x32xf32> to vector<1x9x32xf32>
    %164 = arith.mulf %159, %163 : vector<1x9x32xf32>
    %165 = vector.shape_cast %145 : vector<1x32xf32> to vector<1x1x32xf32>
    %166 = vector.broadcast %165 : vector<1x1x32xf32> to vector<1x9x32xf32>
    %167 = arith.mulf %164, %166 : vector<1x9x32xf32>
    %168 = vector.shape_cast %146 : vector<1x32xf32> to vector<1x1x32xf32>
    %169 = vector.broadcast %168 : vector<1x1x32xf32> to vector<1x9x32xf32>
    %170 = arith.addf %167, %169 : vector<1x9x32xf32>
    %c1 = arith.constant 1 : index
    %c0_29 = arith.constant 0 : index
    %c0_30 = arith.constant 0 : index
    %171 = vector.load %arg6[%c1, %c0_29, %c0_30] : memref<2x32x160xf32, #tpu.memory_space<vmem>>, vector<1x32x160xf32>
    %172 = vector.shape_cast %171 : vector<1x32x160xf32> to vector<32x160xf32>
    %c1_31 = arith.constant 1 : index
    %c0_32 = arith.constant 0 : index
    %c0_33 = arith.constant 0 : index
    %173 = vector.load %arg7[%c1_31, %c0_32, %c0_33] : memref<2x104x64xf32, #tpu.memory_space<vmem>>, vector<1x104x64xf32>
    %174 = vector.shape_cast %173 : vector<1x104x64xf32> to vector<104x64xf32>
    %175 = vector.extract_strided_slice %172 {offsets = [0, 0], sizes = [32, 96], strides = [1, 1]} : vector<32x160xf32> to vector<32x96xf32>
    %176 = vector.extract_strided_slice %174 {offsets = [0, 0], sizes = [32, 32], strides = [1, 1]} : vector<104x64xf32> to vector<32x32xf32>
    %177 = vector.extract_strided_slice %172 {offsets = [0, 96], sizes = [32, 64], strides = [1, 1]} : vector<32x160xf32> to vector<32x64xf32>
    %178 = vector.extract_strided_slice %174 {offsets = [32, 0], sizes = [64, 32], strides = [1, 1]} : vector<104x64xf32> to vector<64x32xf32>
    %179 = vector.extract_strided_slice %174 {offsets = [96, 0], sizes = [8, 64], strides = [1, 1]} : vector<104x64xf32> to vector<8x64xf32>
    %180 = vector.shape_cast %170 : vector<1x9x32xf32> to vector<9x32xf32>
    %cst_34 = arith.constant dense<0.000000e+00> : vector<9x96xf32>
    %181 = tpu.matmul %180, %175, %cst_34 {dimension_numbers = #tpu.dot_dimension_numbers<[1], [0], [0], [1], [0, 0, 1, 1], [], []>} : vector<9x32xf32>, vector<32x96xf32>, vector<9x96xf32> -> vector<9x96xf32>
    %182 = vector.shape_cast %181 : vector<9x96xf32> to vector<1x9x96xf32>
    %183 = vector.extract_strided_slice %182 {offsets = [0, 0, 0], sizes = [1, 9, 32], strides = [1, 1, 1]} : vector<1x9x96xf32> to vector<1x9x32xf32>
    %184 = vector.extract_strided_slice %182 {offsets = [0, 0, 32], sizes = [1, 9, 32], strides = [1, 1, 1]} : vector<1x9x96xf32> to vector<1x9x32xf32>
    %185 = vector.extract_strided_slice %182 {offsets = [0, 0, 64], sizes = [1, 9, 32], strides = [1, 1, 1]} : vector<1x9x96xf32> to vector<1x9x32xf32>
    %186 = vector.extract_strided_slice %183 {offsets = [0, 0, 0], sizes = [1, 9, 8], strides = [1, 1, 1]} : vector<1x9x32xf32> to vector<1x9x8xf32>
    %187 = vector.extract_strided_slice %183 {offsets = [0, 0, 8], sizes = [1, 9, 8], strides = [1, 1, 1]} : vector<1x9x32xf32> to vector<1x9x8xf32>
    %188 = vector.extract_strided_slice %183 {offsets = [0, 0, 16], sizes = [1, 9, 8], strides = [1, 1, 1]} : vector<1x9x32xf32> to vector<1x9x8xf32>
    %189 = vector.extract_strided_slice %183 {offsets = [0, 0, 24], sizes = [1, 9, 8], strides = [1, 1, 1]} : vector<1x9x32xf32> to vector<1x9x8xf32>
    %190 = vector.shape_cast %186 : vector<1x9x8xf32> to vector<1x1x9x8xf32>
    %191 = vector.shape_cast %187 : vector<1x9x8xf32> to vector<1x1x9x8xf32>
    %192 = vector.shape_cast %188 : vector<1x9x8xf32> to vector<1x1x9x8xf32>
    %193 = vector.shape_cast %189 : vector<1x9x8xf32> to vector<1x1x9x8xf32>
    %194 = tpu.concatenate %190, %191, %192, %193 in 1 : vector<1x1x9x8xf32>, vector<1x1x9x8xf32>, vector<1x1x9x8xf32>, vector<1x1x9x8xf32> -> vector<1x4x9x8xf32>
    %195 = vector.shape_cast %194 : vector<1x4x9x8xf32> to vector<4x9x8xf32>
    %196 = vector.extract_strided_slice %184 {offsets = [0, 0, 0], sizes = [1, 9, 8], strides = [1, 1, 1]} : vector<1x9x32xf32> to vector<1x9x8xf32>
    %197 = vector.extract_strided_slice %184 {offsets = [0, 0, 8], sizes = [1, 9, 8], strides = [1, 1, 1]} : vector<1x9x32xf32> to vector<1x9x8xf32>
    %198 = vector.extract_strided_slice %184 {offsets = [0, 0, 16], sizes = [1, 9, 8], strides = [1, 1, 1]} : vector<1x9x32xf32> to vector<1x9x8xf32>
    %199 = vector.extract_strided_slice %184 {offsets = [0, 0, 24], sizes = [1, 9, 8], strides = [1, 1, 1]} : vector<1x9x32xf32> to vector<1x9x8xf32>
    %200 = vector.shape_cast %196 : vector<1x9x8xf32> to vector<1x1x9x8xf32>
    %201 = vector.shape_cast %197 : vector<1x9x8xf32> to vector<1x1x9x8xf32>
    %202 = vector.shape_cast %198 : vector<1x9x8xf32> to vector<1x1x9x8xf32>
    %203 = vector.shape_cast %199 : vector<1x9x8xf32> to vector<1x1x9x8xf32>
    %204 = tpu.concatenate %200, %201, %202, %203 in 1 : vector<1x1x9x8xf32>, vector<1x1x9x8xf32>, vector<1x1x9x8xf32>, vector<1x1x9x8xf32> -> vector<1x4x9x8xf32>
    %205 = vector.shape_cast %204 : vector<1x4x9x8xf32> to vector<4x9x8xf32>
    %206 = vector.extract_strided_slice %185 {offsets = [0, 0, 0], sizes = [1, 9, 8], strides = [1, 1, 1]} : vector<1x9x32xf32> to vector<1x9x8xf32>
    %207 = vector.extract_strided_slice %185 {offsets = [0, 0, 8], sizes = [1, 9, 8], strides = [1, 1, 1]} : vector<1x9x32xf32> to vector<1x9x8xf32>
    %208 = vector.extract_strided_slice %185 {offsets = [0, 0, 16], sizes = [1, 9, 8], strides = [1, 1, 1]} : vector<1x9x32xf32> to vector<1x9x8xf32>
    %209 = vector.extract_strided_slice %185 {offsets = [0, 0, 24], sizes = [1, 9, 8], strides = [1, 1, 1]} : vector<1x9x32xf32> to vector<1x9x8xf32>
    %210 = vector.shape_cast %206 : vector<1x9x8xf32> to vector<1x1x9x8xf32>
    %211 = vector.shape_cast %207 : vector<1x9x8xf32> to vector<1x1x9x8xf32>
    %212 = vector.shape_cast %208 : vector<1x9x8xf32> to vector<1x1x9x8xf32>
    %213 = vector.shape_cast %209 : vector<1x9x8xf32> to vector<1x1x9x8xf32>
    %214 = tpu.concatenate %210, %211, %212, %213 in 1 : vector<1x1x9x8xf32>, vector<1x1x9x8xf32>, vector<1x1x9x8xf32>, vector<1x1x9x8xf32> -> vector<1x4x9x8xf32>
    %215 = vector.shape_cast %214 : vector<1x4x9x8xf32> to vector<4x9x8xf32>
    "tpu.trace_start"() <{level = 10 : i32, message = "gte,gse->gts"}> : () -> ()
    %cst_35 = arith.constant dense<0.000000e+00> : vector<4x9x9xf32>
    %216 = tpu.matmul %195, %205, %cst_35 {dimension_numbers = #tpu.dot_dimension_numbers<[2], [2], [1], [1], [0, 0, 0, 1, 1, 1], [0], [0]>} : vector<4x9x8xf32>, vector<4x9x8xf32>, vector<4x9x9xf32> -> vector<4x9x9xf32>
    "tpu.trace_stop"() : () -> ()
    %cst_36 = arith.constant 0.353553385 : f32
    %217 = vector.broadcast %cst_36 : f32 to vector<4x9x9xf32>
    %218 = arith.mulf %216, %217 : vector<4x9x9xf32>
    %cst_37 = arith.constant dense<0xFF800000> : vector<4x9xf32>
    %219 = vector.multi_reduction <maximumf>, %218, %cst_37 [2] : vector<4x9x9xf32> to vector<4x9xf32>
    %220 = vector.shape_cast %219 : vector<4x9xf32> to vector<4x9x1xf32>
    %221 = vector.broadcast %220 : vector<4x9x1xf32> to vector<4x9x9xf32>
    %222 = arith.subf %218, %221 : vector<4x9x9xf32>
    %223 = math.exp %222 : vector<4x9x9xf32>
    %cst_38 = arith.constant dense<0.000000e+00> : vector<4x9xf32>
    %224 = vector.multi_reduction <add>, %223, %cst_38 [2] : vector<4x9x9xf32> to vector<4x9xf32>
    %225 = vector.shape_cast %224 : vector<4x9xf32> to vector<4x9x1xf32>
    %226 = vector.broadcast %225 : vector<4x9x1xf32> to vector<4x9x9xf32>
    %227 = arith.divf %223, %226 : vector<4x9x9xf32>
    "tpu.trace_start"() <{level = 10 : i32, message = "gts,gse->gte"}> : () -> ()
    %cst_39 = arith.constant dense<0.000000e+00> : vector<4x9x8xf32>
    %228 = tpu.matmul %227, %215, %cst_39 {dimension_numbers = #tpu.dot_dimension_numbers<[2], [1], [1], [2], [0, 0, 0, 1, 1, 2], [0], [0]>} : vector<4x9x9xf32>, vector<4x9x8xf32>, vector<4x9x8xf32> -> vector<4x9x8xf32>
    "tpu.trace_stop"() : () -> ()
    %229 = vector.shape_cast %228 : vector<4x9x8xf32> to vector<1x4x9x8xf32>
    %230 = vector.extract_strided_slice %229 {offsets = [0, 0, 0, 0], sizes = [1, 1, 9, 8], strides = [1, 1, 1, 1]} : vector<1x4x9x8xf32> to vector<1x1x9x8xf32>
    %231 = vector.shape_cast %230 : vector<1x1x9x8xf32> to vector<1x9x8xf32>
    %232 = vector.extract_strided_slice %229 {offsets = [0, 1, 0, 0], sizes = [1, 1, 9, 8], strides = [1, 1, 1, 1]} : vector<1x4x9x8xf32> to vector<1x1x9x8xf32>
    %233 = vector.shape_cast %232 : vector<1x1x9x8xf32> to vector<1x9x8xf32>
    %234 = vector.extract_strided_slice %229 {offsets = [0, 2, 0, 0], sizes = [1, 1, 9, 8], strides = [1, 1, 1, 1]} : vector<1x4x9x8xf32> to vector<1x1x9x8xf32>
    %235 = vector.shape_cast %234 : vector<1x1x9x8xf32> to vector<1x9x8xf32>
    %236 = vector.extract_strided_slice %229 {offsets = [0, 3, 0, 0], sizes = [1, 1, 9, 8], strides = [1, 1, 1, 1]} : vector<1x4x9x8xf32> to vector<1x1x9x8xf32>
    %237 = vector.shape_cast %236 : vector<1x1x9x8xf32> to vector<1x9x8xf32>
    %238 = tpu.concatenate %231, %233, %235, %237 in 2 : vector<1x9x8xf32>, vector<1x9x8xf32>, vector<1x9x8xf32>, vector<1x9x8xf32> -> vector<1x9x32xf32>
    %239 = vector.shape_cast %238 : vector<1x9x32xf32> to vector<9x32xf32>
    %cst_40 = arith.constant dense<0.000000e+00> : vector<9x32xf32>
    %240 = tpu.matmul %239, %176, %cst_40 {dimension_numbers = #tpu.dot_dimension_numbers<[1], [0], [0], [1], [0, 0, 1, 1], [], []>} : vector<9x32xf32>, vector<32x32xf32>, vector<9x32xf32> -> vector<9x32xf32>
    %241 = vector.shape_cast %240 : vector<9x32xf32> to vector<1x9x32xf32>
    %242 = vector.extract_strided_slice %179 {offsets = [0, 0], sizes = [1, 32], strides = [1, 1]} : vector<8x64xf32> to vector<1x32xf32>
    %243 = vector.shape_cast %242 : vector<1x32xf32> to vector<1x1x32xf32>
    %244 = vector.broadcast %243 : vector<1x1x32xf32> to vector<1x9x32xf32>
    %245 = arith.addf %241, %244 : vector<1x9x32xf32>
    %246 = arith.addf %170, %245 : vector<1x9x32xf32>
    %247 = vector.extract_strided_slice %179 {offsets = [1, 0], sizes = [1, 32], strides = [1, 1]} : vector<8x64xf32> to vector<1x32xf32>
    %248 = vector.extract_strided_slice %179 {offsets = [2, 0], sizes = [1, 32], strides = [1, 1]} : vector<8x64xf32> to vector<1x32xf32>
    %cst_41 = arith.constant dense<0.000000e+00> : vector<1x32xf32>
    %249 = vector.multi_reduction <add>, %246, %cst_41 [1] : vector<1x9x32xf32> to vector<1x32xf32>
    %250 = vector.shape_cast %249 : vector<1x32xf32> to vector<1x1x32xf32>
    %cst_42 = arith.constant 9.000000e+00 : f32
    %251 = vector.broadcast %cst_42 : f32 to vector<1x1x32xf32>
    %252 = arith.divf %250, %251 : vector<1x1x32xf32>
    %253 = vector.broadcast %252 : vector<1x1x32xf32> to vector<1x9x32xf32>
    %254 = arith.subf %246, %253 : vector<1x9x32xf32>
    %255 = arith.mulf %254, %254 : vector<1x9x32xf32>
    %cst_43 = arith.constant dense<0.000000e+00> : vector<1x32xf32>
    %256 = vector.multi_reduction <add>, %255, %cst_43 [1] : vector<1x9x32xf32> to vector<1x32xf32>
    %257 = vector.shape_cast %256 : vector<1x32xf32> to vector<1x1x32xf32>
    %cst_44 = arith.constant 9.000000e+00 : f32
    %258 = vector.broadcast %cst_44 : f32 to vector<1x1x32xf32>
    %259 = arith.divf %257, %258 : vector<1x1x32xf32>
    %260 = vector.broadcast %252 : vector<1x1x32xf32> to vector<1x9x32xf32>
    %261 = arith.subf %246, %260 : vector<1x9x32xf32>
    %cst_45 = arith.constant 9.99999974E-6 : f32
    %262 = vector.broadcast %cst_45 : f32 to vector<1x1x32xf32>
    %263 = arith.addf %259, %262 : vector<1x1x32xf32>
    %264 = math.rsqrt %263 : vector<1x1x32xf32>
    %265 = vector.broadcast %264 : vector<1x1x32xf32> to vector<1x9x32xf32>
    %266 = arith.mulf %261, %265 : vector<1x9x32xf32>
    %267 = vector.shape_cast %247 : vector<1x32xf32> to vector<1x1x32xf32>
    %268 = vector.broadcast %267 : vector<1x1x32xf32> to vector<1x9x32xf32>
    %269 = arith.mulf %266, %268 : vector<1x9x32xf32>
    %270 = vector.shape_cast %248 : vector<1x32xf32> to vector<1x1x32xf32>
    %271 = vector.broadcast %270 : vector<1x1x32xf32> to vector<1x9x32xf32>
    %272 = arith.addf %269, %271 : vector<1x9x32xf32>
    %273 = vector.shape_cast %272 : vector<1x9x32xf32> to vector<9x32xf32>
    %cst_46 = arith.constant dense<0.000000e+00> : vector<9x64xf32>
    %274 = tpu.matmul %273, %177, %cst_46 {dimension_numbers = #tpu.dot_dimension_numbers<[1], [0], [0], [1], [0, 0, 1, 1], [], []>} : vector<9x32xf32>, vector<32x64xf32>, vector<9x64xf32> -> vector<9x64xf32>
    %275 = vector.shape_cast %274 : vector<9x64xf32> to vector<1x9x64xf32>
    %276 = vector.extract_strided_slice %179 {offsets = [3, 0], sizes = [1, 64], strides = [1, 1]} : vector<8x64xf32> to vector<1x64xf32>
    %277 = vector.shape_cast %276 : vector<1x64xf32> to vector<1x1x64xf32>
    %278 = vector.broadcast %277 : vector<1x1x64xf32> to vector<1x9x64xf32>
    %279 = arith.addf %275, %278 : vector<1x9x64xf32>
    %cst_47 = arith.constant 0.000000e+00 : f32
    %280 = vector.broadcast %cst_47 : f32 to vector<1x9x64xf32>
    %281 = arith.maximumf %279, %280 : vector<1x9x64xf32>
    %282 = vector.shape_cast %281 : vector<1x9x64xf32> to vector<9x64xf32>
    %cst_48 = arith.constant dense<0.000000e+00> : vector<9x32xf32>
    %283 = tpu.matmul %282, %178, %cst_48 {dimension_numbers = #tpu.dot_dimension_numbers<[1], [0], [0], [1], [0, 0, 1, 1], [], []>} : vector<9x64xf32>, vector<64x32xf32>, vector<9x32xf32> -> vector<9x32xf32>
    %284 = vector.shape_cast %283 : vector<9x32xf32> to vector<1x9x32xf32>
    %285 = vector.extract_strided_slice %179 {offsets = [4, 0], sizes = [1, 32], strides = [1, 1]} : vector<8x64xf32> to vector<1x32xf32>
    %286 = vector.shape_cast %285 : vector<1x32xf32> to vector<1x1x32xf32>
    %287 = vector.broadcast %286 : vector<1x1x32xf32> to vector<1x9x32xf32>
    %288 = arith.addf %284, %287 : vector<1x9x32xf32>
    %289 = arith.addf %272, %288 : vector<1x9x32xf32>
    %290 = vector.extract_strided_slice %179 {offsets = [5, 0], sizes = [1, 32], strides = [1, 1]} : vector<8x64xf32> to vector<1x32xf32>
    %291 = vector.extract_strided_slice %179 {offsets = [6, 0], sizes = [1, 32], strides = [1, 1]} : vector<8x64xf32> to vector<1x32xf32>
    %cst_49 = arith.constant dense<0.000000e+00> : vector<1x32xf32>
    %292 = vector.multi_reduction <add>, %289, %cst_49 [1] : vector<1x9x32xf32> to vector<1x32xf32>
    %293 = vector.shape_cast %292 : vector<1x32xf32> to vector<1x1x32xf32>
    %cst_50 = arith.constant 9.000000e+00 : f32
    %294 = vector.broadcast %cst_50 : f32 to vector<1x1x32xf32>
    %295 = arith.divf %293, %294 : vector<1x1x32xf32>
    %296 = vector.broadcast %295 : vector<1x1x32xf32> to vector<1x9x32xf32>
    %297 = arith.subf %289, %296 : vector<1x9x32xf32>
    %298 = arith.mulf %297, %297 : vector<1x9x32xf32>
    %cst_51 = arith.constant dense<0.000000e+00> : vector<1x32xf32>
    %299 = vector.multi_reduction <add>, %298, %cst_51 [1] : vector<1x9x32xf32> to vector<1x32xf32>
    %300 = vector.shape_cast %299 : vector<1x32xf32> to vector<1x1x32xf32>
    %cst_52 = arith.constant 9.000000e+00 : f32
    %301 = vector.broadcast %cst_52 : f32 to vector<1x1x32xf32>
    %302 = arith.divf %300, %301 : vector<1x1x32xf32>
    %303 = vector.broadcast %295 : vector<1x1x32xf32> to vector<1x9x32xf32>
    %304 = arith.subf %289, %303 : vector<1x9x32xf32>
    %cst_53 = arith.constant 9.99999974E-6 : f32
    %305 = vector.broadcast %cst_53 : f32 to vector<1x1x32xf32>
    %306 = arith.addf %302, %305 : vector<1x1x32xf32>
    %307 = math.rsqrt %306 : vector<1x1x32xf32>
    %308 = vector.broadcast %307 : vector<1x1x32xf32> to vector<1x9x32xf32>
    %309 = arith.mulf %304, %308 : vector<1x9x32xf32>
    %310 = vector.shape_cast %290 : vector<1x32xf32> to vector<1x1x32xf32>
    %311 = vector.broadcast %310 : vector<1x1x32xf32> to vector<1x9x32xf32>
    %312 = arith.mulf %309, %311 : vector<1x9x32xf32>
    %313 = vector.shape_cast %291 : vector<1x32xf32> to vector<1x1x32xf32>
    %314 = vector.broadcast %313 : vector<1x1x32xf32> to vector<1x9x32xf32>
    %315 = arith.addf %312, %314 : vector<1x9x32xf32>
    %c0_54 = arith.constant 0 : index
    %c0_55 = arith.constant 0 : index
    %c0_56 = arith.constant 0 : index
    %316 = vector.load %arg10[%c0_54, %c0_55, %c0_56] : memref<1x9x32xf32, #tpu.memory_space<vmem>>, vector<1x9x32xf32>
    tpu.vector_store %arg10[%c0_54, %c0_55, %c0_56], %315 {strides = array<i32>} : memref<1x9x32xf32, #tpu.memory_space<vmem>>, vector<1x9x32xf32>,
    %c0_57 = arith.constant 0 : index
    %c0_58 = arith.constant 0 : index
    %c0_59 = arith.constant 0 : index
    %317 = vector.load %arg2[%c0_57, %c0_58, %c0_59] : memref<1x8x1xi32, #tpu.memory_space<vmem>>, vector<1x8x1xi32>
    %c0_60 = arith.constant 0 : index
    %c0_61 = arith.constant 0 : index
    %c0_62 = arith.constant 0 : index
    %318 = vector.load %arg3[%c0_60, %c0_61, %c0_62] : memref<1x8x1xf32, #tpu.memory_space<vmem>>, vector<1x8x1xf32>
    %c0_63 = arith.constant 0 : index
    %c0_64 = arith.constant 0 : index
    %c0_65 = arith.constant 0 : index
    %319 = vector.load %arg4[%c0_63, %c0_64, %c0_65] : memref<1x8x9xf32, #tpu.memory_space<vmem>>, vector<1x8x9xf32>
    %c0_66 = arith.constant 0 : index
    %c0_67 = arith.constant 0 : index
    %320 = vector.load %arg8[%c0_66, %c0_67] : memref<33x96xf32, #tpu.memory_space<vmem>>, vector<33x96xf32>
    %c0_68 = arith.constant 0 : index
    %c0_69 = arith.constant 0 : index
    %321 = vector.load %arg9[%c0_68, %c0_69] : memref<68x32xf32, #tpu.memory_space<vmem>>, vector<68x32xf32>
    %322 = tpu.iota {dimensions = array<i32: 2>} : vector<1x8x9xi32>
    %323 = vector.broadcast %317 : vector<1x8x1xi32> to vector<1x8x9xi32>
    %324 = arith.cmpi eq, %322, %323 : vector<1x8x9xi32>
    %325 = arith.extui %324 : vector<1x8x9xi1> to vector<1x8x9xi32>
    %326 = arith.sitofp %325 : vector<1x8x9xi32> to vector<1x8x9xf32>
    "tpu.trace_start"() <{level = 10 : i32, message = "bpn,bnd->bpd"}> : () -> ()
    %cst_70 = arith.constant dense<0.000000e+00> : vector<1x8x32xf32>
    %327 = tpu.matmul %326, %315, %cst_70 {dimension_numbers = #tpu.dot_dimension_numbers<[2], [1], [1], [2], [0, 0, 0, 1, 1, 2], [0], [0]>} : vector<1x8x9xf32>, vector<1x9x32xf32>, vector<1x8x32xf32> -> vector<1x8x32xf32>
    "tpu.trace_stop"() : () -> ()
    %328 = vector.extract_strided_slice %320 {offsets = [0, 0], sizes = [32, 32], strides = [1, 1]} : vector<33x96xf32> to vector<32x32xf32>
    %329 = vector.extract_strided_slice %320 {offsets = [32, 0], sizes = [1, 32], strides = [1, 1]} : vector<33x96xf32> to vector<1x32xf32>
    %330 = vector.extract_strided_slice %320 {offsets = [0, 32], sizes = [32, 64], strides = [1, 1]} : vector<33x96xf32> to vector<32x64xf32>
    %331 = vector.shape_cast %327 : vector<1x8x32xf32> to vector<8x32xf32>
    %cst_71 = arith.constant dense<0.000000e+00> : vector<8x32xf32>
    %332 = tpu.matmul %331, %328, %cst_71 {dimension_numbers = #tpu.dot_dimension_numbers<[1], [0], [0], [1], [0, 0, 1, 1], [], []>} : vector<8x32xf32>, vector<32x32xf32>, vector<8x32xf32> -> vector<8x32xf32>
    %333 = vector.shape_cast %332 : vector<8x32xf32> to vector<1x8x32xf32>
    %334 = vector.shape_cast %329 : vector<1x32xf32> to vector<1x1x32xf32>
    %335 = vector.broadcast %318 : vector<1x8x1xf32> to vector<1x8x32xf32>
    %336 = vector.broadcast %334 : vector<1x1x32xf32> to vector<1x8x32xf32>
    %337 = arith.mulf %335, %336 : vector<1x8x32xf32>
    %338 = arith.addf %333, %337 : vector<1x8x32xf32>
    %339 = vector.shape_cast %315 : vector<1x9x32xf32> to vector<9x32xf32>
    %cst_72 = arith.constant dense<0.000000e+00> : vector<9x64xf32>
    %340 = tpu.matmul %339, %330, %cst_72 {dimension_numbers = #tpu.dot_dimension_numbers<[1], [0], [0], [1], [0, 0, 1, 1], [], []>} : vector<9x32xf32>, vector<32x64xf32>, vector<9x64xf32> -> vector<9x64xf32>
    %341 = vector.shape_cast %340 : vector<9x64xf32> to vector<1x9x64xf32>
    %342 = vector.extract_strided_slice %341 {offsets = [0, 0, 0], sizes = [1, 9, 32], strides = [1, 1, 1]} : vector<1x9x64xf32> to vector<1x9x32xf32>
    %343 = vector.extract_strided_slice %341 {offsets = [0, 0, 32], sizes = [1, 9, 32], strides = [1, 1, 1]} : vector<1x9x64xf32> to vector<1x9x32xf32>
    %344 = vector.extract_strided_slice %338 {offsets = [0, 0, 0], sizes = [1, 8, 8], strides = [1, 1, 1]} : vector<1x8x32xf32> to vector<1x8x8xf32>
    %345 = vector.extract_strided_slice %338 {offsets = [0, 0, 8], sizes = [1, 8, 8], strides = [1, 1, 1]} : vector<1x8x32xf32> to vector<1x8x8xf32>
    %346 = vector.extract_strided_slice %338 {offsets = [0, 0, 16], sizes = [1, 8, 8], strides = [1, 1, 1]} : vector<1x8x32xf32> to vector<1x8x8xf32>
    %347 = vector.extract_strided_slice %338 {offsets = [0, 0, 24], sizes = [1, 8, 8], strides = [1, 1, 1]} : vector<1x8x32xf32> to vector<1x8x8xf32>
    %348 = vector.shape_cast %344 : vector<1x8x8xf32> to vector<1x1x8x8xf32>
    %349 = vector.shape_cast %345 : vector<1x8x8xf32> to vector<1x1x8x8xf32>
    %350 = vector.shape_cast %346 : vector<1x8x8xf32> to vector<1x1x8x8xf32>
    %351 = vector.shape_cast %347 : vector<1x8x8xf32> to vector<1x1x8x8xf32>
    %352 = tpu.concatenate %348, %349, %350, %351 in 1 : vector<1x1x8x8xf32>, vector<1x1x8x8xf32>, vector<1x1x8x8xf32>, vector<1x1x8x8xf32> -> vector<1x4x8x8xf32>
    %353 = vector.shape_cast %352 : vector<1x4x8x8xf32> to vector<4x8x8xf32>
    %354 = vector.extract_strided_slice %342 {offsets = [0, 0, 0], sizes = [1, 9, 8], strides = [1, 1, 1]} : vector<1x9x32xf32> to vector<1x9x8xf32>
    %355 = vector.extract_strided_slice %342 {offsets = [0, 0, 8], sizes = [1, 9, 8], strides = [1, 1, 1]} : vector<1x9x32xf32> to vector<1x9x8xf32>
    %356 = vector.extract_strided_slice %342 {offsets = [0, 0, 16], sizes = [1, 9, 8], strides = [1, 1, 1]} : vector<1x9x32xf32> to vector<1x9x8xf32>
    %357 = vector.extract_strided_slice %342 {offsets = [0, 0, 24], sizes = [1, 9, 8], strides = [1, 1, 1]} : vector<1x9x32xf32> to vector<1x9x8xf32>
    %358 = vector.shape_cast %354 : vector<1x9x8xf32> to vector<1x1x9x8xf32>
    %359 = vector.shape_cast %355 : vector<1x9x8xf32> to vector<1x1x9x8xf32>
    %360 = vector.shape_cast %356 : vector<1x9x8xf32> to vector<1x1x9x8xf32>
    %361 = vector.shape_cast %357 : vector<1x9x8xf32> to vector<1x1x9x8xf32>
    %362 = tpu.concatenate %358, %359, %360, %361 in 1 : vector<1x1x9x8xf32>, vector<1x1x9x8xf32>, vector<1x1x9x8xf32>, vector<1x1x9x8xf32> -> vector<1x4x9x8xf32>
    %363 = vector.shape_cast %362 : vector<1x4x9x8xf32> to vector<4x9x8xf32>
    %364 = vector.extract_strided_slice %343 {offsets = [0, 0, 0], sizes = [1, 9, 8], strides = [1, 1, 1]} : vector<1x9x32xf32> to vector<1x9x8xf32>
    %365 = vector.extract_strided_slice %343 {offsets = [0, 0, 8], sizes = [1, 9, 8], strides = [1, 1, 1]} : vector<1x9x32xf32> to vector<1x9x8xf32>
    %366 = vector.extract_strided_slice %343 {offsets = [0, 0, 16], sizes = [1, 9, 8], strides = [1, 1, 1]} : vector<1x9x32xf32> to vector<1x9x8xf32>
    %367 = vector.extract_strided_slice %343 {offsets = [0, 0, 24], sizes = [1, 9, 8], strides = [1, 1, 1]} : vector<1x9x32xf32> to vector<1x9x8xf32>
    %368 = vector.shape_cast %364 : vector<1x9x8xf32> to vector<1x1x9x8xf32>
    %369 = vector.shape_cast %365 : vector<1x9x8xf32> to vector<1x1x9x8xf32>
    %370 = vector.shape_cast %366 : vector<1x9x8xf32> to vector<1x1x9x8xf32>
    %371 = vector.shape_cast %367 : vector<1x9x8xf32> to vector<1x1x9x8xf32>
    %372 = tpu.concatenate %368, %369, %370, %371 in 1 : vector<1x1x9x8xf32>, vector<1x1x9x8xf32>, vector<1x1x9x8xf32>, vector<1x1x9x8xf32> -> vector<1x4x9x8xf32>
    %373 = vector.shape_cast %372 : vector<1x4x9x8xf32> to vector<4x9x8xf32>
    "tpu.trace_start"() <{level = 10 : i32, message = "gte,gse->gts"}> : () -> ()
    %cst_73 = arith.constant dense<0.000000e+00> : vector<4x8x9xf32>
    %374 = tpu.matmul %353, %363, %cst_73 {dimension_numbers = #tpu.dot_dimension_numbers<[2], [2], [1], [1], [0, 0, 0, 1, 1, 1], [0], [0]>} : vector<4x8x8xf32>, vector<4x9x8xf32>, vector<4x8x9xf32> -> vector<4x8x9xf32>
    "tpu.trace_stop"() : () -> ()
    %cst_74 = arith.constant 0.353553385 : f32
    %375 = vector.broadcast %cst_74 : f32 to vector<4x8x9xf32>
    %376 = arith.mulf %374, %375 : vector<4x8x9xf32>
    %377 = vector.shape_cast %376 : vector<4x8x9xf32> to vector<1x4x8x9xf32>
    %378 = vector.shape_cast %319 : vector<1x8x9xf32> to vector<1x1x8x9xf32>
    %379 = vector.broadcast %378 : vector<1x1x8x9xf32> to vector<1x4x8x9xf32>
    %380 = arith.addf %377, %379 : vector<1x4x8x9xf32>
    %381 = vector.shape_cast %380 : vector<1x4x8x9xf32> to vector<4x8x9xf32>
    %cst_75 = arith.constant dense<0xFF800000> : vector<4x8xf32>
    %382 = vector.multi_reduction <maximumf>, %381, %cst_75 [2] : vector<4x8x9xf32> to vector<4x8xf32>
    %383 = vector.shape_cast %382 : vector<4x8xf32> to vector<4x8x1xf32>
    %384 = vector.broadcast %383 : vector<4x8x1xf32> to vector<4x8x9xf32>
    %385 = arith.subf %381, %384 : vector<4x8x9xf32>
    %386 = math.exp %385 : vector<4x8x9xf32>
    %cst_76 = arith.constant dense<0.000000e+00> : vector<4x8xf32>
    %387 = vector.multi_reduction <add>, %386, %cst_76 [2] : vector<4x8x9xf32> to vector<4x8xf32>
    %388 = vector.shape_cast %387 : vector<4x8xf32> to vector<4x8x1xf32>
    %389 = vector.broadcast %388 : vector<4x8x1xf32> to vector<4x8x9xf32>
    %390 = arith.divf %386, %389 : vector<4x8x9xf32>
    "tpu.trace_start"() <{level = 10 : i32, message = "gts,gse->gte"}> : () -> ()
    %cst_77 = arith.constant dense<0.000000e+00> : vector<4x8x8xf32>
    %391 = tpu.matmul %390, %373, %cst_77 {dimension_numbers = #tpu.dot_dimension_numbers<[2], [1], [1], [2], [0, 0, 0, 1, 1, 2], [0], [0]>} : vector<4x8x9xf32>, vector<4x9x8xf32>, vector<4x8x8xf32> -> vector<4x8x8xf32>
    "tpu.trace_stop"() : () -> ()
    %392 = vector.shape_cast %391 : vector<4x8x8xf32> to vector<1x4x8x8xf32>
    %393 = vector.extract_strided_slice %392 {offsets = [0, 0, 0, 0], sizes = [1, 1, 8, 8], strides = [1, 1, 1, 1]} : vector<1x4x8x8xf32> to vector<1x1x8x8xf32>
    %394 = vector.shape_cast %393 : vector<1x1x8x8xf32> to vector<1x8x8xf32>
    %395 = vector.extract_strided_slice %392 {offsets = [0, 1, 0, 0], sizes = [1, 1, 8, 8], strides = [1, 1, 1, 1]} : vector<1x4x8x8xf32> to vector<1x1x8x8xf32>
    %396 = vector.shape_cast %395 : vector<1x1x8x8xf32> to vector<1x8x8xf32>
    %397 = vector.extract_strided_slice %392 {offsets = [0, 2, 0, 0], sizes = [1, 1, 8, 8], strides = [1, 1, 1, 1]} : vector<1x4x8x8xf32> to vector<1x1x8x8xf32>
    %398 = vector.shape_cast %397 : vector<1x1x8x8xf32> to vector<1x8x8xf32>
    %399 = vector.extract_strided_slice %392 {offsets = [0, 3, 0, 0], sizes = [1, 1, 8, 8], strides = [1, 1, 1, 1]} : vector<1x4x8x8xf32> to vector<1x1x8x8xf32>
    %400 = vector.shape_cast %399 : vector<1x1x8x8xf32> to vector<1x8x8xf32>
    %401 = tpu.concatenate %394, %396, %398, %400 in 2 : vector<1x8x8xf32>, vector<1x8x8xf32>, vector<1x8x8xf32>, vector<1x8x8xf32> -> vector<1x8x32xf32>
    %402 = vector.extract_strided_slice %321 {offsets = [0, 0], sizes = [32, 32], strides = [1, 1]} : vector<68x32xf32> to vector<32x32xf32>
    %403 = vector.extract_strided_slice %321 {offsets = [32, 0], sizes = [32, 32], strides = [1, 1]} : vector<68x32xf32> to vector<32x32xf32>
    %404 = vector.extract_strided_slice %321 {offsets = [64, 0], sizes = [1, 32], strides = [1, 1]} : vector<68x32xf32> to vector<1x32xf32>
    %405 = vector.extract_strided_slice %321 {offsets = [65, 0], sizes = [1, 32], strides = [1, 1]} : vector<68x32xf32> to vector<1x32xf32>
    %406 = vector.extract_strided_slice %321 {offsets = [66, 0], sizes = [1, 32], strides = [1, 1]} : vector<68x32xf32> to vector<1x32xf32>
    %407 = vector.extract_strided_slice %321 {offsets = [67, 0], sizes = [1, 1], strides = [1, 1]} : vector<68x32xf32> to vector<1x1xf32>
    %408 = vector.shape_cast %401 : vector<1x8x32xf32> to vector<8x32xf32>
    %cst_78 = arith.constant dense<0.000000e+00> : vector<8x32xf32>
    %409 = tpu.matmul %408, %402, %cst_78 {dimension_numbers = #tpu.dot_dimension_numbers<[1], [0], [0], [1], [0, 0, 1, 1], [], []>} : vector<8x32xf32>, vector<32x32xf32>, vector<8x32xf32> -> vector<8x32xf32>
    %410 = vector.shape_cast %409 : vector<8x32xf32> to vector<1x8x32xf32>
    %411 = vector.shape_cast %405 : vector<1x32xf32> to vector<1x1x32xf32>
    %412 = vector.broadcast %411 : vector<1x1x32xf32> to vector<1x8x32xf32>
    %413 = arith.addf %410, %412 : vector<1x8x32xf32>
    "tpu.trace_start"() <{level = 10 : i32, message = "bpd,bnd->bpn"}> : () -> ()
    %cst_79 = arith.constant dense<0.000000e+00> : vector<1x8x9xf32>
    %414 = tpu.matmul %413, %315, %cst_79 {dimension_numbers = #tpu.dot_dimension_numbers<[2], [2], [1], [1], [0, 0, 0, 1, 1, 1], [0], [0]>} : vector<1x8x32xf32>, vector<1x9x32xf32>, vector<1x8x9xf32> -> vector<1x8x9xf32>
    "tpu.trace_stop"() : () -> ()
    %cst_80 = arith.constant 0.176776692 : f32
    %415 = vector.broadcast %cst_80 : f32 to vector<1x8x9xf32>
    %416 = arith.mulf %414, %415 : vector<1x8x9xf32>
    %417 = math.tanh %416 : vector<1x8x9xf32>
    %cst_81 = arith.constant 1.000000e+01 : f32
    %418 = vector.broadcast %cst_81 : f32 to vector<1x8x9xf32>
    %419 = arith.mulf %418, %417 : vector<1x8x9xf32>
    %420 = arith.addf %419, %319 : vector<1x8x9xf32>
    %cst_82 = arith.constant dense<0xFF800000> : vector<1x8xf32>
    %421 = vector.multi_reduction <maximumf>, %420, %cst_82 [2] : vector<1x8x9xf32> to vector<1x8xf32>
    %422 = vector.shape_cast %421 : vector<1x8xf32> to vector<1x8x1xf32>
    %423 = vector.broadcast %422 : vector<1x8x1xf32> to vector<1x8x9xf32>
    %424 = arith.subf %420, %423 : vector<1x8x9xf32>
    %425 = math.exp %424 : vector<1x8x9xf32>
    %cst_83 = arith.constant dense<0.000000e+00> : vector<1x8xf32>
    %426 = vector.multi_reduction <add>, %425, %cst_83 [2] : vector<1x8x9xf32> to vector<1x8xf32>
    %427 = vector.shape_cast %426 : vector<1x8xf32> to vector<1x8x1xf32>
    %428 = vector.broadcast %427 : vector<1x8x1xf32> to vector<1x8x9xf32>
    %429 = arith.divf %425, %428 : vector<1x8x9xf32>
    %430 = vector.shape_cast %413 : vector<1x8x32xf32> to vector<8x32xf32>
    %cst_84 = arith.constant dense<0.000000e+00> : vector<8x32xf32>
    %431 = tpu.matmul %430, %403, %cst_84 {dimension_numbers = #tpu.dot_dimension_numbers<[1], [0], [0], [1], [0, 0, 1, 1], [], []>} : vector<8x32xf32>, vector<32x32xf32>, vector<8x32xf32> -> vector<8x32xf32>
    %432 = vector.shape_cast %431 : vector<8x32xf32> to vector<1x8x32xf32>
    %433 = vector.shape_cast %406 : vector<1x32xf32> to vector<1x1x32xf32>
    %434 = vector.broadcast %433 : vector<1x1x32xf32> to vector<1x8x32xf32>
    %435 = arith.addf %432, %434 : vector<1x8x32xf32>
    %cst_85 = arith.constant 0.000000e+00 : f32
    %436 = vector.broadcast %cst_85 : f32 to vector<1x8x32xf32>
    %437 = arith.maximumf %435, %436 : vector<1x8x32xf32>
    %438 = vector.shape_cast %404 : vector<1x32xf32> to vector<1x1x32xf32>
    %439 = vector.broadcast %438 : vector<1x1x32xf32> to vector<1x8x32xf32>
    %440 = arith.mulf %437, %439 : vector<1x8x32xf32>
    %cst_86 = arith.constant dense<0.000000e+00> : vector<1x8xf32>
    %441 = vector.multi_reduction <add>, %440, %cst_86 [2] : vector<1x8x32xf32> to vector<1x8xf32>
    %442 = vector.shape_cast %441 : vector<1x8xf32> to vector<1x8x1xf32>
    %443 = vector.shape_cast %407 : vector<1x1xf32> to vector<1x1x1xf32>
    %444 = vector.broadcast %443 : vector<1x1x1xf32> to vector<1x8x1xf32>
    %445 = arith.addf %442, %444 : vector<1x8x1xf32>
    %cst_87 = arith.constant 0.000000e+00 : f32
    %446 = vector.broadcast %cst_87 : f32 to vector<1x8x118xf32>
    %447 = tpu.concatenate %429, %445, %446 in 2 : vector<1x8x9xf32>, vector<1x8x1xf32>, vector<1x8x118xf32> -> vector<1x8x128xf32>
    %c0_88 = arith.constant 0 : index
    %c0_89 = arith.constant 0 : index
    %c0_90 = arith.constant 0 : index
    %448 = vector.load %arg11[%c0_88, %c0_89, %c0_90] : memref<1x8x128xf32, #tpu.memory_space<vmem>>, vector<1x8x128xf32>
    tpu.vector_store %arg11[%c0_88, %c0_89, %c0_90], %447 {strides = array<i32>} : memref<1x8x128xf32, #tpu.memory_space<vmem>>, vector<1x8x128xf32>,
    return
  }
  func.func @transform_0(%arg0: i32) -> (i32, i32, i32) {
    %c0_i32 = arith.constant 0 : i32
    %c0_i32_0 = arith.constant 0 : i32
    %c0_i32_1 = arith.constant 0 : i32
    return %arg0, %c0_i32, %c0_i32_0 : i32, i32, i32
  }
  func.func @transform_1(%arg0: i32) -> (i32, i32, i32) {
    %c0_i32 = arith.constant 0 : i32
    %c0_i32_0 = arith.constant 0 : i32
    %c0_i32_1 = arith.constant 0 : i32
    return %arg0, %c0_i32, %c0_i32_0 : i32, i32, i32
  }
  func.func @transform_2(%arg0: i32) -> (i32, i32, i32) {
    %c0_i32 = arith.constant 0 : i32
    %c0_i32_0 = arith.constant 0 : i32
    %c0_i32_1 = arith.constant 0 : i32
    return %arg0, %c0_i32, %c0_i32_0 : i32, i32, i32
  }
  func.func @transform_3(%arg0: i32) -> (i32, i32, i32) {
    %c0_i32 = arith.constant 0 : i32
    %c0_i32_0 = arith.constant 0 : i32
    %c0_i32_1 = arith.constant 0 : i32
    return %arg0, %c0_i32, %c0_i32_0 : i32, i32, i32
  }
  func.func @transform_4(%arg0: i32) -> (i32, i32) {
    %c0_i32 = arith.constant 0 : i32
    %c0_i32_0 = arith.constant 0 : i32
    %c0_i32_1 = arith.constant 0 : i32
    return %c0_i32, %c0_i32_0 : i32, i32
  }
  func.func @transform_5(%arg0: i32) -> (i32, i32, i32) {
    %c0_i32 = arith.constant 0 : i32
    %c0_i32_0 = arith.constant 0 : i32
    %c0_i32_1 = arith.constant 0 : i32
    %c0_i32_2 = arith.constant 0 : i32
    return %c0_i32, %c0_i32_0, %c0_i32_1 : i32, i32, i32
  }
  func.func @transform_6(%arg0: i32) -> (i32, i32, i32) {
    %c0_i32 = arith.constant 0 : i32
    %c0_i32_0 = arith.constant 0 : i32
    %c0_i32_1 = arith.constant 0 : i32
    %c0_i32_2 = arith.constant 0 : i32
    return %c0_i32, %c0_i32_0, %c0_i32_1 : i32, i32, i32
  }
  func.func @transform_7(%arg0: i32) -> (i32, i32) {
    %c0_i32 = arith.constant 0 : i32
    %c0_i32_0 = arith.constant 0 : i32
    %c0_i32_1 = arith.constant 0 : i32
    return %c0_i32, %c0_i32_0 : i32, i32
  }
  func.func @transform_8(%arg0: i32) -> (i32, i32) {
    %c0_i32 = arith.constant 0 : i32
    %c0_i32_0 = arith.constant 0 : i32
    %c0_i32_1 = arith.constant 0 : i32
    return %c0_i32, %c0_i32_0 : i32, i32
  }
  func.func @transform_9(%arg0: i32) -> (i32, i32, i32) {
    %c0_i32 = arith.constant 0 : i32
    %c0_i32_0 = arith.constant 0 : i32
    %c0_i32_1 = arith.constant 0 : i32
    return %arg0, %c0_i32, %c0_i32_0 : i32, i32, i32
  }
  func.func @transform_10(%arg0: i32) -> (i32, i32, i32) {
    %c0_i32 = arith.constant 0 : i32
    %c0_i32_0 = arith.constant 0 : i32
    %c0_i32_1 = arith.constant 0 : i32
    return %arg0, %c0_i32, %c0_i32_0 : i32, i32, i32
  }
}

</mosaic_0001>

<bundles_post_ra>
// kernel: tpu_custom_call.1
= control target key start
LH: loop header
LB: loop body
LE: loop exit
PB: predicated region body
PF: predicated region fallthrough
CT: control target
= control target key end

     0   :  { %s6398_s0 = inlined_call_operand.vmem [shape: f32[2,9,3], index: 0, kind: input, shape index: {}]   ;;  %s6399_s1 = inlined_call_operand.vmem [shape: s32[2,8,1], index: 1, kind: input, shape index: {}]   ;;  %s6400_s2 = inlined_call_operand.vmem [shape: f32[2,8,1], index: 2, kind: input, shape index: {}]   ;;  %s6401_s3 = inlined_call_operand.vmem [shape: f32[2,8,9], index: 3, kind: input, shape index: {}]   ;;  %s6402_s4 = inlined_call_operand.vmem [shape: f32[4,32], index: 4, kind: input, shape index: {}]   ;;  %s6403_s5 = inlined_call_operand.vmem [shape: f32[2,32,160], index: 5, kind: input, shape index: {}]   ;;  %s6404_s6 = inlined_call_operand.vmem [shape: f32[2,104,64], index: 6, kind: input, shape index: {}]   ;;  %s6405_s7 = inlined_call_operand.vmem [shape: f32[33,96], index: 7, kind: input, shape index: {}]   ;;  %s6406_s8 = inlined_call_operand.vmem [shape: f32[68,32], index: 8, kind: input, shape index: {}]   ;;  %s6407_s9 = inlined_call_operand.vmem [shape: f32[2,9,32], index: 9, kind: output, shape index: {0}]   ;;  %s6408_s10 = inlined_call_operand.hbm [shape: f32[2,8,128], index: 10, kind: output, shape index: {1}]  }
   0x1   :  { %6428 = sst [smem:[#allocation5_spill]] %s6398_s0 }
   0x2   :  { %6429 = sst [smem:[#allocation6_spill]] %s6402_s4 }
   0x3   :  { %6430 = sst [smem:[#allocation7_spill]] %s6403_s5 }
   0x4   :  { %6431 = sst [smem:[#allocation8_spill]] %s6404_s6 }
   0x5   :  { %16 = vsyncpa [#allocation3], 0 }
   0x6   :  { %18 = vsyncpa [#allocation3 + $0x1], 0  ;;  %s5465_s13 = smov 0   ;;  %s5467_s14 = smov 0  }
   0x7   :  { %s5469_s15 = smov 0   ;;  %s5471_s16 = smov 0  }
   0x8 LB: > { %s5486_s17 = sadd.s32 4294967295, %s5392_s16   ;;  %s4533_s18 = sadd.s32 4294967294, %s5392_s16   ;;  %s5392_s16 = sphi %s5471_s16, %s6451_s16   ;;  %s5388_s15 = sphi %s5469_s15, %s6450_s15   ;;  %s5384_s14 = sphi %s5467_s14, %s6449_s14   ;;  %s5380_s13 = sphi %s5465_s13, %s6448_s13  }
   0x9   : > { %s5490_s19 = sadd.s32 1, %s5392_s16   ;;  %s266_s20 = sadd.s32 1, %s5388_s15 }
   0xa   : > { %s263_s21 = ssub.s32 %s5392_s16, %s5490_s19  ;;  %p276_p0 = scmp.ne.s32.totalorder %s5388_s15, %s5384_s14 }
   0xb   : > { %p264_p1 = scmp.eq.s32.totalorder %s263_s21, 0  ;;  %p277_p2 = scmp.eq.s32.totalorder %s5486_s17, 1 }
   0xc   : > { %p282_p3 = scmp.ne.s32.totalorder %s5384_s14, %s5380_s13  ;;  %p283_p4 = scmp.eq.s32.totalorder %s4533_s18, 1 }
   0xd   : > { %s5501_s22 = scalar_select %p264_p1, %s5388_s15, %s266_s20  }
   0xe   : > { %p5503_p5 = por %p277_p2, %p276_p0  ;;  %p5507_p6 = por %p283_p4, %p282_p3 }
   0xf   : > { %p4536_p7 = scmp.ge.s32.totalorder %s5392_s16, 1  ;;  %p345_p8 = scmp.lt.s32.totalorder %s5392_s16, 3 }
  0x11   : > { %p346_p9 = pnand %p4536_p7, %p345_p8 }
  0x12   : > { %p400_p10 = scmp.lt.s32.totalorder (!%p346_p9), %s5486_s17, 1  ;;  %s6434_s0 = sld [smem:[#allocation5_spill]] (!%p346_p9) }
  0x13   : > { %349 = sbr.rel (%p346_p9) target bundleno = 6221 (0x184d), region = 56  ;;  %s6435_s5 = sld [smem:[#allocation7_spill]] (!%p346_p9) }
  0x14   : > { %s6436_s4 = sld [smem:[#allocation6_spill]] (!%p346_p9)  ;;  %s6424_s11 = smov (!%p346_p9), 112  }
  0x15   : > { %s6426_s12 = smov (!%p346_p9), 120   ;;  %s6412_s18 = smov (!%p346_p9), 96  }
  0x16   : > { %s6414_s20 = smov (!%p346_p9), 104   ;;  %s6410_s21 = smov (!%p346_p9), 64  }
  0x17   : > { %s6437_s6 = sld [smem:[#allocation8_spill]] (!%p346_p9)  ;;  %s6418_s27 = smov (!%p346_p9), 8  }
  0x18   : > { %v5394_v0 = vmov 0   ;;  %s5515_s25 = scalar_select %p400_p10, %s5486_s17, 1  ;;  %v5395_v4 = vmov 1   ;;  %v5396_v6 = vmov 2   ;;  %v435_v9 = vlaneseq }
  0x19   : > { %5233 = vset.pattern.permute.xlu1 %v5394_v0  ;;  %5231 = vset.pattern.permute.xlu0 %v5394_v0  ;;  %v5526_v3 = vld [vmem:[%s6435_s5 + $0x30] sm:$0xff]  ;;  %v5532_v5 = vld [vmem:[%s6435_s5 + $0x20] sm:$0xff]  ;;  %vm500_vm0 = vcmask 261120   ;;  %vm600_vm1 = vcmask 64512   ;;  %vm957_vm2 = vcmask 65536   ;;  %vm953_vm3 = vcmask 72704  }
  0x1a   : > { %s6409_s26 = sshll.u32 %s5515_s25, 4  ;;  %4847 = vmatprep.subr.mxu0 %v5526_v3  ;;  %v5539_v7 = vld [vmem:[%s6435_s5 + $0x10] sm:$0xff]  ;;  %v5545_v8 = vld [vmem:[%s6435_s5] sm:$0xff]  ;;  %v5552_v10 = vshrl.u32 %v435_v9, 7  ;;  %vm1054_vm4 = vcmask 1040384   ;;  %s6416_s28 = smov 16  }
  0x1b   : > { %s404_s29 = scalar_lea.vmem %s6434_s0, %s6409_s26  ;;  %4848 = vmatpush3.msra.mxu0 %v5526_v3  ;;  %v424_v15 = vld [vmem:[%s6436_s4] sm:$0xf]  ;;  %s6422_s26 = smov 24   ;;  %vm1422_vm5 = vcmask 130048   ;;  %vm1425_vm6 = vcmask 195584   ;;  %vm1518_vm7 = vcmask 253952  }
  0x1c   : > { %v423_v1 = vld [vmem:[%s404_s29 + $0x8] sm:$0x1]  ;;  %v422_v2 = vld [vmem:[%s404_s29] sm:$0xff]  ;;  %4849 = vmatprep.subr.mxu0 %v5532_v5  ;;  %v5555_v11 = vsub.s32 1, %v5552_v10  ;;  %v5558_v14 = vsub.s32 0, %v5552_v10  ;;  %v5565_v17 = vsub.s32 2, %v5552_v10 }
  0x1d   : > { %432 = vperm.xlu1 %5233, %v423_v1   ;;  %427 = vperm.xlu0 %5231, %v422_v2   ;;  %v5569_v21 = vsub.s32 3, %v5552_v10  ;;  %vm1680_vm8 = vcmask 523264   ;;  %s6440_s29 = smov 64   ;;  %s6441_s30 = smov 8   ;;  %vm5407_vm9 = vmmov 0   ;;  %vm4388_vm11 = vcmask 80896  }
  0x1e   : > { %4850 = vmatpush3.msra.mxu0 %v5532_v5  ;;  %v452_v16 = vrot.slane %v424_v15, %v5555_v11  ;;  %v438_v18 = vrot.slane %v424_v15, %v5558_v14  ;;  %v468_v24 = vrot.slane %v424_v15, %v5565_v17  ;;  %s6445_s0 = sshll.u32 %s5515_s25, 4 }
  0x1f   : > { %4851 = vmatprep.subr.mxu0 %v5539_v7  ;;  %v476_v29 = vrot.slane %v424_v15, %v5569_v21 }
  0x20   : > { %4852 = vmatpush3.msra.mxu0 %v5539_v7 }
  0x21   : > { %5234 = vset.pattern.permute.xlu1 %v5395_v4  ;;  %5232 = vset.pattern.permute.xlu0 %v5395_v4 }
  0x22   : > { %446 = vperm.xlu1 %5234, %v423_v1   ;;  %442 = vperm.xlu0 %5232, %v422_v2  }
  0x23   : > { %4853 = vmatprep.subr.mxu0 %v5545_v8 }
  0x24   : > { %4854 = vmatpush3.msra.mxu0 %v5545_v8 }
  0x26   : > { %5235 = vset.pattern.permute.xlu1 %v5396_v6  ;;  %5236 = vset.pattern.permute.xlu0 %v5396_v6 }
  0x27   : > { %458 = vperm.xlu1 %5235, %v422_v2   ;;  %462 = vperm.xlu0 %5236, %v423_v1  }
  0x2b   : > { %5237 = vset.pattern.permute.xlu0 %v5394_v0 }
  0x98   : > { %v433_v12 = vpop.permute.xlu1 %432  ;;  %v428_v13 = vpop.permute.xlu0 %427 }
  0x99   : > { %v440_v25 = vmul.f32 %v438_v18, %v433_v12  ;;  %v439_v26 = vmul.f32 %v438_v18, %v428_v13 }
  0x9d   : > { %v447_v19 = vpop.permute.xlu1 %446  ;;  %v443_v20 = vpop.permute.xlu0 %442 }
  0x9e   : > { %v454_v22 = vmul.f32 %v452_v16, %v447_v19  ;;  %v453_v23 = vmul.f32 %v452_v16, %v443_v20 }
  0xa0   : > { %v456_v30 = vadd.f32 %v454_v22, %v440_v25  ;;  %v455_v31 = vadd.f32 %v453_v23, %v439_v26 }
  0xa2   : > { %v459_v27 = vpop.permute.xlu1 %458  ;;  %v463_v28 = vpop.permute.xlu0 %462 }
  0xa3   : > { %v469_v32 = vmul.f32 %v468_v24, %v459_v27  ;;  %v470_v33 = vmul.f32 %v468_v24, %v463_v28 }
  0xa5   : > { %v472_v34 = vadd.f32 %v470_v33, %v456_v30  ;;  %v471_v35 = vadd.f32 %v469_v32, %v455_v31 }
  0xa7   : > { %v5573_v36 = vadd.f32 %v476_v29, %v471_v35  ;;  %v5575_v37 = vadd.f32 %v476_v29, %v472_v34 }
  0xa9   : > { %4855 = vmatprep.mubr.msk.f32.mxu0 %vm500_vm0, %v5573_v36 }
  0xaa   : > { %4856 = vmatmul.mubr.msk.f32.vlgmr.msra.gmra.mxu0 %vm500_vm0, %v5575_v37 }
 0x16a   : > { %v5581_v38 = vpop.f32.mrf.mxu0 }
 0x16b   : > { %590 = vrot.lane.b32.xlu0 %v5581_v38, %s6424_s11  ;;  %586 = vrot.lane.b32.xlu1 %v5581_v38, %s6426_s12 }
 0x16c   : > { %v5587_v39 = vpop.f32.mrf.mxu0 }
 0x16d   : > { %4862 = vmatprep.mubr.msk.f32.mxu1 %vm600_vm1, %v5587_v39 }
 0x16f   : > { %588 = vrot.lane.b32.xlu0 %v5587_v39, %s6424_s11  ;;  %584 = vrot.lane.b32.xlu1 %v5587_v39, %s6426_s12 }
 0x173   : > { %598 = vrot.lane.b32.xlu0 %v5581_v38, %s6412_s18  ;;  %594 = vrot.lane.b32.xlu1 %v5581_v38, %s6414_s20 }
 0x177   : > { %596 = vrot.lane.b32.xlu0 %v5587_v39, %s6412_s18  ;;  %592 = vrot.lane.b32.xlu1 %v5587_v39, %s6414_s20  ;;  %s6443_s20 = smov 24  }
 0x1dd   : > { %v5603_v40 = vpop.permute.xlu0 %590  ;;  %v5605_v41 = vpop.permute.xlu1 %586 }
 0x1de   : > { %773 = vrot.lane.b32.xlu0 %v5603_v40, %s6412_s18  ;;  %686 = vrot.lane.b32.xlu1 %v5605_v41, %s6412_s18 }
 0x1e1   : > { %v5611_v42 = vpop.permute.xlu0 %588  ;;  %v5613_v43 = vpop.permute.xlu1 %584 }
 0x1e2   : > { %771 = vrot.lane.b32.xlu0 %v5611_v42, %s6412_s18  ;;  %4869 = vmatprep.mubr.msk.f32.mxu0 %vm600_vm1, %v5613_v43 }
 0x1e3   : > { %684 = vrot.lane.b32.xlu1 %v5613_v43, %s6412_s18 }
 0x1e5   : > { %v599_v44 = vpop.permute.xlu0 %598  ;;  %v5621_v45 = vpop.permute.xlu1 %594 }
 0x1e6   : > { %4858 = vmatprep.subr.msk.mxu1 %vm600_vm1, %v599_v44 }
 0x1e7   : > { %860 = vrot.lane.b32.xlu1 %v5621_v45, %s6412_s18  ;;  %4859 = vmatpush3.xpose.msk.msra.mxu1 %vm600_vm1, %v599_v44 }
 0x1e9   : > { %v597_v46 = vpop.permute.xlu0 %596  ;;  %v5627_v47 = vpop.permute.xlu1 %592 }
 0x1ea   : > { %4860 = vmatprep.subr.msk.mxu1 %vm600_vm1, %v597_v46 }
 0x1eb   : > { %858 = vrot.lane.b32.xlu1 %v5627_v47, %s6412_s18  ;;  %4861 = vmatpush3.xpose.msk.msra.mxu1 %vm600_vm1, %v597_v46  ;;  %s6442_s18 = smov 16  }
 0x1ee   : > { %4863 = vmatmul.mubr.msk.f32.vlgmr.msra.gmra.mxu1 %vm600_vm1, %v5581_v38 }
 0x1ef   : > { %4876 = vmatprep.mubr.msk.f32.mxu1 %vm600_vm1, %v5611_v42 }
 0x250   : > { %v774_v48 = vpop.permute.xlu0 %773  ;;  %v687_v49 = vpop.permute.xlu1 %686 }
 0x251   : > { %4865 = vmatprep.subr.msk.mxu0 %vm600_vm1, %v687_v49  ;;  %4872 = vmatprep.subr.msk.mxu1 %vm600_vm1, %v774_v48 }
 0x252   : > { %4866 = vmatpush3.xpose.msk.msra.mxu0 %vm600_vm1, %v687_v49  ;;  %4873 = vmatpush3.xpose.msk.msra.mxu1 %vm600_vm1, %v774_v48 }
 0x254   : > { %v772_v50 = vpop.permute.xlu0 %771 }
 0x255   : > { %v685_v51 = vpop.permute.xlu1 %684  ;;  %4874 = vmatprep.subr.msk.mxu1 %vm600_vm1, %v772_v50 }
 0x256   : > { %4867 = vmatprep.subr.msk.mxu0 %vm600_vm1, %v685_v51  ;;  %4875 = vmatpush3.xpose.msk.msra.mxu1 %vm600_vm1, %v772_v50 }
 0x257   : > { %4868 = vmatpush3.xpose.msk.msra.mxu0 %vm600_vm1, %v685_v51 }
 0x259   : > { %v861_v52 = vpop.permute.xlu1 %860  ;;  %4877 = vmatmul.mubr.msk.f32.vlgmr.msra.gmra.mxu1 %vm600_vm1, %v5603_v40 }
 0x25a   : > { %4870 = vmatmul.mubr.msk.f32.vlgmr.msra.gmra.mxu0 %vm600_vm1, %v5605_v41  ;;  %4879 = vmatprep.subr.msk.mxu0 %vm600_vm1, %v861_v52 }
 0x25b   : > { %4880 = vmatpush3.xpose.msk.msra.mxu0 %vm600_vm1, %v861_v52  ;;  %4883 = vmatprep.mubr.msk.f32.mxu0 %vm600_vm1, %v5627_v47 }
 0x25d   : > { %v859_v53 = vpop.permute.xlu1 %858 }
 0x25e   : > { %4881 = vmatprep.subr.msk.mxu0 %vm600_vm1, %v859_v53 }
 0x25f   : > { %4882 = vmatpush3.xpose.msk.msra.mxu0 %vm600_vm1, %v859_v53 }
 0x262   : > { %4884 = vmatmul.mubr.msk.f32.vlgmr.msra.gmra.mxu0 %vm600_vm1, %v5621_v45 }
 0x2ae   : > { %v4864_v54 = vpop.f32.mrf.mxu1 }
 0x2af   : > { %v946_v55 = vmul.f32 0.35355338, %v4864_v54 }
 0x2b0   : > { %v675_v56 = vpop.f32.mrf.mxu1 }
 0x2b1   : > { %v945_v57 = vmul.f32 0.35355338, %v675_v56  ;;  %v958_v58 = vsel %vm957_vm2, %v946_v55, -inf }
 0x2b2   : > { %959 = vmax.xlane.f32.xlu1 %v958_v58 }
 0x2b3   : > { %v954_v59 = vsel %vm953_vm3, %v945_v57, -inf }
 0x2b4   : > { %955 = vmax.xlane.f32.xlu0 %v954_v59 }
 0x319   : > { %v4878_v60 = vpop.f32.mrf.mxu1 }
 0x31a   : > { %v4871_v61 = vpop.f32.mrf.mxu0  ;;  %v950_v12 = vmul.f32 0.35355338, %v4878_v60 }
 0x31b   : > { %v948_v62 = vmul.f32 0.35355338, %v4871_v61  ;;  %v849_v63 = vpop.f32.mrf.mxu1 }
 0x31c   : > { %v762_v0 = vpop.f32.mrf.mxu0  ;;  %v949_v1 = vmul.f32 0.35355338, %v849_v63  ;;  %v970_v20 = vsel %vm957_vm2, %v950_v12, -inf }
 0x31d   : > { %v947_v2 = vmul.f32 0.35355338, %v762_v0  ;;  %v964_v4 = vsel %vm957_vm2, %v948_v62, -inf }
 0x31e   : > { %965 = vmax.xlane.f32.xlu0 %v964_v4  ;;  %v967_v6 = vsel %vm953_vm3, %v949_v1, -inf }
 0x31f   : > { %968 = vmax.xlane.f32.xlu1 %v967_v6  ;;  %v961_v13 = vsel %vm953_vm3, %v947_v2, -inf }
 0x322   : > { %v4885_v15 = vpop.f32.mrf.mxu0  ;;  %962 = vmax.xlane.f32.xlu0 %v961_v13 }
 0x323   : > { %v952_v18 = vmul.f32 0.35355338, %v4885_v15 }
 0x324   : > { %v936_v16 = vpop.f32.mrf.mxu0 }
 0x325   : > { %v951_v19 = vmul.f32 0.35355338, %v936_v16  ;;  %v976_v23 = vsel %vm957_vm2, %v952_v18, -inf }
 0x326   : > { %971 = vmax.xlane.f32.xlu0 %v970_v20 }
 0x327   : > { %v973_v22 = vsel %vm953_vm3, %v951_v19, -inf }
 0x328   : > { %974 = vmax.xlane.f32.xlu1 %v973_v22 }
 0x32a   : > { %977 = vmax.xlane.f32.xlu0 %v976_v23 }
 0x339   : > { %1045 = vrot.lane.b32.xlu1 %v5581_v38, %s6410_s21 }
 0x33b   : > { %v960_v24 = vpop.xlane.xlu1 %959 }
 0x33c   : > { %v980_v25 = vsub.f32 %v946_v55, %v960_v24 }
 0x33d   : > { %1134 = vrot.lane.b32.xlu1 %v5605_v41, %s6410_s21  ;;  %v956_v26 = vpop.xlane.xlu0 %955 }
 0x33e   : > { %v989_v27 = vmul.f32 1.442695, %v980_v25  ;;  %v979_v28 = vsub.f32 %v945_v57, %v956_v26 }
 0x340   : > { %1043 = vrot.lane.b32.xlu0 %v5587_v39, %s6410_s21  ;;  %5238 = vpow2.f32 %v989_v27  ;;  %v987_v29 = vmul.f32 1.442695, %v979_v28 }
 0x341   : > { %1132 = vrot.lane.b32.xlu1 %v5613_v43, %s6410_s21 }
 0x342   : > { %5240 = vpow2.f32 %v987_v29 }
 0x344   : > { %1222 = vrot.lane.b32.xlu0 %v5603_v40, %s6410_s21 }
 0x345   : > { %1310 = vrot.lane.b32.xlu1 %v5621_v45, %s6410_s21 }
 0x34d   : > { %v5677_v30 = vpop.eup %5238 }
 0x34e   : > { %v1006_v31 = vsel %vm957_vm2, %v5677_v30, 0.0 }
 0x34f   : > { %v5681_v32 = vpop.eup %5240 }
 0x350   : > { %v1003_v33 = vsel %vm953_vm3, %v5681_v32, 0.0 }
 0x363   : > { %1007 = vadd.xlane.f32.xlu0 %v1006_v31 }
 0x369   : > { %1004 = vadd.xlane.f32.xlu1 %v1003_v33 }
 0x3a7   : > { %v966_v34 = vpop.xlane.xlu0 %965 }
 0x3a8   : > { %v982_v35 = vsub.f32 %v948_v62, %v966_v34  ;;  %v969_v38 = vpop.xlane.xlu1 %968 }
 0x3a9   : > { %v983_v40 = vsub.f32 %v949_v1, %v969_v38 }
 0x3aa   : > { %v993_v39 = vmul.f32 1.442695, %v982_v35 }
 0x3ab   : > { %v963_v41 = vpop.xlane.xlu0 %962  ;;  %v995_v44 = vmul.f32 1.442695, %v983_v40 }
 0x3ac   : > { %5242 = vpow2.f32 %v993_v39  ;;  %v981_v43 = vsub.f32 %v947_v2, %v963_v41 }
 0x3ae   : > { %v991_v45 = vmul.f32 1.442695, %v981_v43 }
 0x3af   : > { %v972_v46 = vpop.xlane.xlu0 %971 }
 0x3b0   : > { %5244 = vpow2.f32 %v991_v45  ;;  %v984_v48 = vsub.f32 %v950_v12, %v972_v46 }
 0x3b1   : > { %v975_v49 = vpop.xlane.xlu1 %974  ;;  %5246 = vpow2.f32 %v995_v44 }
 0x3b2   : > { %v997_v50 = vmul.f32 1.442695, %v984_v48  ;;  %v985_v51 = vsub.f32 %v951_v19, %v975_v49  ;;  %v490_v48 = vld [vmem:[%s6437_s6 + $0x18] sm:$0xff] }
 0x3b3   : > { %v978_v52 = vpop.xlane.xlu0 %977 }
 0x3b4   : > { %5248 = vpow2.f32 %v997_v50  ;;  %v999_v53 = vmul.f32 1.442695, %v985_v51  ;;  %v986_v54 = vsub.f32 %v952_v18, %v978_v52  ;;  %v489_v50 = vld [vmem:[%s6437_s6 + $0x10] sm:$0xff]  ;;  %v488_v51 = vld [vmem:[%s6437_s6 + $0x8] sm:$0xff] }
 0x3b5   : > { %v1046_v55 = vpop.permute.xlu1 %1045 }
 0x3b6   : > { %5250 = vpow2.f32 %v999_v53  ;;  %v1001_v56 = vmul.f32 1.442695, %v986_v54  ;;  %4886 = vmatprep.subr.msk.mxu1 %vm1054_vm4, %v1046_v55  ;;  %v487_v53 = vld [vmem:[%s6437_s6] sm:$0xff] }
 0x3b7   : > { %v1044_v57 = vpop.permute.xlu0 %1043  ;;  %4887 = vmatpush3.msk.msra.mxu1 %vm1054_vm4, %v1046_v55 }
 0x3b8   : > { %5252 = vpow2.f32 %v1001_v56  ;;  %4888 = vmatprep.subr.mxu1 %v1044_v57 }
 0x3b9   : > { %v5243_v58 = vpop.eup %5242  ;;  %4889 = vmatpush3.msra.mxu1 %v1044_v57  ;;  %v1135_v59 = vpop.permute.xlu1 %1134 }
 0x3ba   : > { %4893 = vmatprep.subr.msk.mxu1 %vm1054_vm4, %v1135_v59  ;;  %v1012_v60 = vsel %vm957_vm2, %v5243_v58, 0.0 }
 0x3bb   : > { %1013 = vadd.xlane.f32.xlu0 %v1012_v60  ;;  %v1223_v61 = vpop.permute.xlu0 %1222  ;;  %v486_v60 = vld [vmem:[%s6435_s5 + $0x38] sm:$0xff] }
 0x3bc   : > { %4900 = vmatprep.subr.msk.mxu0 %vm1054_vm4, %v1223_v61 }
 0x3bd   : > { %v5245_v62 = vpop.eup %5244  ;;  %4901 = vmatpush3.msk.msra.mxu0 %vm1054_vm4, %v1223_v61  ;;  %v1133_v16 = vpop.permute.xlu1 %1132  ;;  %v484_v61 = vld [vmem:[%s6435_s5 + $0x28] sm:$0xff] }
 0x3be   : > { %v1009_v63 = vsel %vm953_vm3, %v5245_v62, 0.0  ;;  %v5247_v0 = vpop.eup %5246 }
 0x3bf   : > { %1010 = vadd.xlane.f32.xlu1 %v1009_v63  ;;  %v1015_v4 = vsel %vm953_vm3, %v5247_v0, 0.0  ;;  %v480_v63 = vld [vmem:[%s6435_s5 + $0x8] sm:$0xff] }
 0x3c1   : > { %v5249_v1 = vpop.eup %5248  ;;  %v1311_v18 = vpop.permute.xlu1 %1310 }
 0x3c2   : > { %v1018_v2 = vsel %vm957_vm2, %v5249_v1, 0.0 }
 0x3c3   : > { %v5251_v6 = vpop.eup %5250  ;;  %1019 = vadd.xlane.f32.xlu0 %v1018_v2  ;;  %1016 = vadd.xlane.f32.xlu1 %v1015_v4 }
 0x3c4   : > { %v1021_v15 = vsel %vm953_vm3, %v5251_v6, 0.0 }
 0x3c5   : > { %v5253_v12 = vpop.eup %5252 }
 0x3c6   : > { %v1024_v13 = vsel %vm957_vm2, %v5253_v12, 0.0 }
 0x3c7   : > { %1025 = vadd.xlane.f32.xlu0 %v1024_v13  ;;  %1022 = vadd.xlane.f32.xlu1 %v1021_v15 }
 0x3d8   : > { %1308 = vrot.lane.b32.xlu1 %v5627_v47, %s6410_s21 }
 0x3dd   : > { %1220 = vrot.lane.b32.xlu0 %v5611_v42, %s6410_s21  ;;  %s6420_s21 = smov 32  }
 0x3ec   : > { %v1008_v19 = vpop.xlane.xlu0 %1007 }
 0x3ed   : > { %5254 = vrcp.f32 %v1008_v19 }
 0x3f2   : > { %v1005_v20 = vpop.xlane.xlu1 %1004 }
 0x3f3   : > { %5256 = vrcp.f32 %v1005_v20 }
 0x3fa   : > { %v5255_v22 = vpop.eup %5254 }
 0x3fb   : > { %v1030_v25 = vmul.f32 %v5255_v22, %v5677_v30 }
 0x400   : > { %v5257_v23 = vpop.eup %5256 }
 0x401   : > { %v1028_v24 = vmul.f32 %v5257_v23, %v5681_v32 }
 0x403   : > { %4890 = vmatprep.mubr.msk.f32.mxu1 %vm953_vm3, %v1028_v24 }
 0x404   : > { %4891 = vmatmul.mubr.msk.f32.vlgmr.msra.gmra.mxu1 %vm953_vm3, %v1030_v25 }
 0x405   : > { %4894 = vmatpush3.msk.msra.mxu1 %vm1054_vm4, %v1135_v59 }
 0x406   : > { %4895 = vmatprep.subr.mxu1 %v1133_v16 }
 0x407   : > { %4896 = vmatpush3.msra.mxu1 %v1133_v16 }
 0x408   : > { %4907 = vmatprep.subr.msk.mxu1 %vm1054_vm4, %v1311_v18 }
 0x444   : > { %v1014_v42 = vpop.xlane.xlu0 %1013 }
 0x445   : > { %5258 = vrcp.f32 %v1014_v42 }
 0x448   : > { %v1011_v47 = vpop.xlane.xlu1 %1010 }
 0x449   : > { %5260 = vrcp.f32 %v1011_v47 }
 0x44c   : > { %v1020_v26 = vpop.xlane.xlu0 %1019  ;;  %v1017_v27 = vpop.xlane.xlu1 %1016 }
 0x44d   : > { %5262 = vrcp.f32 %v1020_v26 }
 0x44e   : > { %5264 = vrcp.f32 %v1017_v27 }
 0x450   : > { %v1026_v28 = vpop.xlane.xlu0 %1025  ;;  %v1023_v29 = vpop.xlane.xlu1 %1022 }
 0x451   : > { %5266 = vrcp.f32 %v1026_v28  ;;  %v498_v28 = vld [vmem:[%s6437_s6 + $0x58] sm:$0xff] }
 0x452   : > { %5268 = vrcp.f32 %v1023_v29  ;;  %v5259_v31 = vpop.eup %5258  ;;  %v497_v29 = vld [vmem:[%s6437_s6 + $0x50] sm:$0xff] }
 0x453   : > { %v1034_v34 = vmul.f32 %v5259_v31, %v5243_v58  ;;  %v495_v31 = vld [vmem:[%s6437_s6 + $0x40] sm:$0xff] }
 0x454   : > { %v1221_v30 = vpop.permute.xlu0 %1220  ;;  %v1309_v39 = vpop.permute.xlu1 %1308 }
 0x455   : > { %4902 = vmatprep.subr.mxu0 %v1221_v30 }
 0x456   : > { %v5261_v32 = vpop.eup %5260  ;;  %4903 = vmatpush3.msra.mxu0 %v1221_v30  ;;  %v496_v30 = vld [vmem:[%s6437_s6 + $0x48] sm:$0xff] }
 0x457   : > { %v1032_v33 = vmul.f32 %v5261_v32, %v5245_v62  ;;  %4914 = vmatprep.subr.mxu0 %v490_v48  ;;  %v482_v62 = vld [vmem:[%s6435_s5 + $0x18] sm:$0xff]  ;;  %v5782_v32 = vld [vmem:[%s6437_s6 + $0x60] sm:$0xff] }
 0x459   : > { %4897 = vmatprep.mubr.msk.f32.mxu1 %vm953_vm3, %v1032_v33  ;;  %v1512_v33 = vrot.slane %v5782_v32, %v5558_v14 }
 0x45a   : > { %v5263_v35 = vpop.eup %5262  ;;  %4898 = vmatmul.mubr.msk.f32.vlgmr.msra.gmra.mxu1 %vm953_vm3, %v1034_v34 }
 0x45b   : > { %v5265_v38 = vpop.eup %5264  ;;  %4908 = vmatpush3.msk.msra.mxu1 %vm1054_vm4, %v1311_v18  ;;  %v1038_v40 = vmul.f32 %v5263_v35, %v5249_v1 }
 0x45c   : > { %4909 = vmatprep.subr.mxu1 %v1309_v39  ;;  %v1036_v41 = vmul.f32 %v5265_v38, %v5247_v0 }
 0x45d   : > { %4910 = vmatpush3.msra.mxu1 %v1309_v39 }
 0x45e   : > { %v5267_v43 = vpop.eup %5266  ;;  %4904 = vmatprep.mubr.msk.f32.mxu0 %vm953_vm3, %v1036_v41 }
 0x45f   : > { %v5269_v44 = vpop.eup %5268  ;;  %4905 = vmatmul.mubr.msk.f32.vlgmr.msra.gmra.mxu0 %vm953_vm3, %v1038_v40  ;;  %v1042_v45 = vmul.f32 %v5267_v43, %v5253_v12 }
 0x460   : > { %v1040_v46 = vmul.f32 %v5269_v44, %v5251_v6  ;;  %4915 = vmatpush3.msra.mxu0 %v490_v48 }
 0x461   : > { %4916 = vmatprep.subr.mxu0 %v489_v50 }
 0x462   : > { %4911 = vmatprep.mubr.msk.f32.mxu1 %vm953_vm3, %v1040_v46  ;;  %4917 = vmatpush3.msra.mxu0 %v489_v50 }
 0x463   : > { %4912 = vmatmul.mubr.msk.f32.vlgmr.msra.gmra.mxu1 %vm953_vm3, %v1042_v45  ;;  %4918 = vmatprep.subr.mxu0 %v488_v51 }
 0x464   : > { %4919 = vmatpush3.msra.mxu0 %v488_v51 }
 0x465   : > { %4920 = vmatprep.subr.mxu0 %v487_v53 }
 0x466   : > { %4921 = vmatpush3.msra.mxu0 %v487_v53 }
 0x467   : > { %4936 = vmatprep.subr.mxu0 %v498_v28 }
 0x4c4   : > { %v4892_v49 = vpop.f32.mrf.mxu1 }
 0x4c6   : > { %v1123_v52 = vpop.f32.mrf.mxu1 }
 0x51a   : > { %v4899_v54 = vpop.f32.mrf.mxu1 }
 0x51b   : > { %1400 = vrot.lane.b32.xlu1 %v4899_v54, %s6418_s27 }
 0x51c   : > { %v1211_v55 = vpop.f32.mrf.mxu1 }
 0x51d   : > { %1398 = vrot.lane.b32.xlu0 %v1211_v55, %s6418_s27  ;;  %s6444_s27 = smov 32  }
 0x51f   : > { %v4906_v56 = vpop.f32.mrf.mxu0 }
 0x520   : > { %1408 = vrot.lane.b32.xlu1 %v4906_v56, %s6416_s28 }
 0x521   : > { %v1299_v57 = vpop.f32.mrf.mxu0 }
 0x522   : > { %1406 = vrot.lane.b32.xlu0 %v1299_v57, %s6416_s28  ;;  %s4671_s28 = sshll.u32 %s5486_s17, 7  ;;  %s5409_s17 = smov [#allocation2]  }
 0x523   : > { %v4913_v58 = vpop.f32.mrf.mxu1 }
 0x524   : > { %1416 = vrot.lane.b32.xlu1 %v4913_v58, %s6422_s26 }
 0x525   : > { %v1387_v59 = vpop.f32.mrf.mxu1 }
 0x526   : > { %1414 = vrot.lane.b32.xlu0 %v1387_v59, %s6422_s26  ;;  %s6438_s26 = smov 104  }
 0x528   : > { %1581 = vrot.lane.b32.xlu1 %v486_v60, %s6420_s21 }
 0x52a   : > { %1579 = vrot.lane.b32.xlu0 %v5526_v3, %s6420_s21 }
 0x52c   : > { %1577 = vrot.lane.b32.xlu1 %v484_v61, %s6420_s21 }
 0x52e   : > { %1575 = vrot.lane.b32.xlu0 %v5532_v5, %s6420_s21 }
 0x530   : > { %1573 = vrot.lane.b32.xlu1 %v482_v62, %s6420_s21 }
 0x532   : > { %1571 = vrot.lane.b32.xlu0 %v5539_v7, %s6420_s21 }
 0x534   : > { %1569 = vrot.lane.b32.xlu1 %v480_v63, %s6420_s21 }
 0x536   : > { %1567 = vrot.lane.b32.xlu0 %v5545_v8, %s6420_s21  ;;  %s6439_s21 = smov 96  }
 0x58d   : > { %v1401_v3 = vpop.permute.xlu1 %1400 }
 0x58e   : > { %v1421_v6 = vsel %vm600_vm1, %v4892_v49, %v1401_v3 }
 0x58f   : > { %v1399_v0 = vpop.permute.xlu0 %1398 }
 0x590   : > { %v1420_v5 = vsel %vm600_vm1, %v1123_v52, %v1399_v0 }
 0x592   : > { %v1409_v1 = vpop.permute.xlu1 %1408 }
 0x593   : > { %v1424_v7 = vsel %vm1422_vm5, %v1421_v6, %v1409_v1 }
 0x594   : > { %v1407_v2 = vpop.permute.xlu0 %1406 }
 0x595   : > { %v1423_v12 = vsel %vm1422_vm5, %v1420_v5, %v1407_v2  ;;  %v1550_v2 = vrot.slane %v5782_v32, %v5555_v11 }
 0x596   : > { %v1417_v4 = vpop.permute.xlu1 %1416 }
 0x597   : > { %v1427_v8 = vsel %vm1425_vm6, %v1424_v7, %v1417_v4 }
 0x598   : > { %v1415_v13 = vpop.permute.xlu0 %1414 }
 0x599   : > { %v1426_v15 = vsel %vm1425_vm6, %v1423_v12, %v1415_v13  ;;  %v1556_v12 = vrot.slane %v5782_v32, %v5565_v17 }
 0x59a   : > { %4922 = vmatprep.mubr.msk.f32.mxu0 %vm500_vm0, %v1426_v15  ;;  %v1582_v18 = vpop.permute.xlu1 %1581 }
 0x59b   : > { %4923 = vmatmul.mubr.msk.f32.vlgmr.msra.gmra.mxu0 %vm500_vm0, %v1427_v8 }
 0x59c   : > { %v1580_v16 = vpop.permute.xlu0 %1579  ;;  %4937 = vmatpush3.msra.mxu0 %v498_v28  ;;  %v5824_v28 = vld [vmem:[%s6435_s5 + $0x60] sm:$0xff] }
 0x59d   : > { %v1586_v19 = vsel %vm500_vm0, %v1580_v16, %v1582_v18  ;;  %4938 = vmatprep.subr.mxu0 %v497_v29  ;;  %v494_v16 = vld [vmem:[%s6437_s6 + $0x38] sm:$0xff]  ;;  %v493_v18 = vld [vmem:[%s6437_s6 + $0x30] sm:$0xff] }
 0x59e   : > { %4925 = vmatprep.subr.mxu1 %v1586_v19  ;;  %v1578_v22 = vpop.permute.xlu1 %1577  ;;  %4939 = vmatpush3.msra.mxu0 %v497_v29  ;;  %v5831_v29 = vld [vmem:[%s6435_s5 + $0x50] sm:$0xff] }
 0x59f   : > { %4926 = vmatpush3.msra.mxu1 %v1586_v19  ;;  %4940 = vmatprep.subr.mxu0 %v496_v30  ;;  %v492_v19 = vld [vmem:[%s6437_s6 + $0x28] sm:$0xff] }
 0x5a0   : > { %v1576_v20 = vpop.permute.xlu0 %1575  ;;  %4941 = vmatpush3.msra.mxu0 %v496_v30  ;;  %v5836_v30 = vld [vmem:[%s6435_s5 + $0x40] sm:$0xff] }
 0x5a1   : > { %v1585_v23 = vsel %vm500_vm0, %v1576_v20, %v1578_v22  ;;  %4942 = vmatprep.subr.mxu0 %v495_v31  ;;  %v491_v20 = vld [vmem:[%s6437_s6 + $0x20] sm:$0xff]  ;;  %v1675_v22 = vrot.slane %v5782_v32, %v5569_v21 }
 0x5a2   : > { %4927 = vmatprep.subr.mxu1 %v1585_v23  ;;  %v1574_v25 = vpop.permute.xlu1 %1573  ;;  %4943 = vmatpush3.msra.mxu0 %v495_v31  ;;  %v1764_v31 = vsub.s32 4, %v5552_v10 }
 0x5a3   : > { %4928 = vmatpush3.msra.mxu1 %v1585_v23  ;;  %4944 = vmatprep.subr.mxu0 %v494_v16 }
 0x5a4   : > { %v1572_v24 = vpop.permute.xlu0 %1571  ;;  %4945 = vmatpush3.msra.mxu0 %v494_v16 }
 0x5a5   : > { %v1584_v42 = vsel %vm500_vm0, %v1572_v24, %v1574_v25  ;;  %4946 = vmatprep.subr.mxu0 %v493_v18 }
 0x5a6   : > { %4929 = vmatprep.subr.mxu1 %v1584_v42  ;;  %v1570_v26 = vpop.permute.xlu1 %1569  ;;  %4947 = vmatpush3.msra.mxu0 %v493_v18 }
 0x5a7   : > { %4930 = vmatpush3.msra.mxu1 %v1584_v42  ;;  %4948 = vmatprep.subr.mxu0 %v492_v19 }
 0x5a8   : > { %v1568_v47 = vpop.permute.xlu0 %1567  ;;  %4949 = vmatpush3.msra.mxu0 %v492_v19 }
 0x5a9   : > { %v1583_v27 = vsel %vm500_vm0, %v1568_v47, %v1570_v26  ;;  %4950 = vmatprep.subr.mxu0 %v491_v20 }
 0x5aa   : > { %4931 = vmatprep.subr.mxu1 %v1583_v27  ;;  %4951 = vmatpush3.msra.mxu0 %v491_v20 }
 0x5ab   : > { %4932 = vmatpush3.msra.mxu1 %v1583_v27  ;;  %v5817_v27 = vld [vmem:[%s6435_s5 + $0x70] sm:$0xff] }
 0x5ac   : > { %4955 = vmatprep.subr.mxu1 %v5817_v27 }
 0x65b   : > { %v4924_v34 = vpop.f32.mrf.mxu0 }
 0x65c   : > { %v1514_v35 = vadd.f32 %v4924_v34, %v1512_v33 }
 0x65d   : > { %v1500_v38 = vpop.f32.mrf.mxu0 }
 0x65e   : > { %v1516_v39 = vadd.f32 %v1514_v35, %v5575_v37  ;;  %v1513_v40 = vadd.f32 %v1512_v33, %v1500_v38  ;;  %v1765_v33 = vrot.slane %v5782_v32, %v1764_v31 }
 0x660   : > { %v1515_v41 = vadd.f32 %v1513_v40, %v5573_v36  ;;  %v1519_v43 = vsel %vm1518_vm7, %v1516_v39, 0.0 }
 0x662   : > { %v1517_v44 = vsel %vm500_vm0, %v1515_v41, 0.0 }
 0x663   : > { %v1520_v45 = vadd.f32 %v1519_v43, %v1517_v44 }
 0x665   : > { %v1521_v46 = vrot.slane %v1520_v45, 4 }
 0x667   : > { %v1522_v48 = vadd.f32 %v1521_v46, %v1520_v45 }
 0x669   : > { %v1523_v49 = vrot.slane %v1522_v48, 2 }
 0x66b   : > { %v1524_v50 = vadd.f32 %v1523_v49, %v1522_v48 }
 0x66d   : > { %v1525_v51 = vrot.slane %v1524_v50, 1 }
 0x66f   : > { %v1526_v52 = vadd.f32 %v1525_v51, %v1524_v50 }
 0x671   : > { %v1528_v53 = vmul.f32 0.11111111, %v1526_v52 }
 0x673   : > { %v1529_v54 = vsub.f32 %v1515_v41, %v1528_v53  ;;  %v1530_v55 = vsub.f32 %v1516_v39, %v1528_v53 }
 0x675   : > { %v1531_v56 = vmul.f32 %v1529_v54, %v1529_v54  ;;  %v1532_v37 = vmul.f32 %v1530_v55, %v1530_v55 }
 0x677   : > { %v1533_v57 = vsel %vm500_vm0, %v1531_v56, 0.0  ;;  %v1534_v36 = vsel %vm1518_vm7, %v1532_v37, 0.0 }
 0x678   : > { %v1535_v58 = vadd.f32 %v1534_v36, %v1533_v57 }
 0x67a   : > { %v1536_v59 = vrot.slane %v1535_v58, 4 }
 0x67c   : > { %v1537_v60 = vadd.f32 %v1536_v59, %v1535_v58 }
 0x67e   : > { %v1538_v61 = vrot.slane %v1537_v60, 2 }
 0x680   : > { %v1539_v62 = vadd.f32 %v1538_v61, %v1537_v60 }
 0x682   : > { %v1540_v63 = vrot.slane %v1539_v62, 1 }
 0x684   : > { %v1541_v3 = vadd.f32 %v1540_v63, %v1539_v62 }
 0x686   : > { %v1542_v0 = vmul.f32 0.11111111, %v1541_v3 }
 0x688   : > { %v1543_v1 = vadd.f32 1e-05, %v1542_v0 }
 0x68a   : > { %5270 = vrsqrt.f32 %v1543_v1 }
 0x697   : > { %v5271_v5 = vpop.eup %5270 }
 0x698   : > { %v1545_v4 = vmul.f32 %v5271_v5, %v1529_v54  ;;  %v1546_v6 = vmul.f32 %v5271_v5, %v1530_v55  ;;  %v1806_v5 = vsub.s32 6, %v5552_v10 }
 0x69a   : > { %v1551_v13 = vmul.f32 %v1550_v2, %v1545_v4  ;;  %v1552_v7 = vmul.f32 %v1550_v2, %v1546_v6  ;;  %v1800_v2 = vsub.s32 5, %v5552_v10 }
 0x69c   : > { %v1557_v15 = vadd.f32 %v1556_v12, %v1551_v13  ;;  %v1558_v8 = vadd.f32 %v1556_v12, %v1552_v7  ;;  %v1801_v4 = vrot.slane %v5782_v32, %v1800_v2  ;;  %v1807_v7 = vrot.slane %v5782_v32, %v1806_v5 }
 0x69e   : > { %4933 = vmatprep.mubr.msk.f32.mxu1 %vm500_vm0, %v1557_v15 }
 0x69f   : > { %4934 = vmatmul.mubr.msk.f32.vlgmr.msra.gmra.mxu1 %vm500_vm0, %v1558_v8 }
 0x6a0   : > { %4956 = vmatpush3.msra.mxu1 %v5817_v27 }
 0x6a1   : > { %4957 = vmatprep.subr.mxu1 %v5824_v28 }
 0x6a2   : > { %4958 = vmatpush3.msra.mxu1 %v5824_v28 }
 0x6a3   : > { %4959 = vmatprep.subr.mxu1 %v5831_v29 }
 0x6a4   : > { %4960 = vmatpush3.msra.mxu1 %v5831_v29 }
 0x6a5   : > { %4961 = vmatprep.subr.mxu1 %v5836_v30 }
 0x6a6   : > { %4962 = vmatpush3.msra.mxu1 %v5836_v30 }
 0x75f   : > { %v4935_v23 = vpop.f32.mrf.mxu1 }
 0x760   : > { %v1677_v24 = vadd.f32 %v4935_v23, %v1675_v22 }
 0x761   : > { %v1663_v25 = vpop.f32.mrf.mxu1 }
 0x762   : > { %v1676_v42 = vadd.f32 %v1675_v22, %v1663_v25  ;;  %v1679_v26 = vmax.f32 %v1677_v24, 0.0 }
 0x764   : > { %v1678_v47 = vmax.f32 %v1676_v42, 0.0 }
 0x766   : > { %4952 = vmatprep.mubr.msk.f32.mxu0 %vm1680_vm8, %v1678_v47 }
 0x767   : > { %4953 = vmatmul.mubr.msk.f32.vlgmr.msra.gmra.mxu0 %vm1680_vm8, %v1679_v26 }
 0x827   : > { %v4954_v34 = vpop.f32.mrf.mxu0 }
 0x828   : > { %v1767_v35 = vadd.f32 %v4954_v34, %v1765_v33 }
 0x829   : > { %v1753_v38 = vpop.f32.mrf.mxu0 }
 0x82a   : > { %v1769_v39 = vadd.f32 %v1767_v35, %v1558_v8  ;;  %v1766_v40 = vadd.f32 %v1765_v33, %v1753_v38 }
 0x82c   : > { %v1768_v41 = vadd.f32 %v1766_v40, %v1557_v15  ;;  %v1771_v43 = vsel %vm1518_vm7, %v1769_v39, 0.0 }
 0x82e   : > { %v1770_v44 = vsel %vm500_vm0, %v1768_v41, 0.0 }
 0x82f   : > { %v1772_v45 = vadd.f32 %v1771_v43, %v1770_v44 }
 0x831   : > { %v1773_v46 = vrot.slane %v1772_v45, 4 }
 0x833   : > { %v1774_v48 = vadd.f32 %v1773_v46, %v1772_v45 }
 0x835   : > { %v1775_v49 = vrot.slane %v1774_v48, 2 }
 0x837   : > { %v1776_v50 = vadd.f32 %v1775_v49, %v1774_v48 }
 0x839   : > { %v1777_v51 = vrot.slane %v1776_v50, 1 }
 0x83b   : > { %v1778_v52 = vadd.f32 %v1777_v51, %v1776_v50 }
 0x83d   : > { %v1779_v53 = vmul.f32 0.11111111, %v1778_v52 }
 0x83f   : > { %v1780_v54 = vsub.f32 %v1768_v41, %v1779_v53  ;;  %v1781_v55 = vsub.f32 %v1769_v39, %v1779_v53 }
 0x841   : > { %v1782_v56 = vmul.f32 %v1780_v54, %v1780_v54  ;;  %v1783_v37 = vmul.f32 %v1781_v55, %v1781_v55 }
 0x843   : > { %v1784_v57 = vsel %vm500_vm0, %v1782_v56, 0.0  ;;  %v1785_v36 = vsel %vm1518_vm7, %v1783_v37, 0.0 }
 0x844   : > { %v1786_v58 = vadd.f32 %v1785_v36, %v1784_v57 }
 0x846   : > { %v1787_v59 = vrot.slane %v1786_v58, 4 }
 0x848   : > { %v1788_v60 = vadd.f32 %v1787_v59, %v1786_v58 }
 0x84a   : > { %v1789_v61 = vrot.slane %v1788_v60, 2 }
 0x84c   : > { %v1790_v62 = vadd.f32 %v1789_v61, %v1788_v60 }
 0x84e   : > { %v1791_v63 = vrot.slane %v1790_v62, 1 }
 0x850   : > { %v1792_v3 = vadd.f32 %v1791_v63, %v1790_v62 }
 0x852   : > { %v1793_v0 = vmul.f32 0.11111111, %v1792_v3 }
 0x854   : > { %v1794_v1 = vadd.f32 1e-05, %v1793_v0 }
 0x856   : > { %5272 = vrsqrt.f32 %v1794_v1 }
 0x863   : > { %v5273_v6 = vpop.eup %5272 }
 0x864   : > { %v1796_v12 = vmul.f32 %v5273_v6, %v1780_v54  ;;  %v1797_v13 = vmul.f32 %v5273_v6, %v1781_v55 }
 0x866   : > { %v1802_v15 = vmul.f32 %v1801_v4, %v1796_v12  ;;  %v1803_v8 = vmul.f32 %v1801_v4, %v1797_v13 }
 0x868   : > { %v5858_v16 = vadd.f32 %v1807_v7, %v1802_v15  ;;  %v5860_v18 = vadd.f32 %v1807_v7, %v1803_v8 }
 0x86a   : > { %4963 = vmatprep.mubr.msk.f32.mxu1 %vm500_vm0, %v5858_v16 }
 0x86b   : > { %4964 = vmatmul.mubr.msk.f32.vlgmr.msra.gmra.mxu1 %vm500_vm0, %v5860_v18 }
 0x92b   : > { %v5866_v19 = vpop.f32.mrf.mxu1 }
 0x92c   : > { %1918 = vrot.lane.b32.xlu0 %v5866_v19, %s6426_s12 }
 0x92d   : > { %v5870_v20 = vpop.f32.mrf.mxu1 }
 0x92e   : > { %1916 = vrot.lane.b32.xlu1 %v5870_v20, %s6426_s12  ;;  %4970 = vmatprep.mubr.msk.f32.mxu1 %vm600_vm1, %v5870_v20 }
 0x930   : > { %1922 = vrot.lane.b32.xlu0 %v5866_v19, %s6424_s11 }
 0x932   : > { %1926 = vrot.lane.b32.xlu1 %v5866_v19, %s6438_s26 }
 0x934   : > { %1920 = vrot.lane.b32.xlu0 %v5870_v20, %s6424_s11  ;;  %s6447_s11 = smov 112  }
 0x936   : > { %1924 = vrot.lane.b32.xlu1 %v5870_v20, %s6438_s26 }
 0x938   : > { %1930 = vrot.lane.b32.xlu0 %v5866_v19, %s6439_s21 }
 0x93c   : > { %1928 = vrot.lane.b32.xlu0 %v5870_v20, %s6439_s21 }
 0x99e   : > { %v5888_v32 = vpop.permute.xlu0 %1918 }
 0x99f   : > { %2017 = vrot.lane.b32.xlu1 %v5888_v32, %s6439_s21 }
 0x9a0   : > { %v5892_v22 = vpop.permute.xlu1 %1916 }
 0x9a1   : > { %4977 = vmatprep.mubr.msk.f32.mxu0 %vm600_vm1, %v5892_v22 }
 0x9a2   : > { %v5896_v23 = vpop.permute.xlu0 %1922 }
 0x9a3   : > { %2104 = vrot.lane.b32.xlu0 %v5896_v23, %s6439_s21  ;;  %2015 = vrot.lane.b32.xlu1 %v5892_v22, %s6439_s21 }
 0x9a4   : > { %v5902_v24 = vpop.permute.xlu1 %1926 }
 0x9a6   : > { %v5904_v25 = vpop.permute.xlu0 %1920 }
 0x9a7   : > { %2102 = vrot.lane.b32.xlu0 %v5904_v25, %s6439_s21  ;;  %2191 = vrot.lane.b32.xlu1 %v5902_v24, %s6439_s21 }
 0x9a8   : > { %v5910_v42 = vpop.permute.xlu1 %1924 }
 0x9aa   : > { %v1931_v47 = vpop.permute.xlu0 %1930 }
 0x9ab   : > { %4966 = vmatprep.subr.msk.mxu1 %vm600_vm1, %v1931_v47  ;;  %2189 = vrot.lane.b32.xlu1 %v5910_v42, %s6439_s21 }
 0x9ac   : > { %4967 = vmatpush3.xpose.msk.msra.mxu1 %vm600_vm1, %v1931_v47 }
 0x9ae   : > { %v1929_v26 = vpop.permute.xlu0 %1928 }
 0x9af   : > { %4968 = vmatprep.subr.msk.mxu1 %vm600_vm1, %v1929_v26 }
 0x9b0   : > { %4969 = vmatpush3.xpose.msk.msra.mxu1 %vm600_vm1, %v1929_v26 }
 0x9b3   : > { %4971 = vmatmul.mubr.msk.f32.vlgmr.msra.gmra.mxu1 %vm600_vm1, %v5866_v19 }
 0x9b4   : > { %4984 = vmatprep.mubr.msk.f32.mxu1 %vm600_vm1, %v5904_v25 }
 0xa11   : > { %v2018_v33 = vpop.permute.xlu1 %2017 }
 0xa12   : > { %4973 = vmatprep.subr.msk.mxu0 %vm600_vm1, %v2018_v33 }
 0xa13   : > { %4974 = vmatpush3.xpose.msk.msra.mxu0 %vm600_vm1, %v2018_v33 }
 0xa15   : > { %v2105_v34 = vpop.permute.xlu0 %2104  ;;  %v2016_v35 = vpop.permute.xlu1 %2015 }
 0xa16   : > { %4975 = vmatprep.subr.msk.mxu0 %vm600_vm1, %v2016_v35  ;;  %4980 = vmatprep.subr.msk.mxu1 %vm600_vm1, %v2105_v34 }
 0xa17   : > { %4976 = vmatpush3.xpose.msk.msra.mxu0 %vm600_vm1, %v2016_v35  ;;  %4981 = vmatpush3.xpose.msk.msra.mxu1 %vm600_vm1, %v2105_v34 }
 0xa19   : > { %v2103_v38 = vpop.permute.xlu0 %2102  ;;  %v2192_v39 = vpop.permute.xlu1 %2191 }
 0xa1a   : > { %4978 = vmatmul.mubr.msk.f32.vlgmr.msra.gmra.mxu0 %vm600_vm1, %v5888_v32  ;;  %4982 = vmatprep.subr.msk.mxu1 %vm600_vm1, %v2103_v38 }
 0xa1b   : > { %4987 = vmatprep.subr.msk.mxu0 %vm600_vm1, %v2192_v39  ;;  %4983 = vmatpush3.xpose.msk.msra.mxu1 %vm600_vm1, %v2103_v38 }
 0xa1c   : > { %4988 = vmatpush3.xpose.msk.msra.mxu0 %vm600_vm1, %v2192_v39  ;;  %4991 = vmatprep.mubr.msk.f32.mxu0 %vm600_vm1, %v5910_v42 }
 0xa1d   : > { %v2190_v40 = vpop.permute.xlu1 %2189 }
 0xa1e   : > { %4985 = vmatmul.mubr.msk.f32.vlgmr.msra.gmra.mxu1 %vm600_vm1, %v5896_v23  ;;  %4989 = vmatprep.subr.msk.mxu0 %vm600_vm1, %v2190_v40 }
 0xa20   : > { %4990 = vmatpush3.xpose.msk.msra.mxu0 %vm600_vm1, %v2190_v40 }
 0xa23   : > { %4992 = vmatmul.mubr.msk.f32.vlgmr.msra.gmra.mxu0 %vm600_vm1, %v5902_v24 }
 0xa73   : > { %v4972_v41 = vpop.f32.mrf.mxu1 }
 0xa74   : > { %v2277_v43 = vmul.f32 0.35355338, %v4972_v41 }
 0xa75   : > { %v2006_v44 = vpop.f32.mrf.mxu1 }
 0xa76   : > { %v2276_v45 = vmul.f32 0.35355338, %v2006_v44  ;;  %v2287_v46 = vsel %vm957_vm2, %v2277_v43, -inf }
 0xa77   : > { %2288 = vmax.xlane.f32.xlu1 %v2287_v46 }
 0xa78   : > { %v2284_v48 = vsel %vm953_vm3, %v2276_v45, -inf }
 0xa79   : > { %2285 = vmax.xlane.f32.xlu0 %v2284_v48 }
 0xada   : > { %v4979_v49 = vpop.f32.mrf.mxu0 }
 0xadb   : > { %v2279_v50 = vmul.f32 0.35355338, %v4979_v49 }
 0xadc   : > { %v2093_v51 = vpop.f32.mrf.mxu0 }
 0xadd   : > { %v2278_v52 = vmul.f32 0.35355338, %v2093_v51  ;;  %v2293_v53 = vsel %vm957_vm2, %v2279_v50, -inf }
 0xade   : > { %2294 = vmax.xlane.f32.xlu0 %v2293_v53  ;;  %v4986_v54 = vpop.f32.mrf.mxu1 }
 0xadf   : > { %v2281_v56 = vmul.f32 0.35355338, %v4986_v54  ;;  %v2290_v57 = vsel %vm953_vm3, %v2278_v52, -inf }
 0xae0   : > { %v2180_v55 = vpop.f32.mrf.mxu1 }
 0xae1   : > { %v2280_v37 = vmul.f32 0.35355338, %v2180_v55  ;;  %v2299_v61 = vsel %vm957_vm2, %v2281_v56, -inf }
 0xae2   : > { %2291 = vmax.xlane.f32.xlu0 %v2290_v57 }
 0xae3   : > { %v4993_v36 = vpop.f32.mrf.mxu0  ;;  %v2296_v58 = vsel %vm953_vm3, %v2280_v37, -inf }
 0xae4   : > { %2297 = vmax.xlane.f32.xlu1 %v2296_v58  ;;  %v2283_v59 = vmul.f32 0.35355338, %v4993_v36 }
 0xae5   : > { %v2267_v60 = vpop.f32.mrf.mxu0 }
 0xae6   : > { %v2282_v62 = vmul.f32 0.35355338, %v2267_v60  ;;  %2300 = vmax.xlane.f32.xlu0 %v2299_v61  ;;  %v2305_v3 = vsel %vm957_vm2, %v2283_v59, -inf }
 0xae8   : > { %v2302_v63 = vsel %vm953_vm3, %v2282_v62, -inf }
 0xae9   : > { %2303 = vmax.xlane.f32.xlu1 %v2302_v63 }
 0xaea   : > { %2306 = vmax.xlane.f32.xlu0 %v2305_v3 }
 0xafa   : > { %2374 = vrot.lane.b32.xlu1 %v5866_v19, %s6440_s29 }
 0xafe   : > { %2462 = vrot.lane.b32.xlu1 %v5888_v32, %s6440_s29 }
 0xb00   : > { %2372 = vrot.lane.b32.xlu0 %v5870_v20, %s6440_s29  ;;  %v2289_v0 = vpop.xlane.xlu1 %2288 }
 0xb01   : > { %v2309_v1 = vsub.f32 %v2277_v43, %v2289_v0 }
 0xb02   : > { %2460 = vrot.lane.b32.xlu1 %v5892_v22, %s6440_s29  ;;  %v2286_v6 = vpop.xlane.xlu0 %2285 }
 0xb03   : > { %v2318_v4 = vmul.f32 1.442695, %v2309_v1  ;;  %v2308_v12 = vsub.f32 %v2276_v45, %v2286_v6 }
 0xb04   : > { %2550 = vrot.lane.b32.xlu0 %v5896_v23, %s6440_s29 }
 0xb05   : > { %5274 = vpow2.f32 %v2318_v4  ;;  %v2316_v13 = vmul.f32 1.442695, %v2308_v12 }
 0xb06   : > { %2638 = vrot.lane.b32.xlu1 %v5902_v24, %s6440_s29 }
 0xb07   : > { %5276 = vpow2.f32 %v2316_v13 }
 0xb12   : > { %v5962_v7 = vpop.eup %5274 }
 0xb13   : > { %v2335_v15 = vsel %vm957_vm2, %v5962_v7, 0.0 }
 0xb14   : > { %v5966_v8 = vpop.eup %5276 }
 0xb15   : > { %v2332_v19 = vsel %vm953_vm3, %v5966_v8, 0.0 }
 0xb23   : > { %2336 = vadd.xlane.f32.xlu0 %v2335_v15 }
 0xb2a   : > { %2333 = vadd.xlane.f32.xlu1 %v2332_v19 }
 0xb67   : > { %v2295_v20 = vpop.xlane.xlu0 %2294 }
 0xb68   : > { %v2311_v32 = vsub.f32 %v2279_v50, %v2295_v20 }
 0xb6a   : > { %v2322_v22 = vmul.f32 1.442695, %v2311_v32 }
 0xb6b   : > { %v2292_v23 = vpop.xlane.xlu0 %2291 }
 0xb6c   : > { %5278 = vpow2.f32 %v2322_v22  ;;  %v2310_v24 = vsub.f32 %v2278_v52, %v2292_v23 }
 0xb6d   : > { %v2298_v47 = vpop.xlane.xlu1 %2297 }
 0xb6e   : > { %v2320_v26 = vmul.f32 1.442695, %v2310_v24  ;;  %v2312_v33 = vsub.f32 %v2280_v37, %v2298_v47 }
 0xb6f   : > { %v2301_v34 = vpop.xlane.xlu0 %2300 }
 0xb70   : > { %5280 = vpow2.f32 %v2320_v26  ;;  %v2324_v35 = vmul.f32 1.442695, %v2312_v33  ;;  %v2313_v38 = vsub.f32 %v2281_v56, %v2301_v34 }
 0xb72   : > { %5282 = vpow2.f32 %v2324_v35  ;;  %v2326_v39 = vmul.f32 1.442695, %v2313_v38  ;;  %v2304_v40 = vpop.xlane.xlu1 %2303 }
 0xb73   : > { %v2314_v41 = vsub.f32 %v2282_v62, %v2304_v40  ;;  %v2307_v43 = vpop.xlane.xlu0 %2306 }
 0xb74   : > { %5284 = vpow2.f32 %v2326_v39  ;;  %v2315_v44 = vsub.f32 %v2283_v59, %v2307_v43 }
 0xb75   : > { %v2328_v45 = vmul.f32 1.442695, %v2314_v41  ;;  %v4592_v41 = vld [vmem:[%s6437_s6 + $0x80] sm:$0xff] }
 0xb76   : > { %v2330_v46 = vmul.f32 1.442695, %v2315_v44  ;;  %v2375_v48 = vpop.permute.xlu1 %2374  ;;  %v4591_v44 = vld [vmem:[%s6437_s6 + $0x78] sm:$0xff] }
 0xb77   : > { %5286 = vpow2.f32 %v2328_v45  ;;  %4994 = vmatprep.subr.msk.mxu1 %vm1054_vm4, %v2375_v48  ;;  %v2373_v49 = vpop.permute.xlu0 %2372  ;;  %v4590_v45 = vld [vmem:[%s6437_s6 + $0x70] sm:$0xff] }
 0xb78   : > { %5288 = vpow2.f32 %v2330_v46  ;;  %4995 = vmatpush3.msk.msra.mxu1 %vm1054_vm4, %v2375_v48  ;;  %v4589_v48 = vld [vmem:[%s6437_s6 + $0x68] sm:$0xff] }
 0xb79   : > { %v5279_v50 = vpop.eup %5278  ;;  %4996 = vmatprep.subr.mxu1 %v2373_v49 }
 0xb7a   : > { %4997 = vmatpush3.msra.mxu1 %v2373_v49  ;;  %v2463_v51 = vpop.permute.xlu1 %2462  ;;  %v2341_v52 = vsel %vm957_vm2, %v5279_v50, 0.0 }
 0xb7b   : > { %5001 = vmatprep.subr.msk.mxu1 %vm1054_vm4, %v2463_v51  ;;  %2342 = vadd.xlane.f32.xlu0 %v2341_v52  ;;  %v2551_v53 = vpop.permute.xlu0 %2550 }
 0xb7c   : > { %5008 = vmatprep.subr.msk.mxu0 %vm1054_vm4, %v2551_v53 }
 0xb7d   : > { %v5281_v54 = vpop.eup %5280  ;;  %5009 = vmatpush3.msk.msra.mxu0 %vm1054_vm4, %v2551_v53 }
 0xb7e   : > { %v2338_v55 = vsel %vm953_vm3, %v5281_v54, 0.0  ;;  %v2461_v62 = vpop.permute.xlu1 %2460 }
 0xb7f   : > { %v5283_v56 = vpop.eup %5282  ;;  %2339 = vadd.xlane.f32.xlu1 %v2338_v55  ;;  %v4588_v55 = vld [vmem:[%s6435_s5 + $0x78] sm:$0xff] }
 0xb80   : > { %v2344_v36 = vsel %vm953_vm3, %v5283_v56, 0.0 }
 0xb81   : > { %v5285_v37 = vpop.eup %5284 }
 0xb82   : > { %v2347_v57 = vsel %vm957_vm2, %v5285_v37, 0.0  ;;  %v2639_v63 = vpop.permute.xlu1 %2638 }
 0xb83   : > { %2348 = vadd.xlane.f32.xlu0 %v2347_v57  ;;  %2345 = vadd.xlane.f32.xlu1 %v2344_v36  ;;  %v4582_v57 = vld [vmem:[%s6435_s5 + $0x48] sm:$0xff] }
 0xb84   : > { %v5287_v58 = vpop.eup %5286 }
 0xb85   : > { %v5289_v59 = vpop.eup %5288  ;;  %v2350_v61 = vsel %vm953_vm3, %v5287_v58, 0.0 }
 0xb86   : > { %v2353_v60 = vsel %vm957_vm2, %v5289_v59, 0.0 }
 0xb87   : > { %2354 = vadd.xlane.f32.xlu0 %v2353_v60  ;;  %2351 = vadd.xlane.f32.xlu1 %v2350_v61 }
 0xb98   : > { %2636 = vrot.lane.b32.xlu1 %v5910_v42, %s6440_s29 }
 0xb9d   : > { %2548 = vrot.lane.b32.xlu0 %v5904_v25, %s6440_s29 }
 0xbac   : > { %v2337_v3 = vpop.xlane.xlu0 %2336 }
 0xbad   : > { %5290 = vrcp.f32 %v2337_v3 }
 0xbb3   : > { %v2334_v0 = vpop.xlane.xlu1 %2333 }
 0xbb4   : > { %5292 = vrcp.f32 %v2334_v0 }
 0xbba   : > { %v5291_v1 = vpop.eup %5290 }
 0xbbb   : > { %v2359_v12 = vmul.f32 %v5291_v1, %v5962_v7 }
 0xbc1   : > { %v5293_v4 = vpop.eup %5292 }
 0xbc2   : > { %v2357_v6 = vmul.f32 %v5293_v4, %v5966_v8 }
 0xbc4   : > { %4998 = vmatprep.mubr.msk.f32.mxu1 %vm953_vm3, %v2357_v6 }
 0xbc5   : > { %4999 = vmatmul.mubr.msk.f32.vlgmr.msra.gmra.mxu1 %vm953_vm3, %v2359_v12 }
 0xbc6   : > { %5002 = vmatpush3.msk.msra.mxu1 %vm1054_vm4, %v2463_v51 }
 0xbc7   : > { %5003 = vmatprep.subr.mxu1 %v2461_v62 }
 0xbc8   : > { %5004 = vmatpush3.msra.mxu1 %v2461_v62 }
 0xbc9   : > { %5015 = vmatprep.subr.msk.mxu1 %vm1054_vm4, %v2639_v63 }
 0xc04   : > { %v2343_v25 = vpop.xlane.xlu0 %2342 }
 0xc05   : > { %5294 = vrcp.f32 %v2343_v25 }
 0xc08   : > { %v2340_v42 = vpop.xlane.xlu1 %2339 }
 0xc09   : > { %5296 = vrcp.f32 %v2340_v42 }
 0xc0c   : > { %v2349_v13 = vpop.xlane.xlu0 %2348  ;;  %v2346_v15 = vpop.xlane.xlu1 %2345 }
 0xc0d   : > { %5298 = vrcp.f32 %v2349_v13 }
 0xc0e   : > { %5300 = vrcp.f32 %v2346_v15 }
 0xc10   : > { %v2355_v8 = vpop.xlane.xlu0 %2354  ;;  %v2352_v7 = vpop.xlane.xlu1 %2351 }
 0xc11   : > { %5302 = vrcp.f32 %v2355_v8 }
 0xc12   : > { %5304 = vrcp.f32 %v2352_v7  ;;  %v5295_v20 = vpop.eup %5294 }
 0xc13   : > { %v2363_v23 = vmul.f32 %v5295_v20, %v5279_v50  ;;  %v4600_v20 = vld [vmem:[%s6437_s6 + $0xc0] sm:$0xff] }
 0xc14   : > { %v2549_v19 = vpop.permute.xlu0 %2548  ;;  %v2637_v26 = vpop.permute.xlu1 %2636 }
 0xc15   : > { %5010 = vmatprep.subr.mxu0 %v2549_v19 }
 0xc16   : > { %v5297_v32 = vpop.eup %5296  ;;  %5011 = vmatpush3.msra.mxu0 %v2549_v19 }
 0xc17   : > { %v2361_v22 = vmul.f32 %v5297_v32, %v5281_v54  ;;  %5022 = vmatprep.subr.mxu0 %v4592_v41  ;;  %v4599_v32 = vld [vmem:[%s6437_s6 + $0xb8] sm:$0xff] }
 0xc19   : > { %5005 = vmatprep.mubr.msk.f32.mxu1 %vm953_vm3, %v2361_v22  ;;  %v4598_v22 = vld [vmem:[%s6437_s6 + $0xb0] sm:$0xff] }
 0xc1a   : > { %v5299_v24 = vpop.eup %5298  ;;  %5006 = vmatmul.mubr.msk.f32.vlgmr.msra.gmra.mxu1 %vm953_vm3, %v2363_v23  ;;  %v4597_v23 = vld [vmem:[%s6437_s6 + $0xa8] sm:$0xff] }
 0xc1b   : > { %v5301_v47 = vpop.eup %5300  ;;  %5016 = vmatpush3.msk.msra.mxu1 %vm1054_vm4, %v2639_v63  ;;  %v2367_v33 = vmul.f32 %v5299_v24, %v5285_v37  ;;  %v4584_v37 = vld [vmem:[%s6435_s5 + $0x58] sm:$0xff]  ;;  %v6067_v24 = vld [vmem:[%s6437_s6 + $0xc8] sm:$0xff] }
 0xc1c   : > { %5017 = vmatprep.subr.mxu1 %v2637_v26  ;;  %v2365_v34 = vmul.f32 %v5301_v47, %v5283_v56  ;;  %v4586_v56 = vld [vmem:[%s6435_s5 + $0x68] sm:$0xff]  ;;  %v2838_v47 = vrot.slane %v6067_v24, %v5558_v14  ;;  %s6096_s5 = sshll.u32 %s5515_s25, 3 }
 0xc1d   : > { %5018 = vmatpush3.msra.mxu1 %v2637_v26  ;;  %s408_s29 = scalar_lea.vmem %s6399_s1, %s6096_s5 }
 0xc1e   : > { %v5303_v35 = vpop.eup %5302  ;;  %5012 = vmatprep.mubr.msk.f32.mxu0 %vm953_vm3, %v2365_v34 }
 0xc1f   : > { %v5305_v38 = vpop.eup %5304  ;;  %5013 = vmatmul.mubr.msk.f32.vlgmr.msra.gmra.mxu0 %vm953_vm3, %v2367_v33  ;;  %v2371_v39 = vmul.f32 %v5303_v35, %v5289_v59 }
 0xc20   : > { %v2369_v40 = vmul.f32 %v5305_v38, %v5287_v58  ;;  %5023 = vmatpush3.msra.mxu0 %v4592_v41 }
 0xc21   : > { %5024 = vmatprep.subr.mxu0 %v4591_v44 }
 0xc22   : > { %5019 = vmatprep.mubr.msk.f32.mxu1 %vm953_vm3, %v2369_v40  ;;  %5025 = vmatpush3.msra.mxu0 %v4591_v44 }
 0xc23   : > { %5020 = vmatmul.mubr.msk.f32.vlgmr.msra.gmra.mxu1 %vm953_vm3, %v2371_v39  ;;  %5026 = vmatprep.subr.mxu0 %v4590_v45 }
 0xc24   : > { %5027 = vmatpush3.msra.mxu0 %v4590_v45 }
 0xc25   : > { %5028 = vmatprep.subr.mxu0 %v4589_v48 }
 0xc26   : > { %5029 = vmatpush3.msra.mxu0 %v4589_v48 }
 0xc27   : > { %5044 = vmatprep.subr.mxu0 %v4600_v20 }
 0xc85   : > { %v5000_v43 = vpop.f32.mrf.mxu1 }
 0xc87   : > { %v2451_v46 = vpop.f32.mrf.mxu1 }
 0xcda   : > { %v5007_v49 = vpop.f32.mrf.mxu1 }
 0xcdb   : > { %2728 = vrot.lane.b32.xlu1 %v5007_v49, %s6441_s30 }
 0xcdc   : > { %v2539_v50 = vpop.f32.mrf.mxu1 }
 0xcdd   : > { %2726 = vrot.lane.b32.xlu0 %v2539_v50, %s6441_s30 }
 0xcdf   : > { %v5014_v51 = vpop.f32.mrf.mxu0 }
 0xce0   : > { %2736 = vrot.lane.b32.xlu1 %v5014_v51, %s6442_s18 }
 0xce1   : > { %v2627_v52 = vpop.f32.mrf.mxu0 }
 0xce2   : > { %2734 = vrot.lane.b32.xlu0 %v2627_v52, %s6442_s18 }
 0xce3   : > { %v5021_v53 = vpop.f32.mrf.mxu1 }
 0xce4   : > { %2744 = vrot.lane.b32.xlu1 %v5021_v53, %s6443_s20 }
 0xce5   : > { %v2715_v54 = vpop.f32.mrf.mxu1 }
 0xce6   : > { %2742 = vrot.lane.b32.xlu0 %v2715_v54, %s6443_s20 }
 0xce8   : > { %2905 = vrot.lane.b32.xlu1 %v4588_v55, %s6444_s27 }
 0xcea   : > { %2903 = vrot.lane.b32.xlu0 %v5817_v27, %s6444_s27 }
 0xcec   : > { %2901 = vrot.lane.b32.xlu1 %v4586_v56, %s6444_s27 }
 0xcee   : > { %2899 = vrot.lane.b32.xlu0 %v5824_v28, %s6444_s27 }
 0xcf0   : > { %2897 = vrot.lane.b32.xlu1 %v4584_v37, %s6444_s27 }
 0xcf2   : > { %2895 = vrot.lane.b32.xlu0 %v5831_v29, %s6444_s27 }
 0xcf4   : > { %2893 = vrot.lane.b32.xlu1 %v4582_v57, %s6444_s27 }
 0xcf6   : > { %2891 = vrot.lane.b32.xlu0 %v5836_v30, %s6444_s27  ;;  %s421_s27 = scalar_lea.vmem %s6407_s9, %s6445_s0  ;;  %s416_s0 = scalar_lea.vmem %s6401_s3, %s6096_s5 }
 0xd4d   : > { %v2729_v27 = vpop.permute.xlu1 %2728 }
 0xd4e   : > { %v2749_v61 = vsel %vm600_vm1, %v5000_v43, %v2729_v27 }
 0xd4f   : > { %v2727_v36 = vpop.permute.xlu0 %2726 }
 0xd50   : > { %v2748_v28 = vsel %vm600_vm1, %v2451_v46, %v2727_v36 }
 0xd52   : > { %v2737_v58 = vpop.permute.xlu1 %2736 }
 0xd53   : > { %v2751_v3 = vsel %vm1422_vm5, %v2749_v61, %v2737_v58  ;;  %v2874_v61 = vrot.slane %v6067_v24, %v5555_v11 }
 0xd54   : > { %v2735_v59 = vpop.permute.xlu0 %2734 }
 0xd55   : > { %v2750_v62 = vsel %vm1422_vm5, %v2748_v28, %v2735_v59 }
 0xd56   : > { %v2745_v60 = vpop.permute.xlu1 %2744 }
 0xd57   : > { %v2753_v0 = vsel %vm1425_vm6, %v2751_v3, %v2745_v60 }
 0xd58   : > { %v2743_v63 = vpop.permute.xlu0 %2742 }
 0xd59   : > { %v2752_v29 = vsel %vm1425_vm6, %v2750_v62, %v2743_v63 }
 0xd5a   : > { %5030 = vmatprep.mubr.msk.f32.mxu0 %vm500_vm0, %v2752_v29  ;;  %v2906_v1 = vpop.permute.xlu1 %2905  ;;  %v2880_v29 = vrot.slane %v6067_v24, %v5565_v17 }
 0xd5b   : > { %5031 = vmatmul.mubr.msk.f32.vlgmr.msra.gmra.mxu0 %vm500_vm0, %v2753_v0 }
 0xd5c   : > { %v2904_v30 = vpop.permute.xlu0 %2903  ;;  %5045 = vmatpush3.msra.mxu0 %v4600_v20 }
 0xd5d   : > { %v2910_v4 = vsel %vm500_vm0, %v2904_v30, %v2906_v1  ;;  %5046 = vmatprep.subr.mxu0 %v4599_v32 }
 0xd5e   : > { %5033 = vmatprep.subr.mxu1 %v2910_v4  ;;  %v2902_v12 = vpop.permute.xlu1 %2901  ;;  %5047 = vmatpush3.msra.mxu0 %v4599_v32 }
 0xd5f   : > { %5034 = vmatpush3.msra.mxu1 %v2910_v4  ;;  %5048 = vmatprep.subr.mxu0 %v4598_v22 }
 0xd60   : > { %v2900_v6 = vpop.permute.xlu0 %2899  ;;  %5049 = vmatpush3.msra.mxu0 %v4598_v22 }
 0xd61   : > { %v2909_v25 = vsel %vm500_vm0, %v2900_v6, %v2902_v12  ;;  %5050 = vmatprep.subr.mxu0 %v4597_v23  ;;  %v4596_v6 = vld [vmem:[%s6437_s6 + $0xa0] sm:$0xff]  ;;  %v4595_v12 = vld [vmem:[%s6437_s6 + $0x98] sm:$0xff] }
 0xd62   : > { %5035 = vmatprep.subr.mxu1 %v2909_v25  ;;  %v2898_v13 = vpop.permute.xlu1 %2897  ;;  %5051 = vmatpush3.msra.mxu0 %v4597_v23 }
 0xd63   : > { %5036 = vmatpush3.msra.mxu1 %v2909_v25  ;;  %5052 = vmatprep.subr.mxu0 %v4596_v6  ;;  %v4594_v25 = vld [vmem:[%s6437_s6 + $0x90] sm:$0xff] }
 0xd64   : > { %v2896_v42 = vpop.permute.xlu0 %2895  ;;  %5053 = vmatpush3.msra.mxu0 %v4596_v6 }
 0xd65   : > { %v2908_v15 = vsel %vm500_vm0, %v2896_v42, %v2898_v13  ;;  %5054 = vmatprep.subr.mxu0 %v4595_v12  ;;  %v4593_v42 = vld [vmem:[%s6437_s6 + $0x88] sm:$0xff]  ;;  %v3135_v13 = vld [vmem:[%s408_s29] sm:$0xff]  ;;  %s412_s6 = scalar_lea.vmem %s6400_s2, %s6096_s5  ;;  %s6446_s29 = smov 120  }
 0xd66   : > { %5037 = vmatprep.subr.mxu1 %v2908_v15  ;;  %v2894_v7 = vpop.permute.xlu1 %2893  ;;  %5055 = vmatpush3.msra.mxu0 %v4595_v12 }
 0xd67   : > { %5038 = vmatpush3.msra.mxu1 %v2908_v15  ;;  %5056 = vmatprep.subr.mxu0 %v4594_v25  ;;  %v6105_v15 = vld [vmem:[%s6405_s7 + $0x8] sm:$0xff] }
 0xd68   : > { %v2892_v8 = vpop.permute.xlu0 %2891  ;;  %5057 = vmatpush3.msra.mxu0 %v4594_v25  ;;  %3155 = vperm.xlu0 %5237, %v3135_v13  }
 0xd69   : > { %v2907_v19 = vsel %vm500_vm0, %v2892_v8, %v2894_v7  ;;  %5058 = vmatprep.subr.mxu0 %v4593_v42  ;;  %v3136_v8 = vld [vmem:[%s412_s6] sm:$0xff]  ;;  %v2999_v7 = vrot.slane %v6067_v24, %v5569_v21  ;;  %s5408_s6 = smov 9  }
 0xd6a   : > { %5039 = vmatprep.subr.mxu1 %v2907_v19  ;;  %5059 = vmatpush3.msra.mxu0 %v4593_v42 }
 0xd6b   : > { %5040 = vmatpush3.msra.mxu1 %v2907_v19 }
 0xd6c   : > { %3326 = vrot.lane.b32.xlu0 %v6105_v15, %s6439_s21 }
 0xd70   : > { %3311 = vperm.xlu0 %5237, %v3136_v8  }
 0xde3   : > { %v3156_v42 = vpop.permute.xlu0 %3155 }
 0xe1b   : > { %v5032_v26 = vpop.f32.mrf.mxu0 }
 0xe1c   : > { %v2840_v33 = vadd.f32 %v5032_v26, %v2838_v47  ;;  %v5406_v26 = vmov 0.0  }
 0xe1d   : > { %v2826_v34 = vpop.f32.mrf.mxu0  ;;  %5063 = vmatprep.subr.mxu1 %v5406_v26  ;;  %5092 = vmatprep.subr.mxu0 %v5406_v26 }
 0xe1e   : > { %v2842_v35 = vadd.f32 %v2840_v33, %v5860_v18  ;;  %v2839_v38 = vadd.f32 %v2838_v47, %v2826_v34  ;;  %v3141_v33 = vld [vmem:[%s6405_s7 + $0x18] sm:$0xff]  ;;  %v3140_v34 = vld [vmem:[%s6405_s7 + $0x10] sm:$0xff] }
 0xe1f   : > { %3330 = vrot.lane.b32.xlu1 %v3141_v33, %s6439_s21 }
 0xe20   : > { %v2841_v39 = vadd.f32 %v2839_v38, %v5858_v16  ;;  %v2844_v40 = vsel %vm1518_vm7, %v2842_v35, 0.0  ;;  %v3088_v38 = vrot.slane %v6067_v24, %v1764_v31 }
 0xe22   : > { %v2843_v41 = vsel %vm500_vm0, %v2841_v39, 0.0 }
 0xe23   : > { %v2845_v43 = vadd.f32 %v2844_v40, %v2843_v41  ;;  %3328 = vrot.lane.b32.xlu1 %v3140_v34, %s6439_s21 }
 0xe25   : > { %v2846_v44 = vrot.slane %v2845_v43, 4 }
 0xe27   : > { %v2847_v45 = vadd.f32 %v2846_v44, %v2845_v43 }
 0xe29   : > { %v2848_v46 = vrot.slane %v2847_v45, 2 }
 0xe2b   : > { %v2849_v48 = vadd.f32 %v2848_v46, %v2847_v45 }
 0xe2d   : > { %v2850_v49 = vrot.slane %v2849_v48, 1 }
 0xe2f   : > { %v2851_v50 = vadd.f32 %v2850_v49, %v2849_v48 }
 0xe31   : > { %v2852_v51 = vmul.f32 0.11111111, %v2851_v50 }
 0xe33   : > { %v2853_v52 = vsub.f32 %v2841_v39, %v2852_v51  ;;  %v2854_v53 = vsub.f32 %v2842_v35, %v2852_v51  ;;  %v6134_v35 = vld [vmem:[%s6405_s7] sm:$0xff] }
 0xe34   : > { %3324 = vrot.lane.b32.xlu1 %v6134_v35, %s6439_s21 }
 0xe35   : > { %v2855_v54 = vmul.f32 %v2853_v52, %v2853_v52  ;;  %v2856_v55 = vmul.f32 %v2854_v53, %v2854_v53 }
 0xe37   : > { %v2857_v18 = vsel %vm500_vm0, %v2855_v54, 0.0  ;;  %v2858_v16 = vsel %vm1518_vm7, %v2856_v55, 0.0 }
 0xe38   : > { %v2859_v56 = vadd.f32 %v2858_v16, %v2857_v18 }
 0xe3a   : > { %v2860_v37 = vrot.slane %v2859_v56, 4 }
 0xe3c   : > { %v2861_v57 = vadd.f32 %v2860_v37, %v2859_v56 }
 0xe3e   : > { %v2862_v27 = vrot.slane %v2861_v57, 2 }
 0xe40   : > { %v2863_v36 = vadd.f32 %v2862_v27, %v2861_v57 }
 0xe42   : > { %v2864_v58 = vrot.slane %v2863_v36, 1 }
 0xe44   : > { %v2865_v59 = vadd.f32 %v2864_v58, %v2863_v36 }
 0xe46   : > { %v2866_v28 = vmul.f32 0.11111111, %v2865_v59 }
 0xe48   : > { %v2867_v60 = vadd.f32 1e-05, %v2866_v28 }
 0xe4a   : > { %5306 = vrsqrt.f32 %v2867_v60 }
 0xe57   : > { %v5307_v62 = vpop.eup %5306 }
 0xe58   : > { %v2869_v63 = vmul.f32 %v5307_v62, %v2853_v52  ;;  %v2870_v3 = vmul.f32 %v5307_v62, %v2854_v53 }
 0xe5a   : > { %v2875_v0 = vmul.f32 %v2874_v61, %v2869_v63  ;;  %v2876_v30 = vmul.f32 %v2874_v61, %v2870_v3 }
 0xe5c   : > { %v2881_v1 = vadd.f32 %v2880_v29, %v2875_v0  ;;  %v2882_v4 = vadd.f32 %v2880_v29, %v2876_v30  ;;  %v3124_v29 = vrot.slane %v6067_v24, %v1800_v2  ;;  %v3153_v30 = vand.u32 127, %v435_v9 }
 0xe5e   : > { %5041 = vmatprep.mubr.msk.f32.mxu1 %vm500_vm0, %v2881_v1  ;;  %vm3157_vm10 = vcmp.eq.s32.totalorder %v3153_v30, %v3156_v42 }
 0xe5f   : > { %5042 = vmatmul.mubr.msk.f32.vlgmr.msra.gmra.mxu1 %vm500_vm0, %v2882_v4  ;;  %v4638_v9 = vsel %vm3157_vm10, 1.0, %v5406_v26 }
 0xe60   : > { %5067 = vmatprep.mubr.msk.f32.mxu1 %vm5407_vm9, %v5406_v26 }
 0xe91   : > { %v3331_v10 = vpop.permute.xlu1 %3330 }
 0xf1f   : > { %v5043_v19 = vpop.f32.mrf.mxu1 }
 0xf20   : > { %v3001_v20 = vadd.f32 %v5043_v19, %v2999_v7 }
 0xf21   : > { %v2987_v32 = vpop.f32.mrf.mxu1 }
 0xf22   : > { %v3000_v22 = vadd.f32 %v2999_v7, %v2987_v32  ;;  %v3003_v47 = vmax.f32 %v3001_v20, 0.0  ;;  %v3327_v7 = vpop.permute.xlu0 %3326  ;;  %v4642_v32 = vld [vmem:[%s6405_s7 + $0x20] ss:$0 sm:$0xff] }
 0xf24   : > { %v3002_v23 = vmax.f32 %v3000_v22, 0.0 }
 0xf26   : > { %5060 = vmatprep.mubr.msk.f32.mxu0 %vm1680_vm8, %v3002_v23  ;;  %v3312_v22 = vpop.permute.xlu0 %3311 }
 0xf27   : > { %5061 = vmatmul.mubr.msk.f32.vlgmr.msra.gmra.mxu0 %vm1680_vm8, %v3003_v47 }
 0xf28   : > { %5096 = vmatprep.mubr.msk.f32.mxu0 %vm5407_vm9, %v5406_v26 }
 0xfe7   : > { %v5062_v39 = vpop.f32.mrf.mxu0 }
 0xfe8   : > { %v3090_v40 = vadd.f32 %v5062_v39, %v3088_v38 }
 0xfe9   : > { %v3076_v41 = vpop.f32.mrf.mxu0 }
 0xfea   : > { %v3092_v43 = vadd.f32 %v3090_v40, %v2882_v4  ;;  %v3089_v44 = vadd.f32 %v3088_v38, %v3076_v41 }
 0xfec   : > { %v3091_v45 = vadd.f32 %v3089_v44, %v2881_v1  ;;  %v3094_v46 = vsel %vm1518_vm7, %v3092_v43, 0.0  ;;  %v3130_v1 = vrot.slane %v6067_v24, %v1806_v5  ;;  %v3329_v5 = vpop.permute.xlu1 %3328 }
 0xfee   : > { %v3093_v48 = vsel %vm500_vm0, %v3091_v45, 0.0 }
 0xfef   : > { %v3095_v49 = vadd.f32 %v3094_v46, %v3093_v48  ;;  %v6249_v48 = vld [vmem:[%s416_s0] sm:$0xff]  ;;  %s5336_s0 = sshll.u32 %s5409_s17, 4  ;;  %s5337_s0 = int_to_ptr.vmem [resolvable:$false] %s5336_s0 }
 0xff0   : > { %v3325_v19 = vpop.permute.xlu1 %3324 }
 0xff1   : > { %v3096_v50 = vrot.slane %v3095_v49, 4 }
 0xff3   : > { %v3097_v51 = vadd.f32 %v3096_v50, %v3095_v49 }
 0xff5   : > { %v3098_v52 = vrot.slane %v3097_v51, 2 }
 0xff7   : > { %v3099_v53 = vadd.f32 %v3098_v52, %v3097_v51 }
 0xff9   : > { %v3100_v54 = vrot.slane %v3099_v53, 1 }
 0xffb   : > { %v3101_v55 = vadd.f32 %v3100_v54, %v3099_v53 }
 0xffd   : > { %v3102_v18 = vmul.f32 0.11111111, %v3101_v55 }
 0xfff   : > { %v3103_v16 = vsub.f32 %v3091_v45, %v3102_v18  ;;  %v3104_v31 = vsub.f32 %v3092_v43, %v3102_v18 }
0x1001   : > { %v3105_v56 = vmul.f32 %v3103_v16, %v3103_v16  ;;  %v3106_v37 = vmul.f32 %v3104_v31, %v3104_v31 }
0x1003   : > { %v3107_v57 = vsel %vm500_vm0, %v3105_v56, 0.0  ;;  %v3108_v27 = vsel %vm1518_vm7, %v3106_v37, 0.0 }
0x1004   : > { %v3109_v36 = vadd.f32 %v3108_v27, %v3107_v57 }
0x1006   : > { %v3110_v58 = vrot.slane %v3109_v36, 4 }
0x1008   : > { %v3111_v59 = vadd.f32 %v3110_v58, %v3109_v36 }
0x100a   : > { %v3112_v28 = vrot.slane %v3111_v59, 2 }
0x100c   : > { %v3113_v60 = vadd.f32 %v3112_v28, %v3111_v59 }
0x100e   : > { %v3114_v61 = vrot.slane %v3113_v60, 1 }
0x1010   : > { %v3115_v62 = vadd.f32 %v3114_v61, %v3113_v60 }
0x1012   : > { %v3116_v63 = vmul.f32 0.11111111, %v3115_v62 }
0x1014   : > { %v3117_v3 = vadd.f32 1e-05, %v3116_v63 }
0x1016   : > { %5308 = vrsqrt.f32 %v3117_v3 }
0x1023   : > { %v5309_v0 = vpop.eup %5308 }
0x1024   : > { %v3119_v4 = vmul.f32 %v5309_v0, %v3103_v16  ;;  %v3120_v6 = vmul.f32 %v5309_v0, %v3104_v31 }
0x1026   : > { %v3125_v12 = vmul.f32 %v3124_v29, %v3119_v4  ;;  %v3126_v25 = vmul.f32 %v3124_v29, %v3120_v6 }
0x1028   : > { %v6157_v13 = vadd.f32 %v3130_v1, %v3126_v25  ;;  %v6159_v2 = vadd.f32 %v3130_v1, %v3125_v12 }
0x102a   : > { %3134 = vst.msk [vmem:[%s421_s27 + $0x8] sm:$0x1] %vm1518_vm7, %v6157_v13  ;;  %5064 = vmatpush3.msk.msra.mxu1 %vm1054_vm4, %v6157_v13 }
0x102b   : > { %3133 = vst.msk [vmem:[%s421_s27] sm:$0xff] %vm500_vm0, %v6159_v2  ;;  %5065 = vmatprep.subr.mxu1 %v5406_v26  ;;  %s397_s27 = sand.u32 1, %s5384_s14  }
0x102c   : > { %5066 = vmatpush3.msra.mxu1 %v6159_v2  ;;  %s4537_s25 = sshll.u32 %s397_s27, 3 }
0x102d   : > { %5068 = vmatmul.mubr.msk.f32.vlgmr.msra.gmra.mxu1 %vm953_vm3, %v4638_v9  ;;  %5070 = vmatprep.subr.mxu1 %v5406_v26 }
0x102e   : > { %5071 = vmatpush3.msra.mxu1 %v3141_v33  ;;  %5078 = vmatprep.mubr.msk.f32.mxu1 %vm5407_vm9, %v5406_v26  ;;  %v3318_v33 = vmul.f32 %v4642_v32, %v3312_v22 }
0x102f   : > { %5072 = vmatprep.subr.mxu1 %v5406_v26 }
0x1030   : > { %5073 = vmatpush3.msra.mxu1 %v3140_v34 }
0x1031   : > { %5074 = vmatprep.subr.mxu1 %v5406_v26 }
0x1032   : > { %5075 = vmatpush3.msra.mxu1 %v6105_v15 }
0x1033   : > { %5076 = vmatprep.subr.mxu1 %v5406_v26 }
0x1034   : > { %5077 = vmatpush3.msra.mxu1 %v6134_v35 }
0x1035   : > { %5081 = vmatprep.subr.mxu1 %v3331_v10 }
0x10ed   : > { %v3232_v24 = vpop.f32.mrf.mxu1 }
0x10ee   : > { %5079 = vmatmul.mubr.msk.f32.vlgmr.msra.gmra.mxu1 %vm500_vm0, %v3232_v24 }
0x10ef   : > { %5082 = vmatpush3.msra.mxu1 %v3331_v10  ;;  %v5069_v8 = vpop.f32.mrf.mxu1  ;;  %5089 = vmatprep.mubr.msk.f32.mxu1 %vm500_vm0, %v6159_v2 }
0x10f0   : > { %5083 = vmatprep.subr.mxu1 %v3329_v5 }
0x10f1   : > { %5084 = vmatpush3.msra.mxu1 %v3329_v5 }
0x10f2   : > { %5085 = vmatprep.subr.mxu1 %v3327_v7 }
0x10f3   : > { %5086 = vmatpush3.msra.mxu1 %v3327_v7 }
0x10f4   : > { %5087 = vmatprep.subr.mxu1 %v3325_v19 }
0x10f5   : > { %5088 = vmatpush3.msra.mxu1 %v3325_v19 }
0x10f6   : > { %5090 = vmatmul.mubr.msk.f32.vlgmr.msra.gmra.mxu1 %vm500_vm0, %v6157_v13  ;;  %5099 = vmatprep.subr.mxu1 %v5406_v26 }
0x10f7   : > { %5103 = vmatprep.mubr.msk.f32.mxu1 %vm5407_vm9, %v5406_v26 }
0x11ae   : > { %v3305_v15 = vpop.f32.mrf.mxu1 }
0x11af   : > { %v3319_v34 = vadd.f32 %v3318_v33, %v3305_v15 }
0x11b0   : > { %v5080_v20 = vpop.f32.mrf.mxu1 }
0x11b6   : > { %v6190_v23 = vpop.f32.mrf.mxu1 }
0x11b7   : > { %3427 = vrot.lane.b32.xlu1 %v6190_v23, %s6446_s29  ;;  %5093 = vmatpush3.xpose.msk.msra.mxu0 %vm600_vm1, %v6190_v23 }
0x11b8   : > { %v6196_v47 = vpop.f32.mrf.mxu1  ;;  %5094 = vmatprep.subr.mxu0 %v5406_v26 }
0x11b9   : > { %3425 = vrot.lane.b32.xlu0 %v6196_v47, %s6446_s29 }
0x11bb   : > { %3431 = vrot.lane.b32.xlu1 %v6190_v23, %s6447_s11  ;;  %5095 = vmatpush3.xpose.msk.msra.mxu0 %vm600_vm1, %v6196_v47 }
0x11bc   : > { %5106 = vmatprep.subr.mxu0 %v5406_v26 }
0x11bd   : > { %3417 = vrot.lane.b32.xlu0 %v3319_v34, %s6446_s29  ;;  %s399_s29 = scalar_lea.vmem [#allocation2], %s4537_s25 }
0x11be   : > { %5097 = vmatmul.mubr.msk.f32.vlgmr.msra.gmra.mxu0 %vm600_vm1, %v3319_v34 }
0x11bf   : > { %3435 = vrot.lane.b32.xlu1 %v6190_v23, %s6438_s26  ;;  %5110 = vmatprep.mubr.msk.f32.mxu0 %vm5407_vm9, %v5406_v26 }
0x11c1   : > { %3429 = vrot.lane.b32.xlu0 %v6196_v47, %s6447_s11 }
0x11c3   : > { %3433 = vrot.lane.b32.xlu1 %v6196_v47, %s6438_s26 }
0x11c5   : > { %3419 = vrot.lane.b32.xlu0 %v3319_v34, %s6447_s11  ;;  %s4413_s11 = sshll.u32 %s399_s29, 4  ;;  %s4414_s11 = int_to_ptr.vmem [resolvable:$true] %s4413_s11 }
0x11c6   : > { %s5332_s12 = scalar_lea.vmem %s4414_s11, 128  ;;  %p5339_p0 = scmp.lt.s32.totalorder %s4414_s11, %s5337_s0 }
0x11c7   : > { %3421 = vrot.lane.b32.xlu1 %v3319_v34, %s6438_s26  ;;  %s6363_s26 = scalar_lea.hbm %s6408_s10, %s4671_s28  ;;  %p5333_p11 = scmp.ne.s32.totalorder %s4414_s11, %s5332_s12 }
0x11c9   : > { %p5334_p12 = pnand %p5333_p11, %p5503_p5 }
0x11cb   : > { %p5335_p13 = pneg %p5334_p12 }
0x1229   : > { %v3428_v35 = vpop.permute.xlu1 %3427 }
0x122a   : > { %5100 = vmatpush3.xpose.msk.msra.mxu1 %vm600_vm1, %v3428_v35 }
0x122b   : > { %v3426_v38 = vpop.permute.xlu0 %3425  ;;  %5101 = vmatprep.subr.mxu1 %v5406_v26 }
0x122d   : > { %v3432_v39 = vpop.permute.xlu1 %3431 }
0x122e   : > { %5102 = vmatpush3.xpose.msk.msra.mxu1 %vm600_vm1, %v3426_v38  ;;  %5107 = vmatpush3.xpose.msk.msra.mxu0 %vm600_vm1, %v3432_v39 }
0x122f   : > { %v3418_v40 = vpop.permute.xlu0 %3417  ;;  %5113 = vmatprep.subr.mxu1 %v5406_v26  ;;  %5108 = vmatprep.subr.mxu0 %v5406_v26 }
0x1231   : > { %v3436_v41 = vpop.permute.xlu1 %3435  ;;  %5104 = vmatmul.mubr.msk.f32.vlgmr.msra.gmra.mxu1 %vm600_vm1, %v3418_v40 }
0x1232   : > { %5114 = vmatpush3.xpose.msk.msra.mxu1 %vm600_vm1, %v3436_v41  ;;  %5117 = vmatprep.mubr.msk.f32.mxu1 %vm5407_vm9, %v5406_v26 }
0x1233   : > { %v6228_v43 = vpop.permute.xlu0 %3429  ;;  %5115 = vmatprep.subr.mxu1 %v5406_v26 }
0x1234   : > { %5109 = vmatpush3.xpose.msk.msra.mxu0 %vm600_vm1, %v6228_v43 }
0x1235   : > { %v6233_v44 = vpop.permute.xlu1 %3433  ;;  %5120 = vmatprep.subr.mxu0 %v5406_v26 }
0x1236   : > { %5116 = vmatpush3.xpose.msk.msra.mxu1 %vm600_vm1, %v6233_v44 }
0x1237   : > { %v3420_v45 = vpop.permute.xlu0 %3419  ;;  %5134 = vmatprep.subr.mxu1 %v5406_v26 }
0x1238   : > { %5111 = vmatmul.mubr.msk.f32.vlgmr.msra.gmra.mxu0 %vm600_vm1, %v3420_v45 }
0x1239   : > { %v3422_v46 = vpop.permute.xlu1 %3421  ;;  %5124 = vmatprep.mubr.msk.f32.mxu0 %vm5407_vm9, %v5406_v26 }
0x123a   : > { %5118 = vmatmul.mubr.msk.f32.vlgmr.msra.gmra.mxu1 %vm600_vm1, %v3422_v46 }
0x123b   : > { %5138 = vmatprep.mubr.msk.f32.mxu1 %vm5407_vm9, %v5406_v26 }
0x127e   : > { %v3509_v49 = vpop.f32.mrf.mxu0 }
0x127f   : > { %v3741_v50 = vmul.f32 0.35355338, %v3509_v49 }
0x1280   : > { %v5098_v51 = vpop.f32.mrf.mxu0 }
0x1281   : > { %v3745_v52 = vadd.f32 %v3741_v50, %v6249_v48 }
0x1283   : > { %v3749_v53 = vsel %vm953_vm3, %v3745_v52, -inf }
0x1284   : > { %3750 = vmax.xlane.f32.xlu0 %v3749_v53 }
0x12f1   : > { %v3585_v54 = vpop.f32.mrf.mxu1 }
0x12f2   : > { %v3742_v55 = vmul.f32 0.35355338, %v3585_v54 }
0x12f3   : > { %v5105_v18 = vpop.f32.mrf.mxu1 }
0x12f4   : > { %v3746_v16 = vadd.f32 %v3742_v55, %v6249_v48  ;;  %v3146_v55 = vld [vmem:[%s6406_s8 + $0x18] sm:$0xff]  ;;  %v3144_v18 = vld [vmem:[%s6406_s8 + $0x8] sm:$0xff] }
0x12f6   : > { %v3752_v31 = vsel %vm953_vm3, %v3746_v16, -inf }
0x12f7   : > { %3753 = vmax.xlane.f32.xlu1 %v3752_v31 }
0x12f8   : > { %v3661_v56 = vpop.f32.mrf.mxu0 }
0x12f9   : > { %v3743_v37 = vmul.f32 0.35355338, %v3661_v56 }
0x12fa   : > { %v5112_v57 = vpop.f32.mrf.mxu0  ;;  %v3737_v27 = vpop.f32.mrf.mxu1 }
0x12fb   : > { %v3747_v36 = vadd.f32 %v3743_v37, %v6249_v48  ;;  %v3744_v58 = vmul.f32 0.35355338, %v3737_v27 }
0x12fc   : > { %v5119_v59 = vpop.f32.mrf.mxu1 }
0x12fd   : > { %v3748_v28 = vadd.f32 %v3744_v58, %v6249_v48  ;;  %v3755_v60 = vsel %vm953_vm3, %v3747_v36, -inf }
0x12fe   : > { %3756 = vmax.xlane.f32.xlu0 %v3755_v60 }
0x12ff   : > { %v3758_v61 = vsel %vm953_vm3, %v3748_v28, -inf }
0x1302   : > { %3759 = vmax.xlane.f32.xlu0 %v3758_v61  ;;  %v3150_v61 = vld [vmem:[%s6406_s8 + $0x38] sm:$0xff] }
0x1308   : > { %3795 = vrot.lane.b32.xlu1 %v6190_v23, %s6439_s21 }
0x130c   : > { %3875 = vrot.lane.b32.xlu1 %v3428_v35, %s6439_s21 }
0x130d   : > { %v3751_v62 = vpop.xlane.xlu0 %3750 }
0x130e   : > { %v3761_v63 = vsub.f32 %v3745_v52, %v3751_v62 }
0x1310   : > { %3873 = vrot.lane.b32.xlu1 %v3426_v38, %s6439_s21  ;;  %v3765_v3 = vmul.f32 1.442695, %v3761_v63  ;;  %v3149_v63 = vld [vmem:[%s6406_s8 + $0x30] sm:$0xff] }
0x1312   : > { %5310 = vpow2.f32 %v3765_v3  ;;  %v3148_v3 = vld [vmem:[%s6406_s8 + $0x28] sm:$0xff] }
0x1314   : > { %4035 = vrot.lane.b32.xlu1 %v3436_v41, %s6439_s21 }
0x1318   : > { %3793 = vrot.lane.b32.xlu0 %v6196_v47, %s6439_s21 }
0x131c   : > { %3955 = vrot.lane.b32.xlu0 %v3432_v39, %s6439_s21 }
0x131f   : > { %v5311_v29 = vpop.eup %5310 }
0x1320   : > { %v3773_v0 = vsel %vm953_vm3, %v5311_v29, 0.0 }
0x1338   : > { %3774 = vadd.xlane.f32.xlu1 %v3773_v0  ;;  %v3151_v0 = vld [vmem:[%s6406_s8 + $0x40] sm:$0xf] }
0x1380   : > { %v3754_v30 = vpop.xlane.xlu1 %3753 }
0x1381   : > { %v3762_v1 = vsub.f32 %v3746_v16, %v3754_v30  ;;  %v4204_v30 = vrot.slane %v3151_v0, %v5555_v11 }
0x1383   : > { %v3767_v4 = vmul.f32 1.442695, %v3762_v1 }
0x1384   : > { %v3796_v6 = vpop.permute.xlu1 %3795 }
0x1385   : > { %5312 = vpow2.f32 %v3767_v4  ;;  %5121 = vmatpush3.msk.msra.mxu0 %vm1054_vm4, %v3796_v6 }
0x1386   : > { %5122 = vmatprep.subr.mxu0 %v5406_v26 }
0x1387   : > { %v3757_v12 = vpop.xlane.xlu0 %3756 }
0x1388   : > { %v3763_v25 = vsub.f32 %v3747_v36, %v3757_v12  ;;  %v3876_v23 = vpop.permute.xlu1 %3875 }
0x138a   : > { %v3769_v42 = vmul.f32 1.442695, %v3763_v25 }
0x138b   : > { %v3760_v9 = vpop.xlane.xlu0 %3759 }
0x138c   : > { %5314 = vpow2.f32 %v3769_v42  ;;  %v3764_v10 = vsub.f32 %v3748_v28, %v3760_v9  ;;  %v3874_v47 = vpop.permute.xlu1 %3873 }
0x138e   : > { %v3771_v5 = vmul.f32 1.442695, %v3764_v10  ;;  %v4373_v10 = vrot.slane %v3151_v0, %v5558_v14 }
0x138f   : > { %v3794_v24 = vpop.permute.xlu0 %3793 }
0x1390   : > { %5316 = vpow2.f32 %v3771_v5  ;;  %5123 = vmatpush3.msra.mxu0 %v3794_v24  ;;  %v4036_v33 = vpop.permute.xlu1 %4035 }
0x1391   : > { %5127 = vmatprep.subr.mxu0 %v5406_v26 }
0x1392   : > { %v5313_v8 = vpop.eup %5312 }
0x1393   : > { %v3956_v7 = vpop.permute.xlu0 %3955  ;;  %v3776_v19 = vsel %vm953_vm3, %v5313_v8, 0.0 }
0x1394   : > { %3777 = vadd.xlane.f32.xlu0 %v3776_v19  ;;  %5135 = vmatpush3.msk.msra.mxu1 %vm1054_vm4, %v3956_v7 }
0x1395   : > { %5136 = vmatprep.subr.mxu1 %v5406_v26 }
0x1399   : > { %v5315_v15 = vpop.eup %5314 }
0x139a   : > { %v3779_v20 = vsel %vm953_vm3, %v5315_v15, 0.0 }
0x139b   : > { %3780 = vadd.xlane.f32.xlu1 %v3779_v20 }
0x139d   : > { %v5317_v32 = vpop.eup %5316 }
0x139e   : > { %v3782_v22 = vsel %vm953_vm3, %v5317_v32, 0.0 }
0x139f   : > { %3783 = vadd.xlane.f32.xlu0 %v3782_v22 }
0x13ac   : > { %4033 = vrot.lane.b32.xlu1 %v6233_v44, %s6439_s21 }
0x13b5   : > { %3953 = vrot.lane.b32.xlu0 %v6228_v43, %s6439_s21  ;;  %s5338_s21 = scalar_lea.vmem %s5337_s0, 256 }
0x13b6   : > { %p5340_p1 = scmp.lt.s32.totalorder %s5338_s21, %s5332_s12 }
0x13b8   : > { %p5341_p2 = por %p5340_p1, %p5339_p0 }
0x13ba   : > { %p5342_p3 = pnand %p5341_p2, %p5335_p13 }
0x13c1   : > { %v3775_v34 = vpop.xlane.xlu1 %3774 }
0x13c2   : > { %5318 = vrcp.f32 %v3775_v34 }
0x13cf   : > { %v5319_v35 = vpop.eup %5318 }
0x13d0   : > { %v3786_v38 = vmul.f32 %v5319_v35, %v5311_v29  ;;  %v3147_v29 = vld [vmem:[%s6406_s8 + $0x20] sm:$0xff] }
0x13d2   : > { %5125 = vmatmul.mubr.msk.f32.vlgmr.msra.gmra.mxu0 %vm953_vm3, %v3786_v38 }
0x13d3   : > { %5128 = vmatpush3.msk.msra.mxu0 %vm1054_vm4, %v3876_v23  ;;  %5131 = vmatprep.mubr.msk.f32.mxu0 %vm5407_vm9, %v5406_v26 }
0x13d4   : > { %5129 = vmatprep.subr.mxu0 %v5406_v26 }
0x13d5   : > { %5130 = vmatpush3.msra.mxu0 %v3874_v47 }
0x13d6   : > { %5141 = vmatprep.subr.mxu0 %v5406_v26 }
0x141d   : > { %v3778_v39 = vpop.xlane.xlu0 %3777 }
0x141e   : > { %5320 = vrcp.f32 %v3778_v39 }
0x1424   : > { %v3781_v40 = vpop.xlane.xlu1 %3780 }
0x1425   : > { %5322 = vrcp.f32 %v3781_v40 }
0x1428   : > { %v3784_v41 = vpop.xlane.xlu0 %3783  ;;  %v4034_v46 = vpop.permute.xlu1 %4033 }
0x1429   : > { %5324 = vrcp.f32 %v3784_v41 }
0x142b   : > { %v5321_v43 = vpop.eup %5320 }
0x142c   : > { %v3954_v44 = vpop.permute.xlu0 %3953  ;;  %v3788_v45 = vmul.f32 %v5321_v43, %v5313_v8 }
0x142d   : > { %5137 = vmatpush3.msra.mxu1 %v3954_v44 }
0x142e   : > { %5132 = vmatmul.mubr.msk.f32.vlgmr.msra.gmra.mxu0 %vm953_vm3, %v3788_v45  ;;  %5148 = vmatprep.subr.mxu1 %v5406_v26 }
0x142f   : > { %5142 = vmatpush3.msk.msra.mxu0 %vm1054_vm4, %v4036_v33  ;;  %5145 = vmatprep.mubr.msk.f32.mxu0 %vm5407_vm9, %v5406_v26 }
0x1430   : > { %5143 = vmatprep.subr.mxu0 %v5406_v26 }
0x1431   : > { %5144 = vmatpush3.msra.mxu0 %v4034_v46 }
0x1432   : > { %v5323_v49 = vpop.eup %5322  ;;  %5159 = vmatprep.subr.mxu0 %v5406_v26 }
0x1433   : > { %v3790_v50 = vmul.f32 %v5323_v49, %v5315_v15 }
0x1435   : > { %5139 = vmatmul.mubr.msk.f32.vlgmr.msra.gmra.mxu1 %vm953_vm3, %v3790_v50 }
0x1436   : > { %v5325_v51 = vpop.eup %5324  ;;  %5156 = vmatprep.mubr.msk.f32.mxu1 %vm5407_vm9, %v5406_v26  ;;  %5149 = vmatpush3.msra.mxu1 %v3146_v55 }
0x1437   : > { %v3792_v52 = vmul.f32 %v5325_v51, %v5317_v32  ;;  %5150 = vmatprep.subr.mxu1 %v5406_v26  ;;  %v4381_v32 = vrot.slane %v3151_v0, %v5569_v21 }
0x1439   : > { %5146 = vmatmul.mubr.msk.f32.vlgmr.msra.gmra.mxu0 %vm953_vm3, %v3792_v52 }
0x143a   : > { %5160 = vmatpush3.xpose.msk.msra.mxu0 %vm500_vm0, %v6157_v13  ;;  %5163 = vmatprep.mubr.msk.f32.mxu0 %vm5407_vm9, %v5406_v26  ;;  %v3145_v13 = vld [vmem:[%s6406_s8 + $0x10] sm:$0xff] }
0x143b   : > { %5161 = vmatprep.subr.mxu0 %v5406_v26  ;;  %5151 = vmatpush3.msra.mxu1 %v3145_v13 }
0x143c   : > { %5152 = vmatprep.subr.mxu1 %v5406_v26 }
0x143d   : > { %5153 = vmatpush3.msra.mxu1 %v3144_v18 }
0x143e   : > { %5162 = vmatpush3.xpose.msk.msra.mxu0 %vm500_vm0, %v6159_v2  ;;  %5154 = vmatprep.subr.mxu1 %v5406_v26  ;;  %v3143_v2 = vld [vmem:[%s6406_s8] sm:$0xff] }
0x143f   : > { %5155 = vmatpush3.msra.mxu1 %v3143_v2 }
0x1440   : > { %5166 = vmatprep.subr.mxu1 %v5406_v26 }
0x1492   : > { %v3869_v53 = vpop.f32.mrf.mxu0 }
0x1494   : > { %v5126_v54 = vpop.f32.mrf.mxu0 }
0x14ee   : > { %v3949_v16 = vpop.f32.mrf.mxu0 }
0x14ef   : > { %4114 = vrot.lane.b32.xlu0 %v3949_v16, %s6441_s30 }
0x14f0   : > { %v5133_v31 = vpop.f32.mrf.mxu0 }
0x14f5   : > { %v4029_v56 = vpop.f32.mrf.mxu1 }
0x14f6   : > { %4118 = vrot.lane.b32.xlu1 %v4029_v56, %s6442_s18 }
0x14f7   : > { %v5140_v37 = vpop.f32.mrf.mxu1 }
0x14f9   : > { %v4109_v57 = vpop.f32.mrf.mxu0 }
0x14fa   : > { %4122 = vrot.lane.b32.xlu0 %v4109_v57, %s6443_s20  ;;  %s4397_s20 = scalar_lea.sflag [#allocation3], %s397_s27 }
0x14fb   : > { %v5147_v27 = vpop.f32.mrf.mxu0 }
0x1561   : > { %v4115_v36 = vpop.permute.xlu0 %4114 }
0x1562   : > { %v4125_v59 = vsel %vm600_vm1, %v3869_v53, %v4115_v36 }
0x1568   : > { %v4119_v58 = vpop.permute.xlu1 %4118 }
0x1569   : > { %v4126_v28 = vsel %vm1422_vm5, %v4125_v59, %v4119_v58 }
0x156c   : > { %v4123_v60 = vpop.permute.xlu0 %4122 }
0x156d   : > { %v4127_v62 = vsel %vm1425_vm6, %v4126_v28, %v4123_v60 }
0x156e   : > { %5157 = vmatmul.mubr.msk.f32.vlgmr.msra.gmra.mxu1 %vm500_vm0, %v4127_v62 }
0x156f   : > { %5167 = vmatpush3.msra.mxu1 %v3150_v61  ;;  %5174 = vmatprep.mubr.msk.f32.mxu1 %vm5407_vm9, %v5406_v26 }
0x1570   : > { %5168 = vmatprep.subr.mxu1 %v5406_v26 }
0x1571   : > { %5169 = vmatpush3.msra.mxu1 %v3149_v63 }
0x1572   : > { %5170 = vmatprep.subr.mxu1 %v5406_v26 }
0x1573   : > { %5171 = vmatpush3.msra.mxu1 %v3148_v3 }
0x1574   : > { %5172 = vmatprep.subr.mxu1 %v5406_v26  ;;  %v4367_v26 = vrot.slane %v3151_v0, %v5565_v17 }
0x1575   : > { %5173 = vmatpush3.msra.mxu1 %v3147_v29 }
0x162e   : > { %v4197_v1 = vpop.f32.mrf.mxu1 }
0x162f   : > { %v4205_v4 = vadd.f32 %v4204_v30, %v4197_v1 }
0x1630   : > { %v5158_v6 = vpop.f32.mrf.mxu1 }
0x1631   : > { %5164 = vmatmul.mubr.msk.f32.vlgmr.msra.gmra.mxu0 %vm500_vm0, %v4205_v4  ;;  %5175 = vmatmul.mubr.msk.f32.vlgmr.msra.gmra.mxu1 %vm500_vm0, %v4205_v4 }
0x16f1   : > { %v4275_v12 = vpop.f32.mrf.mxu0  ;;  %v4360_v25 = vpop.f32.mrf.mxu1 }
0x16f2   : > { %v4279_v42 = vmul.f32 0.17677669, %v4275_v12  ;;  %v4368_v9 = vadd.f32 %v4367_v26, %v4360_v25 }
0x16f3   : > { %v5165_v5 = vpop.f32.mrf.mxu0  ;;  %v5176_v24 = vpop.f32.mrf.mxu1 }
0x16f4   : > { %5326 = vtanh.f32 %v4279_v42  ;;  %v4369_v8 = vmax.f32 %v4368_v9, 0.0 }
0x16f6   : > { %v4374_v11 = vmul.f32 %v4373_v10, %v4369_v8 }
0x16f8   : > { %v4375_v7 = vsel %vm500_vm0, %v4374_v11, 0.0 }
0x16f9   : > { %4376 = vadd.xlane.f32.xlu0 %v4375_v7 }
0x1701   : > { %v5327_v19 = vpop.eup %5326 }
0x1702   : > { %v4281_v15 = vmul.f32 10.0, %v5327_v19 }
0x1704   : > { %v4282_v20 = vadd.f32 %v4281_v15, %v6249_v48 }
0x1706   : > { %v4283_v17 = vsel %vm953_vm3, %v4282_v20, -inf }
0x1707   : > { %4284 = vmax.xlane.f32.xlu1 %v4283_v17 }
0x1782   : > { %v4377_v22 = vpop.xlane.xlu0 %4376 }
0x1783   : > { %v4382_v14 = vadd.f32 %v4381_v32, %v4377_v22 }
0x1785   : > { %4384 = vrot.lane.b32.xlu1 %v4382_v14, %s5408_s6 }
0x1790   : > { %v4285_v23 = vpop.xlane.xlu1 %4284 }
0x1791   : > { %v4286_v47 = vsub.f32 %v4282_v20, %v4285_v23 }
0x1793   : > { %v4287_v33 = vmul.f32 1.442695, %v4286_v47 }
0x1795   : > { %5328 = vpow2.f32 %v4287_v33 }
0x17a2   : > { %v5329_v34 = vpop.eup %5328 }
0x17a3   : > { %v4289_v35 = vsel %vm953_vm3, %v5329_v34, 0.0 }
0x17a4   : > { %4290 = vadd.xlane.f32.xlu0 %v4289_v35 }
0x17f7   : > { %v4385_v39 = vpop.permute.xlu1 %4384 }
0x182d   : > { %v4291_v48 = vpop.xlane.xlu0 %4290 }
0x182e   : > { %5330 = vrcp.f32 %v4291_v48 }
0x183b   : > { %v5331_v38 = vpop.eup %5330 }
0x183c   : > { %v4293_v21 = vmul.f32 %v5331_v38, %v5329_v34 }
0x183e   : > { %v4387_v40 = vsel %vm953_vm3, %v4293_v21, %v4385_v39 }
0x183f   : > { %v4389_v41 = vsel %vm4388_vm11, %v4387_v40, 0.0 }
0x1840   : > { %4390 = vst [vmem:[%s399_s29] sm:$0xff] %v4389_v41 }
0x1841   : > { %5345 = shalt.err (!%p5342_p3)
}
0x1842   : > { %s5346_s5 = scalar_lea.hbm %s6363_s26, 128  ;;  %s5350_s27 = scalar_lea.hbm %s6408_s10, 256 }
0x1843   : > { %p5347_p4 = scmp.ne.s32.totalorder %s6363_s26, %s5346_s5  ;;  %p5351_p9 = scmp.lt.s32.totalorder %s6363_s26, %s6408_s10 }
0x1844   : > { %p5352_p10 = scmp.lt.s32.totalorder %s5350_s27, %s5346_s5 }
0x1845   : > { %p5348_p7 = pnand %p5347_p4, %p5503_p5 }
0x1846   : > { %p5353_p11 = por %p5352_p10, %p5351_p9 }
0x1847   : > { %p5349_p8 = pneg %p5348_p7 }
0x1849   : > { %p5354_p12 = pnand %p5353_p11, %p5349_p8 }
0x184b   : > { %5357 = shalt.err (!%p5354_p12)
}
0x184c   : > { %5177 = dma.vmem_to_hbm [thread:$0]  (%p5503_p5), %s4414_s11, 128, %s6363_s26, %s4397_s20  }
0x184d PF: > { %p5183_p13 = scmp.ge.s32.totalorder %s5392_s16, 2  ;;  %s4433_s29 = sand.u32 1, %s5380_s13  }
0x184e   : > { %s4434_s30 = scalar_lea.sflag [#allocation3], %s4433_s29 }
0x184f   : > { %p5180_p0 = pnand %p5183_p13, %p5507_p6 }
0x1851   : > { %p5181_p1 = pneg %p5180_p0 }
0x1853   : > { %5375 = dma.done.wait (%p5181_p1), %s4434_s30, 128  }
0x1854   : > { %5377 = vsyncadd (%p5181_p1), %s4434_s30, 4294967168  ;;  %p21_p2 = scmp.ge.s32.totalorder %s5490_s19, 4   ;;  %s6448_s13 = smov %s5384_s14 }
0x1855   : > { %s6449_s14 = smov %s5388_s15  ;;  %s6450_s15 = smov %s5501_s22 }
0x1856   : > { %s6451_s16 = smov %s5490_s19  ;;  %23 = sbr.rel (!%p21_p2) target bundleno = 8 (0x8), region = 114 }
0x185b   :  { %4439 = vsyncpa [#allocation3], 1 }
0x185c   :  { %4441 = vsyncpa [#allocation3 + $0x1], 1 }

</bundles_post_ra>
